<compile_context>
chip_gen: v6e
topology: v6e:2x2x1
jax: 0.10.0
libtpu: 0.0.40
codegen_flags: <defaults>
</compile_context>

<pallas_src>
import numpy as np
import jax
import jax.numpy as jnp
from jax.experimental import pallas as pl
from jax.experimental.pallas import tpu as pltpu

# ---------------- configuration (consistent with the module) ----------------
DIM = 32                     # embedding channels C
INPUT_RES = (8, 8)           # (H, W)
NUM_HEADS = 4
WINDOW_SIZE = 4
SHIFT_SIZE = 2               # SW-MSA (shifted windows) -> attn mask is used
MLP_RATIO = 4.0
HEAD_DIM = DIM // NUM_HEADS
SCALE = HEAD_DIM ** (-0.5)
HIDDEN = int(DIM * MLP_RATIO)
EPS = 1e-5                   # torch.nn.LayerNorm default
N_TOK = WINDOW_SIZE * WINDOW_SIZE                                      # 16 tokens / window
N_WIN = (INPUT_RES[0] // WINDOW_SIZE) * (INPUT_RES[1] // WINDOW_SIZE)  # 4 windows

# Single grid step (B folded into M) is best on v5e/v6e (1 TC).
# TODO(synk): on v7x set GRID_STEPS=2 (+ CORE_PARALLEL) for a real 2-TC split.
GRID_STEPS = 1


# ---------------- helpers (numpy / jnp glue) ---------------------------------
def window_partition(x, ws):
    B, H, W, C = x.shape
    x = x.reshape(B, H // ws, ws, W // ws, ws, C)
    return x.transpose(0, 1, 3, 2, 4, 5).reshape(-1, ws, ws, C)


def window_reverse(windows, ws, H, W):
    B = windows.shape[0] // (H * W // ws // ws)
    x = windows.reshape(B, H // ws, W // ws, ws, ws, -1)
    return x.transpose(0, 1, 3, 2, 4, 5).reshape(B, H, W, -1)


def make_window_permutation(H, W, ws, ss):
    """Static token permutation == cyclic shift + window partition (and inverse)."""
    idx = np.arange(H * W).reshape(1, H, W, 1)
    if ss > 0:
        idx = np.roll(idx, shift=(-ss, -ss), axis=(1, 2))
    perm = window_partition(idx, ws).reshape(-1).astype(np.int32)   # (nW*N,)
    inv = np.empty_like(perm)
    inv[perm] = np.arange(perm.size, dtype=np.int32)
    return perm, inv


_PERM_NP, _INV_NP = make_window_permutation(
    INPUT_RES[0], INPUT_RES[1], WINDOW_SIZE, SHIFT_SIZE)


# ---------------- in-kernel math helpers -------------------------------------
def _layer_norm(x, g, b):
    mu = jnp.mean(x, axis=-1, keepdims=True)
    var = jnp.mean(jnp.square(x - mu), axis=-1, keepdims=True)
    return (x - mu) * jax.lax.rsqrt(var + EPS) * g + b


def _erf(z):
    # Abramowitz & Stegun 7.1.26 rational erf approximation, |err| <= 1.5e-7.
    # The divide uses the EUP approx reciprocal + one Newton step (keeps bound).
    a1, a2, a3, a4, a5 = (0.254829592, -0.284496736, 1.421413741,
                          -1.453152027, 1.061405429)
    pp = 0.3275911
    sgn = jnp.where(z >= 0.0, 1.0, -1.0)
    za = jnp.abs(z)
    d = 1.0 + pp * za
    t = pl.reciprocal(d, approx=True)
    t = t * (2.0 - d * t)                       # Newton refinement
    poly = ((((a5 * t + a4) * t + a3) * t + a2) * t + a1) * t
    return sgn * (1.0 - poly * jnp.exp(-za * za))


def _gelu_exact(x):
    # torch.nn.GELU() default = exact erf GELU: 0.5 * x * (1 + erf(x / sqrt(2)))
    return 0.5 * x * (1.0 + _erf(x * 0.7071067811865476))


# ---------------- the single fused Swin-block kernel --------------------------
def _swin_block_kernel(x_ref, bias_ref, vec_ref, wpack_ref, w2_ref,
                       o_ref, hcat_ref):
    nw, nt, hd, heads = N_WIN, N_TOK, HEAD_DIM, NUM_HEADS
    C, Hd = DIM, HIDDEN

    x = x_ref[...]                               # (rows, C) f32, windowed order
    rows = x.shape[0]
    nwin = rows // nt                            # windows in this slab (B*nW)
    nb = nwin // nw                              # batch elements in this slab

    # ---- unpack the consolidated parameter operands (static slices) ---------
    vec = vec_ref[...]                           # (8, 128) f32
    g1, b1 = vec[0:1, :C], vec[1:2, :C]
    bqkv = vec[2:3, :3 * C]
    bproj = vec[3:4, :C]
    g2, b2 = vec[4:5, :C], vec[5:6, :C]
    bm1 = vec[6:7, :Hd]
    bm2 = vec[7:8, :C]

    wpack = wpack_ref[...]                       # (C, 4C + Hd) bf16
    wqkv = wpack[:, :3 * C]                      # q-scale already folded in
    wproj = wpack[:, 3 * C:4 * C]
    w1 = wpack[:, 4 * C:4 * C + Hd]
    w2 = w2_ref[...]                             # (Hd, C) bf16

    # ---- LN1 + fused qkv projection (one M=rows, K=C, N=3C MXU matmul) ------
    xln = _layer_norm(x, g1, b1)
    qkv = jnp.dot(xln.astype(jnp.bfloat16), wqkv,
                  preferred_element_type=jnp.float32) + bqkv       # (rows, 3C)

    bias = bias_ref[...]                         # (heads, nW, N, N) f32

    # ---- window MSA: per-head (4 unrolled), window-batched inside each head.
    # Head outputs land in a VMEM scratch at static 8-lane offsets so the
    # output projection is a single K=C matmul instead of 4 tiny K=hd ones.
    for h in range(heads):
        qh = qkv[:, h * hd:(h + 1) * hd]
        kh = qkv[:, C + h * hd:C + (h + 1) * hd]
        vh = qkv[:, 2 * C + h * hd:2 * C + (h + 1) * hd]
        qh = qh.reshape(nwin, nt, hd).astype(jnp.bfloat16)
        kh = kh.reshape(nwin, nt, hd).astype(jnp.bfloat16)
        vh = vh.reshape(nwin, nt, hd).astype(jnp.bfloat16)
        s = jnp.einsum('wqd,wkd->wqk', qh, kh,
                       preferred_element_type=jnp.float32)         # (nwin, N, N)
        # rel-pos bias + shift mask, broadcast over the batch groups (no tile)
        s = (s.reshape(nb, nw, nt, nt) + bias[h][None]).reshape(nwin, nt, nt)
        s = s - jnp.max(s, axis=-1, keepdims=True)
        e = jnp.exp(s)
        p = e * pl.reciprocal(jnp.sum(e, axis=-1, keepdims=True), approx=True)
        oh = jnp.einsum('wqk,wkd->wqd', p.astype(jnp.bfloat16), vh,
                        preferred_element_type=jnp.float32)        # (nwin, N, hd)
        hcat_ref[:, h * hd:(h + 1) * hd] = oh.reshape(rows, hd)

    attn_out = jnp.dot(hcat_ref[...].astype(jnp.bfloat16), wproj,
                       preferred_element_type=jnp.float32) + bproj
    y = x + attn_out                             # residual 1 (windowed order)

    # ---- LN2 + MLP + residual ------------------------------------------------
    yln = _layer_norm(y, g2, b2)
    h1 = jnp.dot(yln.astype(jnp.bfloat16), w1,
                 preferred_element_type=jnp.float32) + bm1
    h1 = _gelu_exact(h1)
    m = jnp.dot(h1.astype(jnp.bfloat16), w2,
                preferred_element_type=jnp.float32) + bm2
    o_ref[...] = (y + m).astype(o_ref.dtype)


def _fused_block(xw, kp):
    Mtot, C = xw.shape
    assert Mtot % (GRID_STEPS * N_WIN * N_TOK) == 0
    rows = Mtot // GRID_STEPS

    return pl.pallas_call(
        _swin_block_kernel,
        out_shape=jax.ShapeDtypeStruct((Mtot, C), xw.dtype),
        grid=(GRID_STEPS,),
        in_specs=[
            pl.BlockSpec((rows, C), lambda i: (i, 0)),                    # activations
            pl.BlockSpec(kp["bias"].shape, lambda i: (0, 0, 0, 0)),       # bias (const)
            pl.BlockSpec(kp["vec_pack"].shape, lambda i: (0, 0)),         # packed vectors
            pl.BlockSpec(kp["w_pack"].shape, lambda i: (0, 0)),           # wqkv|wproj|w1
            pl.BlockSpec(kp["w2"].shape, lambda i: (0, 0)),               # w2
        ],
        out_specs=pl.BlockSpec((rows, C), lambda i: (i, 0)),
        scratch_shapes=[pltpu.VMEM((rows, C), jnp.float32)],              # head concat
        compiler_params=pltpu.CompilerParams(dimension_semantics=("parallel",)),
    )(xw, kp["bias"], kp["vec_pack"], kp["w_pack"], kp["w2"])


# ---------------- module constants (rel-pos index, shift attn mask) ----------
def make_relative_position_index(ws):
    coords_h = np.arange(ws)
    coords_w = np.arange(ws)
    coords = np.stack(np.meshgrid(coords_h, coords_w, indexing="ij"))  # (2, ws, ws)
    coords_flatten = coords.reshape(2, -1)                             # (2, N)
    rel = coords_flatten[:, :, None] - coords_flatten[:, None, :]      # (2, N, N)
    rel = rel.transpose(1, 2, 0).astype(np.int32)                      # (N, N, 2)
    rel[:, :, 0] += ws - 1
    rel[:, :, 1] += ws - 1
    rel[:, :, 0] *= 2 * ws - 1
    return rel.sum(-1)                                                 # (N, N)


def make_shift_attn_mask(H, W, ws, ss):
    N = ws * ws
    nW = (H // ws) * (W // ws)
    if ss == 0:
        return np.zeros((nW, N, N), np.float32)
    img_mask = np.zeros((1, H, W, 1), np.float32)
    cnt = 0
    for h_sl in (slice(0, -ws), slice(-ws, -ss), slice(-ss, None)):
        for w_sl in (slice(0, -ws), slice(-ws, -ss), slice(-ss, None)):
            img_mask[:, h_sl, w_sl, :] = cnt
            cnt += 1
    mw = window_partition(img_mask, ws).reshape(-1, N)                 # (nW, N)
    diff = mw[:, None, :] - mw[:, :, None]                             # (nW, N, N)
    return np.where(diff != 0, -100.0, 0.0).astype(np.float32)


# ---------------- parameter init (torch-equivalent, f32) ---------------------
def init_params(key):
    ws, heads = WINDOW_SIZE, NUM_HEADS
    N = ws * ws
    ks = jax.random.split(key, 8)
    p = {}
    # LayerNorms (torch default: weight=1, bias=0)
    p["g1"] = jnp.ones((DIM,), jnp.float32)
    p["b1"] = jnp.zeros((DIM,), jnp.float32)
    p["g2"] = jnp.ones((DIM,), jnp.float32)
    p["b2"] = jnp.zeros((DIM,), jnp.float32)
    # attention (weights stored transposed to (in, out) for x @ W)
    p["wqkv"] = 0.02 * jax.random.normal(ks[0], (DIM, 3 * DIM), jnp.float32)
    p["bqkv"] = 0.02 * jax.random.normal(ks[1], (3 * DIM,), jnp.float32)
    p["wproj"] = 0.02 * jax.random.normal(ks[2], (DIM, DIM), jnp.float32)
    p["bproj"] = 0.02 * jax.random.normal(ks[3], (DIM,), jnp.float32)
    # relative position bias table -> gathered (heads, N, N) bias
    table = 0.02 * jax.random.normal(
        ks[4], ((2 * ws - 1) * (2 * ws - 1), heads), jnp.float32)
    rpi = jnp.asarray(make_relative_position_index(ws))                # (N, N)
    rel_bias = table[rpi.reshape(-1)].reshape(N, N, heads).transpose(2, 0, 1)
    p["rel_bias"] = rel_bias                                           # (heads, N, N)
    # shift attention mask (module buffer)
    p["attn_mask"] = jnp.asarray(
        make_shift_attn_mask(INPUT_RES[0], INPUT_RES[1], ws, SHIFT_SIZE))
    # MLP
    p["w1"] = 0.02 * jax.random.normal(ks[5], (DIM, HIDDEN), jnp.float32)
    p["bm1"] = 0.02 * jax.random.normal(ks[6], (HIDDEN,), jnp.float32)
    p["w2"] = 0.02 * jax.random.normal(ks[7], (HIDDEN, DIM), jnp.float32)
    p["bm2"] = jnp.zeros((DIM,), jnp.float32)
    return p


def pack_params(p):
    """One-time transform: fold qk-scale, pack small vectors, cast weights to bf16."""
    C, Hd = DIM, HIDDEN
    assert 3 * C <= 128 and Hd <= 128, "vector packing assumes rows fit 128 lanes"
    scale_vec = jnp.concatenate(
        [jnp.full((C,), SCALE, jnp.float32), jnp.ones((2 * C,), jnp.float32)])
    wqkv = p["wqkv"] * scale_vec[None, :]                 # fold scale into q-cols
    bqkv = p["bqkv"] * scale_vec
    w_pack = jnp.concatenate([wqkv, p["wproj"], p["w1"]],
                             axis=1).astype(jnp.bfloat16)              # (C, 4C+Hd)
    w2 = p["w2"].astype(jnp.bfloat16)                                  # (Hd, C)

    def row(v):
        return jnp.pad(v.astype(jnp.float32), (0, 128 - v.shape[0]))

    vec_pack = jnp.stack([row(p["g1"]), row(p["b1"]), row(bqkv), row(p["bproj"]),
                          row(p["g2"]), row(p["b2"]), row(p["bm1"]), row(p["bm2"])])
    bias = p["rel_bias"][:, None] + p["attn_mask"][None]   # (heads, nW, N, N)
    return {"w_pack": w_pack, "w2": w2, "vec_pack": vec_pack, "bias": bias}


# ---------------- SwinTransformerBlock forward (fused kernel path) -----------
def swin_block_forward(x, kp):
    B, L, C = x.shape
    assert L == INPUT_RES[0] * INPUT_RES[1], "input feature has wrong size"
    # cyclic shift + window partition as ONE static-index gather
    xw = jnp.take(x, jnp.asarray(_PERM_NP), axis=1).reshape(B * L, C)
    # entire Swin block (both residual branches) in one fused Pallas kernel
    yw = _fused_block(xw, kp).reshape(B, L, C)
    # window reverse + reverse cyclic shift as ONE static-index gather
    return jnp.take(yw, jnp.asarray(_INV_NP), axis=1)


# ---------------- pure-JAX reference (mirrors the torch module) --------------
def _ln_ref(x, g, b):
    mu = jnp.mean(x, -1, keepdims=True)
    var = jnp.mean(jnp.square(x - mu), -1, keepdims=True)
    return (x - mu) / jnp.sqrt(var + EPS) * g + b


def swin_block_reference(x, p):
    H, W = INPUT_RES
    B, L, C = x.shape
    ws, ss = WINDOW_SIZE, SHIFT_SIZE
    N, heads, hd = ws * ws, NUM_HEADS, HEAD_DIM
    shortcut = x
    xn = _ln_ref(x, p["g1"], p["b1"]).reshape(B, H, W, C)
    if ss > 0:
        xn = jnp.roll(xn, shift=(-ss, -ss), axis=(1, 2))
    xw = window_partition(xn, ws).reshape(-1, N, C)                    # (B*nW, N, C)
    qkv = xw @ p["wqkv"] + p["bqkv"]
    qkv = qkv.reshape(-1, N, 3, heads, hd).transpose(2, 0, 3, 1, 4)
    q, k, v = qkv[0] * SCALE, qkv[1], qkv[2]                           # (B*nW, h, N, hd)
    attn = jnp.einsum('bhqd,bhkd->bhqk', q, k) + p["rel_bias"][None]
    attn = attn.reshape(B, N_WIN, heads, N, N) + p["attn_mask"][None, :, None]
    attn = jax.nn.softmax(attn.reshape(-1, heads, N, N), axis=-1)
    out = jnp.einsum('bhqk,bhkd->bhqd', attn, v)
    out = out.transpose(0, 2, 1, 3).reshape(-1, N, C) @ p["wproj"] + p["bproj"]
    out = window_reverse(out.reshape(-1, ws, ws, C), ws, H, W)
    if ss > 0:
        out = jnp.roll(out, shift=(ss, ss), axis=(1, 2))
    y = shortcut + out.reshape(B, L, C)
    yn = _ln_ref(y, p["g2"], p["b2"])
    h = jax.nn.gelu(yn @ p["w1"] + p["bm1"], approximate=False)
    return y + (h @ p["w2"] + p["bm2"])


if __name__ == "__main__":
    Hres, Wres = INPUT_RES
    B = 2
    key = jax.random.PRNGKey(0)
    kx, kp = jax.random.split(key)
    x = jax.random.normal(kx, (B, Hres * Wres, DIM), jnp.float32)
    params = init_params(kp)
    kernel_params = pack_params(params)      # one-time: pack / fold scale / bf16

    out = jax.jit(swin_block_forward)(x, kernel_params)
    out = jax.block_until_ready(out)
    assert out.shape == (B, Hres * Wres, DIM)
    assert bool(jnp.all(jnp.isfinite(out)))

    # correctness vs. a pure-JAX reference of the torch module (relaxed
    # tolerance: bf16 MXU operands + approx reciprocal in the kernel path)
    ref = swin_block_reference(x, params)
    np.testing.assert_allclose(np.asarray(out), np.asarray(ref),
                               rtol=5e-3, atol=5e-3)
    print("KERNEL_OK")
</pallas_src>

<mosaic_0001>
module attributes {stable_mosaic.version = 11 : i64} {
  func.func @_swin_block_kernel(%arg0: i32, %arg1: memref<128x32xf32, #tpu.memory_space<vmem>>, %arg2: memref<4x4x16x16xf32, #tpu.memory_space<vmem>>, %arg3: memref<8x128xf32, #tpu.memory_space<vmem>>, %arg4: memref<32x256xbf16, #tpu.memory_space<vmem>>, %arg5: memref<128x32xbf16, #tpu.memory_space<vmem>>, %arg6: memref<128x32xf32, #tpu.memory_space<vmem>>, %arg7: memref<128x32xf32, #tpu.memory_space<vmem>>) attributes {dimension_semantics = [#tpu.dimension_semantics<parallel>], iteration_bounds = array<i64: 1>, scalar_prefetch = 0 : i64, scratch_operands = 1 : i64, tpu.core_type = #tpu.core_type<tc>, window_params = [{transform_indices = @transform_0, window_bounds = array<i64: 128, 32>}, {pipeline_mode = #tpu.pipeline_mode<synchronous>, transform_indices = @transform_1, window_bounds = array<i64: 4, 4, 16, 16>}, {pipeline_mode = #tpu.pipeline_mode<synchronous>, transform_indices = @transform_2, window_bounds = array<i64: 8, 128>}, {pipeline_mode = #tpu.pipeline_mode<synchronous>, transform_indices = @transform_3, window_bounds = array<i64: 32, 256>}, {pipeline_mode = #tpu.pipeline_mode<synchronous>, transform_indices = @transform_4, window_bounds = array<i64: 128, 32>}, {transform_indices = @transform_5, window_bounds = array<i64: 128, 32>}]} {
    %c0 = arith.constant 0 : index
    %c0_0 = arith.constant 0 : index
    %0 = vector.load %arg1[%c0, %c0_0] : memref<128x32xf32, #tpu.memory_space<vmem>>, vector<128x32xf32>
    %c0_1 = arith.constant 0 : index
    %c0_2 = arith.constant 0 : index
    %1 = vector.load %arg3[%c0_1, %c0_2] : memref<8x128xf32, #tpu.memory_space<vmem>>, vector<8x128xf32>
    %2 = vector.extract_strided_slice %1 {offsets = [0, 0], sizes = [1, 32], strides = [1, 1]} : vector<8x128xf32> to vector<1x32xf32>
    %3 = vector.extract_strided_slice %1 {offsets = [1, 0], sizes = [1, 32], strides = [1, 1]} : vector<8x128xf32> to vector<1x32xf32>
    %4 = vector.extract_strided_slice %1 {offsets = [2, 0], sizes = [1, 96], strides = [1, 1]} : vector<8x128xf32> to vector<1x96xf32>
    %5 = vector.extract_strided_slice %1 {offsets = [3, 0], sizes = [1, 32], strides = [1, 1]} : vector<8x128xf32> to vector<1x32xf32>
    %6 = vector.extract_strided_slice %1 {offsets = [4, 0], sizes = [1, 32], strides = [1, 1]} : vector<8x128xf32> to vector<1x32xf32>
    %7 = vector.extract_strided_slice %1 {offsets = [5, 0], sizes = [1, 32], strides = [1, 1]} : vector<8x128xf32> to vector<1x32xf32>
    %8 = vector.extract_strided_slice %1 {offsets = [6, 0], sizes = [1, 128], strides = [1, 1]} : vector<8x128xf32> to vector<1x128xf32>
    %9 = vector.extract_strided_slice %1 {offsets = [7, 0], sizes = [1, 32], strides = [1, 1]} : vector<8x128xf32> to vector<1x32xf32>
    %c0_3 = arith.constant 0 : index
    %c0_4 = arith.constant 0 : index
    %10 = vector.load %arg4[%c0_3, %c0_4] : memref<32x256xbf16, #tpu.memory_space<vmem>>, vector<32x256xbf16>
    %11 = vector.extract_strided_slice %10 {offsets = [0, 0], sizes = [32, 96], strides = [1, 1]} : vector<32x256xbf16> to vector<32x96xbf16>
    %12 = vector.extract_strided_slice %10 {offsets = [0, 96], sizes = [32, 32], strides = [1, 1]} : vector<32x256xbf16> to vector<32x32xbf16>
    %13 = vector.extract_strided_slice %10 {offsets = [0, 128], sizes = [32, 128], strides = [1, 1]} : vector<32x256xbf16> to vector<32x128xbf16>
    %c0_5 = arith.constant 0 : index
    %c0_6 = arith.constant 0 : index
    %14 = vector.load %arg5[%c0_5, %c0_6] : memref<128x32xbf16, #tpu.memory_space<vmem>>, vector<128x32xbf16>
    %cst = arith.constant dense<0.000000e+00> : vector<128xf32>
    %15 = vector.multi_reduction <add>, %0, %cst [1] : vector<128x32xf32> to vector<128xf32>
    %16 = vector.shape_cast %15 : vector<128xf32> to vector<128x1xf32>
    %cst_7 = arith.constant 3.200000e+01 : f32
    %17 = vector.broadcast %cst_7 : f32 to vector<128x1xf32>
    %18 = arith.divf %16, %17 : vector<128x1xf32>
    %19 = vector.broadcast %18 : vector<128x1xf32> to vector<128x32xf32>
    %20 = arith.subf %0, %19 : vector<128x32xf32>
    %21 = arith.mulf %20, %20 : vector<128x32xf32>
    %cst_8 = arith.constant dense<0.000000e+00> : vector<128xf32>
    %22 = vector.multi_reduction <add>, %21, %cst_8 [1] : vector<128x32xf32> to vector<128xf32>
    %23 = vector.shape_cast %22 : vector<128xf32> to vector<128x1xf32>
    %cst_9 = arith.constant 3.200000e+01 : f32
    %24 = vector.broadcast %cst_9 : f32 to vector<128x1xf32>
    %25 = arith.divf %23, %24 : vector<128x1xf32>
    %26 = vector.broadcast %18 : vector<128x1xf32> to vector<128x32xf32>
    %27 = arith.subf %0, %26 : vector<128x32xf32>
    %cst_10 = arith.constant 9.99999974E-6 : f32
    %28 = vector.broadcast %cst_10 : f32 to vector<128x1xf32>
    %29 = arith.addf %25, %28 : vector<128x1xf32>
    %30 = math.rsqrt %29 : vector<128x1xf32>
    %31 = vector.broadcast %30 : vector<128x1xf32> to vector<128x32xf32>
    %32 = arith.mulf %27, %31 : vector<128x32xf32>
    %33 = vector.broadcast %2 : vector<1x32xf32> to vector<128x32xf32>
    %34 = arith.mulf %32, %33 : vector<128x32xf32>
    %35 = vector.broadcast %3 : vector<1x32xf32> to vector<128x32xf32>
    %36 = arith.addf %34, %35 : vector<128x32xf32>
    %37 = arith.truncf %36 : vector<128x32xf32> to vector<128x32xbf16>
    %cst_11 = arith.constant dense<0.000000e+00> : vector<128x96xf32>
    %38 = tpu.matmul %37, %11, %cst_11 {dimension_numbers = #tpu.dot_dimension_numbers<[1], [0], [0], [1], [0, 0, 1, 1], [], []>} : vector<128x32xbf16>, vector<32x96xbf16>, vector<128x96xf32> -> vector<128x96xf32>
    %39 = vector.broadcast %4 : vector<1x96xf32> to vector<128x96xf32>
    %40 = arith.addf %38, %39 : vector<128x96xf32>
    %c0_12 = arith.constant 0 : index
    %c0_13 = arith.constant 0 : index
    %c0_14 = arith.constant 0 : index
    %c0_15 = arith.constant 0 : index
    %41 = vector.load %arg2[%c0_12, %c0_13, %c0_14, %c0_15] : memref<4x4x16x16xf32, #tpu.memory_space<vmem>>, vector<4x4x16x16xf32>
    %42 = vector.extract_strided_slice %40 {offsets = [0, 0], sizes = [128, 8], strides = [1, 1]} : vector<128x96xf32> to vector<128x8xf32>
    %43 = vector.extract_strided_slice %40 {offsets = [0, 32], sizes = [128, 8], strides = [1, 1]} : vector<128x96xf32> to vector<128x8xf32>
    %44 = vector.extract_strided_slice %40 {offsets = [0, 64], sizes = [128, 8], strides = [1, 1]} : vector<128x96xf32> to vector<128x8xf32>
    %45 = vector.shape_cast %42 : vector<128x8xf32> to vector<8x16x8xf32>
    %46 = arith.truncf %45 : vector<8x16x8xf32> to vector<8x16x8xbf16>
    %47 = vector.shape_cast %43 : vector<128x8xf32> to vector<8x16x8xf32>
    %48 = arith.truncf %47 : vector<8x16x8xf32> to vector<8x16x8xbf16>
    %49 = vector.shape_cast %44 : vector<128x8xf32> to vector<8x16x8xf32>
    %50 = arith.truncf %49 : vector<8x16x8xf32> to vector<8x16x8xbf16>
    "tpu.trace_start"() <{level = 10 : i32, message = "wqd,wkd->wqk"}> : () -> ()
    %cst_16 = arith.constant dense<0.000000e+00> : vector<8x16x16xf32>
    %51 = tpu.matmul %46, %48, %cst_16 {dimension_numbers = #tpu.dot_dimension_numbers<[2], [2], [1], [1], [0, 0, 0, 1, 1, 1], [0], [0]>} : vector<8x16x8xbf16>, vector<8x16x8xbf16>, vector<8x16x16xf32> -> vector<8x16x16xf32>
    "tpu.trace_stop"() : () -> ()
    %52 = vector.shape_cast %51 : vector<8x16x16xf32> to vector<2x4x16x16xf32>
    %53 = vector.extract_strided_slice %41 {offsets = [0, 0, 0, 0], sizes = [1, 4, 16, 16], strides = [1, 1, 1, 1]} : vector<4x4x16x16xf32> to vector<1x4x16x16xf32>
    %54 = vector.shape_cast %53 : vector<1x4x16x16xf32> to vector<4x16x16xf32>
    %55 = vector.shape_cast %54 : vector<4x16x16xf32> to vector<1x4x16x16xf32>
    %56 = vector.broadcast %55 : vector<1x4x16x16xf32> to vector<2x4x16x16xf32>
    %57 = arith.addf %52, %56 : vector<2x4x16x16xf32>
    %58 = vector.shape_cast %57 : vector<2x4x16x16xf32> to vector<8x16x16xf32>
    %cst_17 = arith.constant dense<0xFF800000> : vector<8x16xf32>
    %59 = vector.multi_reduction <maximumf>, %58, %cst_17 [2] : vector<8x16x16xf32> to vector<8x16xf32>
    %60 = vector.shape_cast %59 : vector<8x16xf32> to vector<8x16x1xf32>
    %61 = vector.broadcast %60 : vector<8x16x1xf32> to vector<8x16x16xf32>
    %62 = arith.subf %58, %61 : vector<8x16x16xf32>
    %63 = math.exp %62 : vector<8x16x16xf32>
    %cst_18 = arith.constant dense<0.000000e+00> : vector<8x16xf32>
    %64 = vector.multi_reduction <add>, %63, %cst_18 [2] : vector<8x16x16xf32> to vector<8x16xf32>
    %65 = vector.shape_cast %64 : vector<8x16xf32> to vector<8x16x1xf32>
    %66 = tpu.reciprocal %65 {approx = true} : vector<8x16x1xf32> -> vector<8x16x1xf32>
    %67 = vector.broadcast %66 : vector<8x16x1xf32> to vector<8x16x16xf32>
    %68 = arith.mulf %63, %67 : vector<8x16x16xf32>
    %69 = arith.truncf %68 : vector<8x16x16xf32> to vector<8x16x16xbf16>
    "tpu.trace_start"() <{level = 10 : i32, message = "wqk,wkd->wqd"}> : () -> ()
    %cst_19 = arith.constant dense<0.000000e+00> : vector<8x16x8xf32>
    %70 = tpu.matmul %69, %50, %cst_19 {dimension_numbers = #tpu.dot_dimension_numbers<[2], [1], [1], [2], [0, 0, 0, 1, 1, 2], [0], [0]>} : vector<8x16x16xbf16>, vector<8x16x8xbf16>, vector<8x16x8xf32> -> vector<8x16x8xf32>
    "tpu.trace_stop"() : () -> ()
    %71 = vector.shape_cast %70 : vector<8x16x8xf32> to vector<128x8xf32>
    %c0_20 = arith.constant 0 : index
    %c0_21 = arith.constant 0 : index
    %72 = vector.load %arg7[%c0_20, %c0_21] : memref<128x32xf32, #tpu.memory_space<vmem>>, vector<128x8xf32>
    tpu.vector_store %arg7[%c0_20, %c0_21], %71 {strides = array<i32>} : memref<128x32xf32, #tpu.memory_space<vmem>>, vector<128x8xf32>,
    %73 = vector.extract_strided_slice %40 {offsets = [0, 8], sizes = [128, 8], strides = [1, 1]} : vector<128x96xf32> to vector<128x8xf32>
    %74 = vector.extract_strided_slice %40 {offsets = [0, 40], sizes = [128, 8], strides = [1, 1]} : vector<128x96xf32> to vector<128x8xf32>
    %75 = vector.extract_strided_slice %40 {offsets = [0, 72], sizes = [128, 8], strides = [1, 1]} : vector<128x96xf32> to vector<128x8xf32>
    %76 = vector.shape_cast %73 : vector<128x8xf32> to vector<8x16x8xf32>
    %77 = arith.truncf %76 : vector<8x16x8xf32> to vector<8x16x8xbf16>
    %78 = vector.shape_cast %74 : vector<128x8xf32> to vector<8x16x8xf32>
    %79 = arith.truncf %78 : vector<8x16x8xf32> to vector<8x16x8xbf16>
    %80 = vector.shape_cast %75 : vector<128x8xf32> to vector<8x16x8xf32>
    %81 = arith.truncf %80 : vector<8x16x8xf32> to vector<8x16x8xbf16>
    "tpu.trace_start"() <{level = 10 : i32, message = "wqd,wkd->wqk"}> : () -> ()
    %cst_22 = arith.constant dense<0.000000e+00> : vector<8x16x16xf32>
    %82 = tpu.matmul %77, %79, %cst_22 {dimension_numbers = #tpu.dot_dimension_numbers<[2], [2], [1], [1], [0, 0, 0, 1, 1, 1], [0], [0]>} : vector<8x16x8xbf16>, vector<8x16x8xbf16>, vector<8x16x16xf32> -> vector<8x16x16xf32>
    "tpu.trace_stop"() : () -> ()
    %83 = vector.shape_cast %82 : vector<8x16x16xf32> to vector<2x4x16x16xf32>
    %84 = vector.extract_strided_slice %41 {offsets = [1, 0, 0, 0], sizes = [1, 4, 16, 16], strides = [1, 1, 1, 1]} : vector<4x4x16x16xf32> to vector<1x4x16x16xf32>
    %85 = vector.shape_cast %84 : vector<1x4x16x16xf32> to vector<4x16x16xf32>
    %86 = vector.shape_cast %85 : vector<4x16x16xf32> to vector<1x4x16x16xf32>
    %87 = vector.broadcast %86 : vector<1x4x16x16xf32> to vector<2x4x16x16xf32>
    %88 = arith.addf %83, %87 : vector<2x4x16x16xf32>
    %89 = vector.shape_cast %88 : vector<2x4x16x16xf32> to vector<8x16x16xf32>
    %cst_23 = arith.constant dense<0xFF800000> : vector<8x16xf32>
    %90 = vector.multi_reduction <maximumf>, %89, %cst_23 [2] : vector<8x16x16xf32> to vector<8x16xf32>
    %91 = vector.shape_cast %90 : vector<8x16xf32> to vector<8x16x1xf32>
    %92 = vector.broadcast %91 : vector<8x16x1xf32> to vector<8x16x16xf32>
    %93 = arith.subf %89, %92 : vector<8x16x16xf32>
    %94 = math.exp %93 : vector<8x16x16xf32>
    %cst_24 = arith.constant dense<0.000000e+00> : vector<8x16xf32>
    %95 = vector.multi_reduction <add>, %94, %cst_24 [2] : vector<8x16x16xf32> to vector<8x16xf32>
    %96 = vector.shape_cast %95 : vector<8x16xf32> to vector<8x16x1xf32>
    %97 = tpu.reciprocal %96 {approx = true} : vector<8x16x1xf32> -> vector<8x16x1xf32>
    %98 = vector.broadcast %97 : vector<8x16x1xf32> to vector<8x16x16xf32>
    %99 = arith.mulf %94, %98 : vector<8x16x16xf32>
    %100 = arith.truncf %99 : vector<8x16x16xf32> to vector<8x16x16xbf16>
    "tpu.trace_start"() <{level = 10 : i32, message = "wqk,wkd->wqd"}> : () -> ()
    %cst_25 = arith.constant dense<0.000000e+00> : vector<8x16x8xf32>
    %101 = tpu.matmul %100, %81, %cst_25 {dimension_numbers = #tpu.dot_dimension_numbers<[2], [1], [1], [2], [0, 0, 0, 1, 1, 2], [0], [0]>} : vector<8x16x16xbf16>, vector<8x16x8xbf16>, vector<8x16x8xf32> -> vector<8x16x8xf32>
    "tpu.trace_stop"() : () -> ()
    %102 = vector.shape_cast %101 : vector<8x16x8xf32> to vector<128x8xf32>
    %c0_26 = arith.constant 0 : index
    %c8 = arith.constant 8 : index
    %103 = vector.load %arg7[%c0_26, %c8] : memref<128x32xf32, #tpu.memory_space<vmem>>, vector<128x8xf32>
    tpu.vector_store %arg7[%c0_26, %c8], %102 {strides = array<i32>} : memref<128x32xf32, #tpu.memory_space<vmem>>, vector<128x8xf32>,
    %104 = vector.extract_strided_slice %40 {offsets = [0, 16], sizes = [128, 8], strides = [1, 1]} : vector<128x96xf32> to vector<128x8xf32>
    %105 = vector.extract_strided_slice %40 {offsets = [0, 48], sizes = [128, 8], strides = [1, 1]} : vector<128x96xf32> to vector<128x8xf32>
    %106 = vector.extract_strided_slice %40 {offsets = [0, 80], sizes = [128, 8], strides = [1, 1]} : vector<128x96xf32> to vector<128x8xf32>
    %107 = vector.shape_cast %104 : vector<128x8xf32> to vector<8x16x8xf32>
    %108 = arith.truncf %107 : vector<8x16x8xf32> to vector<8x16x8xbf16>
    %109 = vector.shape_cast %105 : vector<128x8xf32> to vector<8x16x8xf32>
    %110 = arith.truncf %109 : vector<8x16x8xf32> to vector<8x16x8xbf16>
    %111 = vector.shape_cast %106 : vector<128x8xf32> to vector<8x16x8xf32>
    %112 = arith.truncf %111 : vector<8x16x8xf32> to vector<8x16x8xbf16>
    "tpu.trace_start"() <{level = 10 : i32, message = "wqd,wkd->wqk"}> : () -> ()
    %cst_27 = arith.constant dense<0.000000e+00> : vector<8x16x16xf32>
    %113 = tpu.matmul %108, %110, %cst_27 {dimension_numbers = #tpu.dot_dimension_numbers<[2], [2], [1], [1], [0, 0, 0, 1, 1, 1], [0], [0]>} : vector<8x16x8xbf16>, vector<8x16x8xbf16>, vector<8x16x16xf32> -> vector<8x16x16xf32>
    "tpu.trace_stop"() : () -> ()
    %114 = vector.shape_cast %113 : vector<8x16x16xf32> to vector<2x4x16x16xf32>
    %115 = vector.extract_strided_slice %41 {offsets = [2, 0, 0, 0], sizes = [1, 4, 16, 16], strides = [1, 1, 1, 1]} : vector<4x4x16x16xf32> to vector<1x4x16x16xf32>
    %116 = vector.shape_cast %115 : vector<1x4x16x16xf32> to vector<4x16x16xf32>
    %117 = vector.shape_cast %116 : vector<4x16x16xf32> to vector<1x4x16x16xf32>
    %118 = vector.broadcast %117 : vector<1x4x16x16xf32> to vector<2x4x16x16xf32>
    %119 = arith.addf %114, %118 : vector<2x4x16x16xf32>
    %120 = vector.shape_cast %119 : vector<2x4x16x16xf32> to vector<8x16x16xf32>
    %cst_28 = arith.constant dense<0xFF800000> : vector<8x16xf32>
    %121 = vector.multi_reduction <maximumf>, %120, %cst_28 [2] : vector<8x16x16xf32> to vector<8x16xf32>
    %122 = vector.shape_cast %121 : vector<8x16xf32> to vector<8x16x1xf32>
    %123 = vector.broadcast %122 : vector<8x16x1xf32> to vector<8x16x16xf32>
    %124 = arith.subf %120, %123 : vector<8x16x16xf32>
    %125 = math.exp %124 : vector<8x16x16xf32>
    %cst_29 = arith.constant dense<0.000000e+00> : vector<8x16xf32>
    %126 = vector.multi_reduction <add>, %125, %cst_29 [2] : vector<8x16x16xf32> to vector<8x16xf32>
    %127 = vector.shape_cast %126 : vector<8x16xf32> to vector<8x16x1xf32>
    %128 = tpu.reciprocal %127 {approx = true} : vector<8x16x1xf32> -> vector<8x16x1xf32>
    %129 = vector.broadcast %128 : vector<8x16x1xf32> to vector<8x16x16xf32>
    %130 = arith.mulf %125, %129 : vector<8x16x16xf32>
    %131 = arith.truncf %130 : vector<8x16x16xf32> to vector<8x16x16xbf16>
    "tpu.trace_start"() <{level = 10 : i32, message = "wqk,wkd->wqd"}> : () -> ()
    %cst_30 = arith.constant dense<0.000000e+00> : vector<8x16x8xf32>
    %132 = tpu.matmul %131, %112, %cst_30 {dimension_numbers = #tpu.dot_dimension_numbers<[2], [1], [1], [2], [0, 0, 0, 1, 1, 2], [0], [0]>} : vector<8x16x16xbf16>, vector<8x16x8xbf16>, vector<8x16x8xf32> -> vector<8x16x8xf32>
    "tpu.trace_stop"() : () -> ()
    %133 = vector.shape_cast %132 : vector<8x16x8xf32> to vector<128x8xf32>
    %c0_31 = arith.constant 0 : index
    %c16 = arith.constant 16 : index
    %134 = vector.load %arg7[%c0_31, %c16] : memref<128x32xf32, #tpu.memory_space<vmem>>, vector<128x8xf32>
    tpu.vector_store %arg7[%c0_31, %c16], %133 {strides = array<i32>} : memref<128x32xf32, #tpu.memory_space<vmem>>, vector<128x8xf32>,
    %135 = vector.extract_strided_slice %40 {offsets = [0, 24], sizes = [128, 8], strides = [1, 1]} : vector<128x96xf32> to vector<128x8xf32>
    %136 = vector.extract_strided_slice %40 {offsets = [0, 56], sizes = [128, 8], strides = [1, 1]} : vector<128x96xf32> to vector<128x8xf32>
    %137 = vector.extract_strided_slice %40 {offsets = [0, 88], sizes = [128, 8], strides = [1, 1]} : vector<128x96xf32> to vector<128x8xf32>
    %138 = vector.shape_cast %135 : vector<128x8xf32> to vector<8x16x8xf32>
    %139 = arith.truncf %138 : vector<8x16x8xf32> to vector<8x16x8xbf16>
    %140 = vector.shape_cast %136 : vector<128x8xf32> to vector<8x16x8xf32>
    %141 = arith.truncf %140 : vector<8x16x8xf32> to vector<8x16x8xbf16>
    %142 = vector.shape_cast %137 : vector<128x8xf32> to vector<8x16x8xf32>
    %143 = arith.truncf %142 : vector<8x16x8xf32> to vector<8x16x8xbf16>
    "tpu.trace_start"() <{level = 10 : i32, message = "wqd,wkd->wqk"}> : () -> ()
    %cst_32 = arith.constant dense<0.000000e+00> : vector<8x16x16xf32>
    %144 = tpu.matmul %139, %141, %cst_32 {dimension_numbers = #tpu.dot_dimension_numbers<[2], [2], [1], [1], [0, 0, 0, 1, 1, 1], [0], [0]>} : vector<8x16x8xbf16>, vector<8x16x8xbf16>, vector<8x16x16xf32> -> vector<8x16x16xf32>
    "tpu.trace_stop"() : () -> ()
    %145 = vector.shape_cast %144 : vector<8x16x16xf32> to vector<2x4x16x16xf32>
    %146 = vector.extract_strided_slice %41 {offsets = [3, 0, 0, 0], sizes = [1, 4, 16, 16], strides = [1, 1, 1, 1]} : vector<4x4x16x16xf32> to vector<1x4x16x16xf32>
    %147 = vector.shape_cast %146 : vector<1x4x16x16xf32> to vector<4x16x16xf32>
    %148 = vector.shape_cast %147 : vector<4x16x16xf32> to vector<1x4x16x16xf32>
    %149 = vector.broadcast %148 : vector<1x4x16x16xf32> to vector<2x4x16x16xf32>
    %150 = arith.addf %145, %149 : vector<2x4x16x16xf32>
    %151 = vector.shape_cast %150 : vector<2x4x16x16xf32> to vector<8x16x16xf32>
    %cst_33 = arith.constant dense<0xFF800000> : vector<8x16xf32>
    %152 = vector.multi_reduction <maximumf>, %151, %cst_33 [2] : vector<8x16x16xf32> to vector<8x16xf32>
    %153 = vector.shape_cast %152 : vector<8x16xf32> to vector<8x16x1xf32>
    %154 = vector.broadcast %153 : vector<8x16x1xf32> to vector<8x16x16xf32>
    %155 = arith.subf %151, %154 : vector<8x16x16xf32>
    %156 = math.exp %155 : vector<8x16x16xf32>
    %cst_34 = arith.constant dense<0.000000e+00> : vector<8x16xf32>
    %157 = vector.multi_reduction <add>, %156, %cst_34 [2] : vector<8x16x16xf32> to vector<8x16xf32>
    %158 = vector.shape_cast %157 : vector<8x16xf32> to vector<8x16x1xf32>
    %159 = tpu.reciprocal %158 {approx = true} : vector<8x16x1xf32> -> vector<8x16x1xf32>
    %160 = vector.broadcast %159 : vector<8x16x1xf32> to vector<8x16x16xf32>
    %161 = arith.mulf %156, %160 : vector<8x16x16xf32>
    %162 = arith.truncf %161 : vector<8x16x16xf32> to vector<8x16x16xbf16>
    "tpu.trace_start"() <{level = 10 : i32, message = "wqk,wkd->wqd"}> : () -> ()
    %cst_35 = arith.constant dense<0.000000e+00> : vector<8x16x8xf32>
    %163 = tpu.matmul %162, %143, %cst_35 {dimension_numbers = #tpu.dot_dimension_numbers<[2], [1], [1], [2], [0, 0, 0, 1, 1, 2], [0], [0]>} : vector<8x16x16xbf16>, vector<8x16x8xbf16>, vector<8x16x8xf32> -> vector<8x16x8xf32>
    "tpu.trace_stop"() : () -> ()
    %164 = vector.shape_cast %163 : vector<8x16x8xf32> to vector<128x8xf32>
    %c0_36 = arith.constant 0 : index
    %c24 = arith.constant 24 : index
    %165 = vector.load %arg7[%c0_36, %c24] : memref<128x32xf32, #tpu.memory_space<vmem>>, vector<128x8xf32>
    tpu.vector_store %arg7[%c0_36, %c24], %164 {strides = array<i32>} : memref<128x32xf32, #tpu.memory_space<vmem>>, vector<128x8xf32>,
    %c0_37 = arith.constant 0 : index
    %c0_38 = arith.constant 0 : index
    %166 = vector.load %arg7[%c0_37, %c0_38] : memref<128x32xf32, #tpu.memory_space<vmem>>, vector<128x32xf32>
    %167 = arith.truncf %166 : vector<128x32xf32> to vector<128x32xbf16>
    %cst_39 = arith.constant dense<0.000000e+00> : vector<128x32xf32>
    %168 = tpu.matmul %167, %12, %cst_39 {dimension_numbers = #tpu.dot_dimension_numbers<[1], [0], [0], [1], [0, 0, 1, 1], [], []>} : vector<128x32xbf16>, vector<32x32xbf16>, vector<128x32xf32> -> vector<128x32xf32>
    %169 = vector.broadcast %5 : vector<1x32xf32> to vector<128x32xf32>
    %170 = arith.addf %168, %169 : vector<128x32xf32>
    %171 = arith.addf %0, %170 : vector<128x32xf32>
    %cst_40 = arith.constant dense<0.000000e+00> : vector<128xf32>
    %172 = vector.multi_reduction <add>, %171, %cst_40 [1] : vector<128x32xf32> to vector<128xf32>
    %173 = vector.shape_cast %172 : vector<128xf32> to vector<128x1xf32>
    %cst_41 = arith.constant 3.200000e+01 : f32
    %174 = vector.broadcast %cst_41 : f32 to vector<128x1xf32>
    %175 = arith.divf %173, %174 : vector<128x1xf32>
    %176 = vector.broadcast %175 : vector<128x1xf32> to vector<128x32xf32>
    %177 = arith.subf %171, %176 : vector<128x32xf32>
    %178 = arith.mulf %177, %177 : vector<128x32xf32>
    %cst_42 = arith.constant dense<0.000000e+00> : vector<128xf32>
    %179 = vector.multi_reduction <add>, %178, %cst_42 [1] : vector<128x32xf32> to vector<128xf32>
    %180 = vector.shape_cast %179 : vector<128xf32> to vector<128x1xf32>
    %cst_43 = arith.constant 3.200000e+01 : f32
    %181 = vector.broadcast %cst_43 : f32 to vector<128x1xf32>
    %182 = arith.divf %180, %181 : vector<128x1xf32>
    %183 = vector.broadcast %175 : vector<128x1xf32> to vector<128x32xf32>
    %184 = arith.subf %171, %183 : vector<128x32xf32>
    %cst_44 = arith.constant 9.99999974E-6 : f32
    %185 = vector.broadcast %cst_44 : f32 to vector<128x1xf32>
    %186 = arith.addf %182, %185 : vector<128x1xf32>
    %187 = math.rsqrt %186 : vector<128x1xf32>
    %188 = vector.broadcast %187 : vector<128x1xf32> to vector<128x32xf32>
    %189 = arith.mulf %184, %188 : vector<128x32xf32>
    %190 = vector.broadcast %6 : vector<1x32xf32> to vector<128x32xf32>
    %191 = arith.mulf %189, %190 : vector<128x32xf32>
    %192 = vector.broadcast %7 : vector<1x32xf32> to vector<128x32xf32>
    %193 = arith.addf %191, %192 : vector<128x32xf32>
    %194 = arith.truncf %193 : vector<128x32xf32> to vector<128x32xbf16>
    %cst_45 = arith.constant dense<0.000000e+00> : vector<128x128xf32>
    %195 = tpu.matmul %194, %13, %cst_45 {dimension_numbers = #tpu.dot_dimension_numbers<[1], [0], [0], [1], [0, 0, 1, 1], [], []>} : vector<128x32xbf16>, vector<32x128xbf16>, vector<128x128xf32> -> vector<128x128xf32>
    %196 = vector.broadcast %8 : vector<1x128xf32> to vector<128x128xf32>
    %197 = arith.addf %195, %196 : vector<128x128xf32>
    %cst_46 = arith.constant 5.000000e-01 : f32
    %198 = vector.broadcast %cst_46 : f32 to vector<128x128xf32>
    %199 = arith.mulf %198, %197 : vector<128x128xf32>
    %cst_47 = arith.constant 0.707106769 : f32
    %200 = vector.broadcast %cst_47 : f32 to vector<128x128xf32>
    %201 = arith.mulf %197, %200 : vector<128x128xf32>
    %cst_48 = arith.constant 0.000000e+00 : f32
    %202 = vector.broadcast %cst_48 : f32 to vector<128x128xf32>
    %203 = arith.cmpf oge, %201, %202 : vector<128x128xf32>
    %cst_49 = arith.constant 1.000000e+00 : f32
    %cst_50 = arith.constant -1.000000e+00 : f32
    %204 = vector.broadcast %cst_49 : f32 to vector<128x128xf32>
    %205 = vector.broadcast %cst_50 : f32 to vector<128x128xf32>
    %206 = arith.select %203, %204, %205 : vector<128x128xi1>, vector<128x128xf32>
    %207 = math.absf %201 : vector<128x128xf32>
    %cst_51 = arith.constant 0.327591091 : f32
    %208 = vector.broadcast %cst_51 : f32 to vector<128x128xf32>
    %209 = arith.mulf %208, %207 : vector<128x128xf32>
    %cst_52 = arith.constant 1.000000e+00 : f32
    %210 = vector.broadcast %cst_52 : f32 to vector<128x128xf32>
    %211 = arith.addf %210, %209 : vector<128x128xf32>
    %212 = tpu.reciprocal %211 {approx = true} : vector<128x128xf32> -> vector<128x128xf32>
    %213 = arith.mulf %211, %212 : vector<128x128xf32>
    %cst_53 = arith.constant 2.000000e+00 : f32
    %214 = vector.broadcast %cst_53 : f32 to vector<128x128xf32>
    %215 = arith.subf %214, %213 : vector<128x128xf32>
    %216 = arith.mulf %212, %215 : vector<128x128xf32>
    %cst_54 = arith.constant 1.06140542 : f32
    %217 = vector.broadcast %cst_54 : f32 to vector<128x128xf32>
    %218 = arith.mulf %217, %216 : vector<128x128xf32>
    %cst_55 = arith.constant -1.45315206 : f32
    %219 = vector.broadcast %cst_55 : f32 to vector<128x128xf32>
    %220 = arith.addf %218, %219 : vector<128x128xf32>
    %221 = arith.mulf %220, %216 : vector<128x128xf32>
    %cst_56 = arith.constant 1.42141378 : f32
    %222 = vector.broadcast %cst_56 : f32 to vector<128x128xf32>
    %223 = arith.addf %221, %222 : vector<128x128xf32>
    %224 = arith.mulf %223, %216 : vector<128x128xf32>
    %cst_57 = arith.constant -0.284496725 : f32
    %225 = vector.broadcast %cst_57 : f32 to vector<128x128xf32>
    %226 = arith.addf %224, %225 : vector<128x128xf32>
    %227 = arith.mulf %226, %216 : vector<128x128xf32>
    %cst_58 = arith.constant 0.254829586 : f32
    %228 = vector.broadcast %cst_58 : f32 to vector<128x128xf32>
    %229 = arith.addf %227, %228 : vector<128x128xf32>
    %230 = arith.mulf %229, %216 : vector<128x128xf32>
    %cst_59 = arith.constant 0.000000e+00 : f32
    %231 = vector.broadcast %cst_59 : f32 to vector<128x128xf32>
    %232 = arith.subf %231, %207 : vector<128x128xf32>
    %233 = arith.mulf %232, %207 : vector<128x128xf32>
    %234 = math.exp %233 : vector<128x128xf32>
    %235 = arith.mulf %230, %234 : vector<128x128xf32>
    %cst_60 = arith.constant 1.000000e+00 : f32
    %236 = vector.broadcast %cst_60 : f32 to vector<128x128xf32>
    %237 = arith.subf %236, %235 : vector<128x128xf32>
    %238 = arith.mulf %206, %237 : vector<128x128xf32>
    %cst_61 = arith.constant 1.000000e+00 : f32
    %239 = vector.broadcast %cst_61 : f32 to vector<128x128xf32>
    %240 = arith.addf %239, %238 : vector<128x128xf32>
    %241 = arith.mulf %199, %240 : vector<128x128xf32>
    %242 = arith.truncf %241 : vector<128x128xf32> to vector<128x128xbf16>
    %cst_62 = arith.constant dense<0.000000e+00> : vector<128x32xf32>
    %243 = tpu.matmul %242, %14, %cst_62 {dimension_numbers = #tpu.dot_dimension_numbers<[1], [0], [0], [1], [0, 0, 1, 1], [], []>} : vector<128x128xbf16>, vector<128x32xbf16>, vector<128x32xf32> -> vector<128x32xf32>
    %244 = vector.broadcast %9 : vector<1x32xf32> to vector<128x32xf32>
    %245 = arith.addf %243, %244 : vector<128x32xf32>
    %246 = arith.addf %171, %245 : vector<128x32xf32>
    %c0_63 = arith.constant 0 : index
    %c0_64 = arith.constant 0 : index
    %247 = vector.load %arg6[%c0_63, %c0_64] : memref<128x32xf32, #tpu.memory_space<vmem>>, vector<128x32xf32>
    tpu.vector_store %arg6[%c0_63, %c0_64], %246 {strides = array<i32>} : memref<128x32xf32, #tpu.memory_space<vmem>>, vector<128x32xf32>,
    return
  }
  func.func @transform_0(%arg0: i32) -> (i32, i32) {
    %c0_i32 = arith.constant 0 : i32
    %c0_i32_0 = arith.constant 0 : i32
    return %arg0, %c0_i32 : i32, i32
  }
  func.func @transform_1(%arg0: i32) -> (i32, i32, i32, i32) {
    %c0_i32 = arith.constant 0 : i32
    %c0_i32_0 = arith.constant 0 : i32
    %c0_i32_1 = arith.constant 0 : i32
    %c0_i32_2 = arith.constant 0 : i32
    %c0_i32_3 = arith.constant 0 : i32
    return %c0_i32, %c0_i32_0, %c0_i32_1, %c0_i32_2 : i32, i32, i32, i32
  }
  func.func @transform_2(%arg0: i32) -> (i32, i32) {
    %c0_i32 = arith.constant 0 : i32
    %c0_i32_0 = arith.constant 0 : i32
    %c0_i32_1 = arith.constant 0 : i32
    return %c0_i32, %c0_i32_0 : i32, i32
  }
  func.func @transform_3(%arg0: i32) -> (i32, i32) {
    %c0_i32 = arith.constant 0 : i32
    %c0_i32_0 = arith.constant 0 : i32
    %c0_i32_1 = arith.constant 0 : i32
    return %c0_i32, %c0_i32_0 : i32, i32
  }
  func.func @transform_4(%arg0: i32) -> (i32, i32) {
    %c0_i32 = arith.constant 0 : i32
    %c0_i32_0 = arith.constant 0 : i32
    %c0_i32_1 = arith.constant 0 : i32
    return %c0_i32, %c0_i32_0 : i32, i32
  }
  func.func @transform_5(%arg0: i32) -> (i32, i32) {
    %c0_i32 = arith.constant 0 : i32
    %c0_i32_0 = arith.constant 0 : i32
    return %arg0, %c0_i32 : i32, i32
  }
}

</mosaic_0001>

<bundles_post_ra>
// kernel: swin_block_forward.1
= control target key start
LH: loop header
LB: loop body
LE: loop exit
PB: predicated region body
PF: predicated region fallthrough
CT: control target
= control target key end

     0   :  { %vm58_vm0 = vcmask 261120   ;;  %vm7088_vm1 = vmmov 0   ;;  %s7089_s6 = smov 96   ;;  %s7090_s7 = smov 64   ;;  %vm496_vm2 = vcmask 64512   ;;  %vm910_vm3 = vcmask 130048   ;;  %s9673_s0 = inlined_call_operand.vmem [shape: f32[128,32], index: 0, kind: input, shape index: {}]   ;;  %s9674_s3 = inlined_call_operand.vmem [shape: bf16[32,256], index: 3, kind: input, shape index: {}]   ;;  %s9675_s2 = inlined_call_operand.vmem [shape: f32[8,128], index: 2, kind: input, shape index: {}]   ;;  %s9676_s1 = inlined_call_operand.vmem [shape: f32[4,4,16,16], index: 1, kind: input, shape index: {}]   ;;  %s9677_s4 = inlined_call_operand.vmem [shape: bf16[128,32], index: 4, kind: input, shape index: {}]   ;;  %s9678_s5 = inlined_call_operand.vmem [shape: f32[128,32], index: 5, kind: output, shape index: {}]  }
   0x1   :  { %v21_v0 = vld [vmem:[%s9673_s0] sm:$0xff]  ;;  %v23_v1 = vld [vmem:[%s9673_s0 + $0x10] sm:$0xff]  ;;  %v22_v2 = vld [vmem:[%s9673_s0 + $0x8] sm:$0xff]  ;;  %s7091_s24 = smov 88   ;;  %s7092_s25 = smov 120   ;;  %vm2535_vm4 = vcmask 130112  }
   0x2   :  { %v59_v3 = vsel %vm58_vm0, %v21_v0, 0.0  ;;  %v65_v4 = vsel %vm58_vm0, %v23_v1, 0.0  ;;  %v24_v5 = vld [vmem:[%s9673_s0 + $0x18] sm:$0xff]  ;;  %v62_v6 = vsel %vm58_vm0, %v22_v2, 0.0  ;;  %v25_v8 = vld [vmem:[%s9673_s0 + $0x20] sm:$0xff]  ;;  %v26_v9 = vld [vmem:[%s9673_s0 + $0x28] sm:$0xff] }
   0x3   :  { %60 = vadd.xlane.f32.xlu0 %v59_v3  ;;  %66 = vadd.xlane.f32.xlu1 %v65_v4  ;;  %v68_v7 = vsel %vm58_vm0, %v24_v5, 0.0  ;;  %v71_v10 = vsel %vm58_vm0, %v25_v8, 0.0  ;;  %v74_v11 = vsel %vm58_vm0, %v26_v9, 0.0  ;;  %v7162_v12 = vld [vmem:[%s9673_s0 + $0x30] sm:$0xff]  ;;  %v7167_v13 = vld [vmem:[%s9673_s0 + $0x38] sm:$0xff]  ;;  %v7176_v16 = vld [vmem:[%s9673_s0 + $0x40] sm:$0xff] }
   0x4   :  { %v77_v14 = vsel %vm58_vm0, %v7162_v12, 0.0  ;;  %v80_v15 = vsel %vm58_vm0, %v7167_v13, 0.0  ;;  %v7181_v17 = vld [vmem:[%s9673_s0 + $0x48] sm:$0xff]  ;;  %v83_v18 = vsel %vm58_vm0, %v7176_v16, 0.0  ;;  %v7190_v20 = vld [vmem:[%s9673_s0 + $0x50] sm:$0xff]  ;;  %v7195_v21 = vld [vmem:[%s9673_s0 + $0x58] sm:$0xff] }
   0x5   :  { %v86_v19 = vsel %vm58_vm0, %v7181_v17, 0.0  ;;  %v89_v22 = vsel %vm58_vm0, %v7190_v20, 0.0  ;;  %v92_v23 = vsel %vm58_vm0, %v7195_v21, 0.0  ;;  %v7204_v24 = vld [vmem:[%s9673_s0 + $0x60] sm:$0xff]  ;;  %v7209_v25 = vld [vmem:[%s9673_s0 + $0x68] sm:$0xff]  ;;  %v7218_v28 = vld [vmem:[%s9673_s0 + $0x70] sm:$0xff] }
   0x6   :  { %v95_v26 = vsel %vm58_vm0, %v7204_v24, 0.0  ;;  %v98_v27 = vsel %vm58_vm0, %v7209_v25, 0.0  ;;  %v7223_v29 = vld [vmem:[%s9673_s0 + $0x78] sm:$0xff]  ;;  %v101_v30 = vsel %vm58_vm0, %v7218_v28, 0.0  ;;  %s7093_s17 = smov 56   ;;  %s7094_s18 = smov 80  }
   0x7   :  { %63 = vadd.xlane.f32.xlu0 %v62_v6  ;;  %69 = vadd.xlane.f32.xlu1 %v68_v7  ;;  %v104_v31 = vsel %vm58_vm0, %v7223_v29, 0.0  ;;  %s7095_s19 = smov 112   ;;  %s7096_s11 = smov 48   ;;  %vm3600_vm5 = vcmask 195712   ;;  %vm4665_vm6 = vcmask 261312  }
   0x8   :  { %s7097_s12 = smov 72   ;;  %s7098_s13 = smov 104  }
   0x9   :  { %s7100_s30 = smov 8   ;;  %s7102_s9 = smov 32  }
   0xb   :  { %72 = vadd.xlane.f32.xlu0 %v71_v10  ;;  %75 = vadd.xlane.f32.xlu1 %v74_v11 }
   0xf   :  { %78 = vadd.xlane.f32.xlu0 %v77_v14  ;;  %81 = vadd.xlane.f32.xlu1 %v80_v15 }
  0x13   :  { %84 = vadd.xlane.f32.xlu0 %v83_v18  ;;  %87 = vadd.xlane.f32.xlu1 %v86_v19 }
  0x17   :  { %90 = vadd.xlane.f32.xlu0 %v89_v22  ;;  %93 = vadd.xlane.f32.xlu1 %v92_v23 }
  0x1b   :  { %96 = vadd.xlane.f32.xlu0 %v95_v26  ;;  %99 = vadd.xlane.f32.xlu1 %v98_v27 }
  0x1f   :  { %102 = vadd.xlane.f32.xlu0 %v101_v30  ;;  %105 = vadd.xlane.f32.xlu1 %v104_v31 }
  0x8c   :  { %v61_v32 = vpop.xlane.xlu0 %60  ;;  %v67_v33 = vpop.xlane.xlu1 %66 }
  0x8d   :  { %v108_v34 = vmul.f32 0.03125, %v61_v32  ;;  %v110_v35 = vmul.f32 0.03125, %v67_v33 }
  0x8f   :  { %v7229_v36 = vsub.f32 %v21_v0, %v108_v34  ;;  %v7231_v37 = vsub.f32 %v23_v1, %v110_v35 }
  0x90   :  { %v64_v38 = vpop.xlane.xlu0 %63  ;;  %v70_v39 = vpop.xlane.xlu1 %69 }
  0x91   :  { %v109_v40 = vmul.f32 0.03125, %v64_v38  ;;  %v111_v41 = vmul.f32 0.03125, %v70_v39  ;;  %v140_v42 = vmul.f32 %v7229_v36, %v7229_v36  ;;  %v142_v43 = vmul.f32 %v7231_v37, %v7231_v37 }
  0x93   :  { %v7237_v44 = vsub.f32 %v22_v2, %v109_v40  ;;  %v7239_v45 = vsub.f32 %v24_v5, %v111_v41  ;;  %v156_v46 = vsel %vm58_vm0, %v140_v42, 0.0  ;;  %v162_v49 = vsel %vm58_vm0, %v142_v43, 0.0 }
  0x94   :  { %157 = vadd.xlane.f32.xlu0 %v156_v46  ;;  %v73_v47 = vpop.xlane.xlu0 %72  ;;  %v76_v48 = vpop.xlane.xlu1 %75 }
  0x95   :  { %v112_v50 = vmul.f32 0.03125, %v73_v47  ;;  %v113_v51 = vmul.f32 0.03125, %v76_v48  ;;  %v141_v52 = vmul.f32 %v7237_v44, %v7237_v44  ;;  %v143_v53 = vmul.f32 %v7239_v45, %v7239_v45 }
  0x97   :  { %v7247_v54 = vsub.f32 %v25_v8, %v112_v50  ;;  %v7249_v55 = vsub.f32 %v26_v9, %v113_v51  ;;  %v159_v56 = vsel %vm58_vm0, %v141_v52, 0.0  ;;  %v165_v59 = vsel %vm58_vm0, %v143_v53, 0.0  ;;  %v6673_v53 = vld [vmem:[%s9674_s3] ss:$8 sps:$4 sm:$0xff]  }
  0x98   :  { %163 = vadd.xlane.f32.xlu0 %v162_v49  ;;  %160 = vadd.xlane.f32.xlu1 %v159_v56  ;;  %v79_v57 = vpop.xlane.xlu0 %78  ;;  %v82_v58 = vpop.xlane.xlu1 %81 }
  0x99   :  { %v114_v60 = vmul.f32 0.03125, %v79_v57  ;;  %v115_v61 = vmul.f32 0.03125, %v82_v58  ;;  %v144_v62 = vmul.f32 %v7247_v54, %v7247_v54  ;;  %v145_v63 = vmul.f32 %v7249_v55, %v7249_v55 }
  0x9b   :  { %v7258_v0 = vsub.f32 %v7162_v12, %v114_v60  ;;  %v7261_v1 = vsub.f32 %v7167_v13, %v115_v61  ;;  %v168_v2 = vsel %vm58_vm0, %v144_v62, 0.0  ;;  %v171_v5 = vsel %vm58_vm0, %v145_v63, 0.0 }
  0x9c   :  { %166 = vadd.xlane.f32.xlu1 %v165_v59  ;;  %169 = vadd.xlane.f32.xlu0 %v168_v2  ;;  %v85_v3 = vpop.xlane.xlu0 %84  ;;  %v88_v4 = vpop.xlane.xlu1 %87  ;;  %v268_v63 = vlaneseq }
  0x9d   :  { %v116_v6 = vmul.f32 0.03125, %v85_v3  ;;  %v117_v7 = vmul.f32 0.03125, %v88_v4  ;;  %v146_v8 = vmul.f32 %v7258_v0, %v7258_v0  ;;  %v147_v9 = vmul.f32 %v7261_v1, %v7261_v1 }
  0x9f   :  { %v7270_v10 = vsub.f32 %v7176_v16, %v116_v6  ;;  %v7273_v11 = vsub.f32 %v7181_v17, %v117_v7  ;;  %v174_v12 = vsel %vm58_vm0, %v146_v8, 0.0  ;;  %v177_v15 = vsel %vm58_vm0, %v147_v9, 0.0 }
  0xa0   :  { %172 = vadd.xlane.f32.xlu1 %v171_v5  ;;  %175 = vadd.xlane.f32.xlu0 %v174_v12  ;;  %v91_v13 = vpop.xlane.xlu0 %90  ;;  %v94_v14 = vpop.xlane.xlu1 %93  ;;  %v7325_v8 = vshrl.u32 %v268_v63, 7 }
  0xa1   :  { %v118_v18 = vmul.f32 0.03125, %v91_v13  ;;  %v119_v19 = vmul.f32 0.03125, %v94_v14  ;;  %v148_v22 = vmul.f32 %v7270_v10, %v7270_v10  ;;  %v149_v16 = vmul.f32 %v7273_v11, %v7273_v11 }
  0xa2   :  { %9696 = vst [vmem:[#allocation3_spill] sm:$0xff] %v7325_v8 }
  0xa3   :  { %v7282_v23 = vsub.f32 %v7190_v20, %v118_v18  ;;  %v7285_v17 = vsub.f32 %v7195_v21, %v119_v19  ;;  %v180_v26 = vsel %vm58_vm0, %v148_v22, 0.0  ;;  %v183_v31 = vsel %vm58_vm0, %v149_v16, 0.0 }
  0xa4   :  { %178 = vadd.xlane.f32.xlu1 %v177_v15  ;;  %181 = vadd.xlane.f32.xlu0 %v180_v26  ;;  %v97_v27 = vpop.xlane.xlu0 %96  ;;  %v100_v30 = vpop.xlane.xlu1 %99  ;;  %v270_v19 = vsub.s32 0, %v7325_v8  ;;  %v7331_v26 = vld [vmem:[%s9675_s2] sm:$0xff] }
  0xa5   :  { %v120_v32 = vmul.f32 0.03125, %v97_v27  ;;  %v121_v33 = vmul.f32 0.03125, %v100_v30  ;;  %v150_v34 = vmul.f32 %v7282_v23, %v7282_v23  ;;  %v151_v20 = vmul.f32 %v7285_v17, %v7285_v17 }
  0xa7   :  { %v7294_v35 = vsub.f32 %v7204_v24, %v120_v32  ;;  %v7297_v21 = vsub.f32 %v7209_v25, %v121_v33  ;;  %v186_v38 = vsel %vm58_vm0, %v150_v34, 0.0  ;;  %v189_v41 = vsel %vm58_vm0, %v151_v20, 0.0 }
  0xa8   :  { %184 = vadd.xlane.f32.xlu1 %v183_v31  ;;  %187 = vadd.xlane.f32.xlu0 %v186_v38  ;;  %v103_v39 = vpop.xlane.xlu0 %102  ;;  %v106_v40 = vpop.xlane.xlu1 %105  ;;  %v7334_v34 = vrot.slane %v7331_v26, %v270_v19  ;;  %v290_v20 = vsub.s32 1, %v7325_v8 }
  0xa9   :  { %v122_v42 = vmul.f32 0.03125, %v103_v39  ;;  %v123_v43 = vmul.f32 0.03125, %v106_v40  ;;  %v152_v46 = vmul.f32 %v7294_v35, %v7294_v35  ;;  %v153_v24 = vmul.f32 %v7297_v21, %v7297_v21 }
  0xab   :  { %v7306_v47 = vsub.f32 %v7218_v28, %v122_v42  ;;  %v7309_v25 = vsub.f32 %v7223_v29, %v123_v43  ;;  %v192_v48 = vsel %vm58_vm0, %v152_v46, 0.0  ;;  %v195_v49 = vsel %vm58_vm0, %v153_v24, 0.0  ;;  %v6671_v29 = vld [vmem:[%s9674_s3 + $0x10] ss:$8 sps:$4 sm:$0xff]  }
  0xac   :  { %190 = vadd.xlane.f32.xlu1 %v189_v41  ;;  %193 = vadd.xlane.f32.xlu0 %v192_v48 }
  0xad   :  { %v154_v50 = vmul.f32 %v7306_v47, %v7306_v47  ;;  %v155_v51 = vmul.f32 %v7309_v25, %v7309_v25  ;;  %6173 = vmatprep.subr.bf16.mxu0 %v6671_v29  ;;  %6649 = vmatprep.subr.bf16.mxu1 %v6671_v29 }
  0xae   :  { %6174 = vmatpush3.bf16.msra.mxu0 %v6671_v29  ;;  %6651 = vmatpush3.bf16.msra.mxu1 %v6671_v29 }
  0xaf   :  { %v198_v52 = vsel %vm58_vm0, %v154_v50, 0.0  ;;  %v201_v28 = vsel %vm58_vm0, %v155_v51, 0.0  ;;  %6175 = vmatprep.subr.bf16.mxu0 %v6673_v53  ;;  %6650 = vmatprep.subr.bf16.mxu1 %v6673_v53 }
  0xb0   :  { %196 = vadd.xlane.f32.xlu1 %v195_v49  ;;  %199 = vadd.xlane.f32.xlu0 %v198_v52  ;;  %v7340_v49 = vrot.slane %v7331_v26, %v290_v20 }
  0xb2   :  { %6176 = vmatpush3.bf16.msra.mxu0 %v6673_v53  ;;  %6652 = vmatpush3.bf16.msra.mxu1 %v6673_v53 }
  0xb4   :  { %202 = vadd.xlane.f32.xlu1 %v201_v28 }
 0x11d   :  { %v158_v56 = vpop.xlane.xlu0 %157 }
 0x11e   :  { %v204_v57 = vmul.f32 0.03125, %v158_v56 }
 0x120   :  { %v220_v58 = vadd.f32 1e-05, %v204_v57 }
 0x121   :  { %v161_v59 = vpop.xlane.xlu1 %160  ;;  %v164_v60 = vpop.xlane.xlu0 %163 }
 0x122   :  { %6683 = vrsqrt.f32 %v220_v58  ;;  %v205_v61 = vmul.f32 0.03125, %v161_v59  ;;  %v206_v62 = vmul.f32 0.03125, %v164_v60 }
 0x124   :  { %v221_v2 = vadd.f32 1e-05, %v205_v61  ;;  %v222_v3 = vadd.f32 1e-05, %v206_v62 }
 0x125   :  { %v167_v4 = vpop.xlane.xlu1 %166  ;;  %v170_v5 = vpop.xlane.xlu0 %169 }
 0x126   :  { %6685 = vrsqrt.f32 %v221_v2  ;;  %v207_v6 = vmul.f32 0.03125, %v167_v4  ;;  %v208_v7 = vmul.f32 0.03125, %v170_v5 }
 0x127   :  { %6687 = vrsqrt.f32 %v222_v3 }
 0x128   :  { %v223_v9 = vadd.f32 1e-05, %v207_v6  ;;  %v224_v12 = vadd.f32 1e-05, %v208_v7 }
 0x129   :  { %v173_v13 = vpop.xlane.xlu1 %172  ;;  %v176_v14 = vpop.xlane.xlu0 %175 }
 0x12a   :  { %6689 = vrsqrt.f32 %v223_v9  ;;  %v209_v15 = vmul.f32 0.03125, %v173_v13  ;;  %v210_v18 = vmul.f32 0.03125, %v176_v14 }
 0x12b   :  { %6691 = vrsqrt.f32 %v224_v12 }
 0x12c   :  { %v225_v22 = vadd.f32 1e-05, %v209_v15  ;;  %v226_v16 = vadd.f32 1e-05, %v210_v18 }
 0x12d   :  { %v179_v27 = vpop.xlane.xlu1 %178  ;;  %v182_v30 = vpop.xlane.xlu0 %181 }
 0x12e   :  { %6693 = vrsqrt.f32 %v225_v22  ;;  %v211_v31 = vmul.f32 0.03125, %v179_v27  ;;  %v212_v32 = vmul.f32 0.03125, %v182_v30 }
 0x12f   :  { %v6684_v33 = vpop.eup %6683  ;;  %6695 = vrsqrt.f32 %v226_v16 }
 0x130   :  { %v227_v38 = vadd.f32 1e-05, %v211_v31  ;;  %v228_v39 = vadd.f32 1e-05, %v212_v32  ;;  %v252_v40 = vmul.f32 %v6684_v33, %v7229_v36 }
 0x131   :  { %v185_v41 = vpop.xlane.xlu1 %184  ;;  %v188_v42 = vpop.xlane.xlu0 %187 }
 0x132   :  { %6697 = vrsqrt.f32 %v227_v38  ;;  %v213_v43 = vmul.f32 0.03125, %v185_v41  ;;  %v214_v46 = vmul.f32 0.03125, %v188_v42  ;;  %v272_v48 = vmul.f32 %v7334_v34, %v252_v40 }
 0x133   :  { %v6686_v24 = vpop.eup %6685  ;;  %6699 = vrsqrt.f32 %v228_v39 }
 0x134   :  { %v6688_v50 = vpop.eup %6687  ;;  %v229_v51 = vadd.f32 1e-05, %v213_v43  ;;  %v230_v52 = vadd.f32 1e-05, %v214_v46  ;;  %v253_v28 = vmul.f32 %v6686_v24, %v7237_v44  ;;  %v292_v60 = vadd.f32 %v7340_v49, %v272_v48 }
 0x135   :  { %v191_v29 = vpop.xlane.xlu1 %190  ;;  %v194_v53 = vpop.xlane.xlu0 %193  ;;  %v254_v36 = vmul.f32 %v6688_v50, %v7231_v37 }
 0x136   :  { %6701 = vrsqrt.f32 %v229_v51  ;;  %v215_v56 = vmul.f32 0.03125, %v191_v29  ;;  %v216_v57 = vmul.f32 0.03125, %v194_v53  ;;  %v273_v58 = vmul.f32 %v7334_v34, %v253_v28 }
 0x137   :  { %v6690_v59 = vpop.eup %6689  ;;  %6703 = vrsqrt.f32 %v230_v52  ;;  %v274_v37 = vmul.f32 %v7334_v34, %v254_v36 }
 0x138   :  { %v6692_v61 = vpop.eup %6691  ;;  %v231_v62 = vadd.f32 1e-05, %v215_v56  ;;  %v232_v63 = vadd.f32 1e-05, %v216_v57  ;;  %v293_v2 = vadd.f32 %v7340_v49, %v273_v58  ;;  %v255_v44 = vmul.f32 %v6690_v59, %v7239_v45 }
 0x139   :  { %v197_v3 = vpop.xlane.xlu1 %196  ;;  %v200_v4 = vpop.xlane.xlu0 %199  ;;  %v256_v5 = vmul.f32 %v6692_v61, %v7247_v54  ;;  %v294_v54 = vadd.f32 %v7340_v49, %v274_v37 }
 0x13a   :  { %6705 = vrsqrt.f32 %v231_v62  ;;  %v217_v6 = vmul.f32 0.03125, %v197_v3  ;;  %v218_v7 = vmul.f32 0.03125, %v200_v4  ;;  %v308_v9 = vpack.c.bf16 %v293_v2, %v292_v60 }
 0x13b   :  { %v6694_v12 = vpop.eup %6693  ;;  %6707 = vrsqrt.f32 %v232_v63  ;;  %v275_v13 = vmul.f32 %v7334_v34, %v255_v44  ;;  %v276_v14 = vmul.f32 %v7334_v34, %v256_v5 }
 0x13c   :  { %v6696_v15 = vpop.eup %6695  ;;  %v233_v18 = vadd.f32 1e-05, %v217_v6  ;;  %v234_v19 = vadd.f32 1e-05, %v218_v7  ;;  %6177 = vmatprep.mubr.msk.bf16.mxu0 %vm58_vm0, %v308_v9  ;;  %v257_v45 = vmul.f32 %v6694_v12, %v7249_v55 }
 0x13d   :  { %v203_v22 = vpop.xlane.xlu1 %202  ;;  %v295_v16 = vadd.f32 %v7340_v49, %v275_v13  ;;  %v258_v27 = vmul.f32 %v6696_v15, %v7258_v0  ;;  %v296_v20 = vadd.f32 %v7340_v49, %v276_v14  ;;  %v318_v14 = vsub.s32 2, %v7325_v8 }
 0x13e   :  { %6709 = vrsqrt.f32 %v233_v18  ;;  %v219_v30 = vmul.f32 0.03125, %v203_v22  ;;  %v277_v31 = vmul.f32 %v7334_v34, %v257_v45  ;;  %v9679_v15 = vmov 0.0  }
 0x13f   :  { %v6698_v32 = vpop.eup %6697  ;;  %6711 = vrsqrt.f32 %v234_v19  ;;  %v309_v33 = vpack.c.bf16 %v295_v16, %v294_v54  ;;  %v278_v41 = vmul.f32 %v7334_v34, %v258_v27  ;;  %6193 = vmatprep.subr.bf16.mxu1 %v9679_v15  ;;  %6217 = vmatprep.subr.bf16.mxu0 %v9679_v15  ;;  %v319_v18 = vrot.slane %v7331_v26, %v318_v14 }
 0x140   :  { %v6700_v38 = vpop.eup %6699  ;;  %v235_v39 = vadd.f32 1e-05, %v219_v30  ;;  %v297_v55 = vadd.f32 %v7340_v49, %v277_v31  ;;  %v259_v40 = vmul.f32 %v6698_v32, %v7261_v1 }
 0x141   :  { %6178 = vmatmul.mubr.msk.bf16.vlgmr.msra.gmra.mxu0 %vm58_vm0, %v309_v33  ;;  %v260_v0 = vmul.f32 %v6700_v38, %v7270_v10  ;;  %v298_v48 = vadd.f32 %v7340_v49, %v278_v41 }
 0x142   :  { %6713 = vrsqrt.f32 %v235_v39  ;;  %v310_v42 = vpack.c.bf16 %v297_v55, %v296_v20  ;;  %v279_v43 = vmul.f32 %v7334_v34, %v259_v40 }
 0x143   :  { %v6702_v46 = vpop.eup %6701  ;;  %v280_v51 = vmul.f32 %v7334_v34, %v260_v0 }
 0x144   :  { %v6704_v24 = vpop.eup %6703  ;;  %6181 = vmatprep.mubr.msk.bf16.mxu0 %vm58_vm0, %v310_v42  ;;  %v299_v50 = vadd.f32 %v7340_v49, %v279_v43  ;;  %v261_v1 = vmul.f32 %v6702_v46, %v7273_v11 }
 0x145   :  { %v262_v52 = vmul.f32 %v6704_v24, %v7282_v23  ;;  %v300_v36 = vadd.f32 %v7340_v49, %v280_v51 }
 0x146   :  { %v311_v28 = vpack.c.bf16 %v299_v50, %v298_v48  ;;  %v281_v10 = vmul.f32 %v7334_v34, %v261_v1 }
 0x147   :  { %v6706_v29 = vpop.eup %6705  ;;  %v282_v58 = vmul.f32 %v7334_v34, %v262_v52 }
 0x148   :  { %v6708_v53 = vpop.eup %6707  ;;  %v301_v56 = vadd.f32 %v7340_v49, %v281_v10  ;;  %v263_v57 = vmul.f32 %v6706_v29, %v7285_v17 }
 0x149   :  { %6182 = vmatmul.mubr.msk.bf16.gmra.mxu0 %vm58_vm0, %v311_v28  ;;  %v264_v11 = vmul.f32 %v6708_v53, %v7294_v35  ;;  %v302_v62 = vadd.f32 %v7340_v49, %v282_v58 }
 0x14a   :  { %v312_v59 = vpack.c.bf16 %v301_v56, %v300_v36  ;;  %v283_v23 = vmul.f32 %v7334_v34, %v263_v57  ;;  %6219 = vmatprep.mubr.msk.bf16.mxu0 %vm7088_vm1, %v9679_v15 }
 0x14b   :  { %v6710_v60 = vpop.eup %6709  ;;  %v284_v17 = vmul.f32 %v7334_v34, %v264_v11 }
 0x14c   :  { %v6712_v61 = vpop.eup %6711  ;;  %6185 = vmatprep.mubr.msk.bf16.mxu1 %vm58_vm0, %v312_v59  ;;  %v303_v63 = vadd.f32 %v7340_v49, %v283_v23  ;;  %v265_v2 = vmul.f32 %v6710_v60, %v7297_v21 }
 0x14d   :  { %v266_v44 = vmul.f32 %v6712_v61, %v7306_v47  ;;  %v304_v37 = vadd.f32 %v7340_v49, %v284_v17 }
 0x14e   :  { %v313_v3 = vpack.c.bf16 %v303_v63, %v302_v62  ;;  %v285_v35 = vmul.f32 %v7334_v34, %v265_v2 }
 0x14f   :  { %v6714_v4 = vpop.eup %6713  ;;  %v286_v7 = vmul.f32 %v7334_v34, %v266_v44 }
 0x150   :  { %6186 = vmatmul.mubr.msk.bf16.vlgmr.msra.gmra.mxu1 %vm58_vm0, %v313_v3  ;;  %v305_v5 = vadd.f32 %v7340_v49, %v285_v35  ;;  %v267_v6 = vmul.f32 %v6714_v4, %v7309_v25 }
 0x151   :  { %v306_v47 = vadd.f32 %v7340_v49, %v286_v7 }
 0x152   :  { %v314_v9 = vpack.c.bf16 %v305_v5, %v304_v37  ;;  %v287_v21 = vmul.f32 %v7334_v34, %v267_v6 }
 0x154   :  { %6189 = vmatprep.mubr.msk.bf16.mxu1 %vm58_vm0, %v314_v9  ;;  %v307_v12 = vadd.f32 %v7340_v49, %v287_v21 }
 0x156   :  { %v315_v13 = vpack.c.bf16 %v307_v12, %v306_v47  ;;  %v453_v12 = vld [vmem:[%s9676_s1] sm:$0xff] }
 0x158   :  { %6190 = vmatmul.mubr.msk.bf16.gmra.mxu1 %vm58_vm0, %v315_v13 }
 0x159   :  { %6195 = vmatprep.mubr.msk.bf16.mxu1 %vm7088_vm1, %v9679_v15 }
 0x201   :  { %v6179_v25 = vpop.f32.mrf.mxu0 }
 0x202   :  { %v399_v45 = vadd.f32 %v6179_v25, %v319_v18 }
 0x203   :  { %v390_v34 = vpop.f32.mrf.mxu0 }
 0x204   :  { %v391_v54 = vadd.f32 %v390_v34, %v319_v18 }
 0x205   :  { %v6180_v19 = vpop.f32.mrf.mxu0 }
 0x206   :  { %v402_v22 = vadd.f32 %v6180_v19, %v319_v18 }
 0x207   :  { %v393_v49 = vpop.f32.mrf.mxu0 }
 0x208   :  { %v7404_v16 = vpack.c.bf16 %v402_v22, %v399_v45  ;;  %v394_v27 = vadd.f32 %v393_v49, %v319_v18 }
 0x209   :  { %v6183_v30 = vpop.f32.mrf.mxu0 }
 0x20a   :  { %v7406_v31 = vpack.c.bf16 %v394_v27, %v391_v54  ;;  %545 = vrot.lane.b32.xlu1 %v7404_v16, %s7089_s6  ;;  %v415_v0 = vadd.f32 %v6183_v30, %v319_v18 }
 0x20b   :  { %v406_v26 = vpop.f32.mrf.mxu0 }
 0x20c   :  { %494 = vrot.lane.b32.xlu0 %v7406_v31, %s7089_s6  ;;  %v407_v20 = vadd.f32 %v406_v26, %v319_v18 }
 0x20d   :  { %v6184_v32 = vpop.f32.mrf.mxu0 }
 0x20e   :  { %v418_v55 = vadd.f32 %v6184_v32, %v319_v18  ;;  %v455_v32 = vld [vmem:[%s9676_s1 + $0x10] sm:$0xff] }
 0x20f   :  { %v409_v33 = vpop.f32.mrf.mxu0 }
 0x210   :  { %v410_v38 = vadd.f32 %v409_v33, %v319_v18  ;;  %v6187_v39 = vpop.f32.mrf.mxu1  ;;  %v7416_v43 = vpack.c.bf16 %v418_v55, %v415_v0 }
 0x211   :  { %v431_v1 = vadd.f32 %v6187_v39, %v319_v18 }
 0x212   :  { %v7412_v40 = vpack.c.bf16 %v410_v38, %v407_v20  ;;  %v422_v41 = vpop.f32.mrf.mxu1 }
 0x213   :  { %v423_v48 = vadd.f32 %v422_v41, %v319_v18 }
 0x214   :  { %595 = vrot.lane.b32.xlu1 %v7412_v40, %s7089_s6  ;;  %v6188_v42 = vpop.f32.mrf.mxu1 }
 0x215   :  { %v434_v46 = vadd.f32 %v6188_v42, %v319_v18 }
 0x216   :  { %v425_v24 = vpop.f32.mrf.mxu1 }
 0x217   :  { %v426_v50 = vadd.f32 %v425_v24, %v319_v18  ;;  %v7422_v28 = vpack.c.bf16 %v434_v46, %v431_v1 }
 0x218   :  { %645 = vrot.lane.b32.xlu1 %v7416_v43, %s7089_s6  ;;  %v6191_v51 = vpop.f32.mrf.mxu1 }
 0x219   :  { %v7420_v52 = vpack.c.bf16 %v426_v50, %v423_v48  ;;  %v447_v53 = vadd.f32 %v6191_v51, %v319_v18 }
 0x21a   :  { %v438_v10 = vpop.f32.mrf.mxu1 }
 0x21b   :  { %695 = vrot.lane.b32.xlu0 %v7420_v52, %s7089_s6  ;;  %v439_v57 = vadd.f32 %v438_v10, %v319_v18  ;;  %v456_v10 = vld [vmem:[%s9676_s1 + $0x18] sm:$0xff] }
 0x21c   :  { %745 = vrot.lane.b32.xlu1 %v7422_v28, %s7089_s6  ;;  %v6192_v29 = vpop.f32.mrf.mxu1 }
 0x21d   :  { %v450_v36 = vadd.f32 %v6192_v29, %v319_v18  ;;  %v457_v29 = vld [vmem:[%s9676_s1 + $0x20] sm:$0xff] }
 0x21e   :  { %v441_v56 = vpop.f32.mrf.mxu1 }
 0x21f   :  { %v7428_v58 = vpack.c.bf16 %v450_v36, %v447_v53  ;;  %v442_v11 = vadd.f32 %v441_v56, %v319_v18  ;;  %v454_v18 = vld [vmem:[%s9676_s1 + $0x8] sm:$0xff] }
 0x221   :  { %v7430_v59 = vpack.c.bf16 %v442_v11, %v439_v57  ;;  %845 = vrot.lane.b32.xlu1 %v7428_v58, %s7089_s6 }
 0x223   :  { %795 = vrot.lane.b32.xlu0 %v7430_v59, %s7089_s6  ;;  %s7101_s6 = smov 16  }
 0x225   :  { %1142 = vrot.lane.b32.xlu1 %v7404_v16, %s7090_s7 }
 0x227   :  { %1095 = vrot.lane.b32.xlu0 %v7406_v31, %s7090_s7 }
 0x229   :  { %1236 = vrot.lane.b32.xlu1 %v7416_v43, %s7090_s7 }
 0x22d   :  { %1189 = vrot.lane.b32.xlu1 %v7412_v40, %s7090_s7 }
 0x27c   :  { %v546_v61 = vpop.permute.xlu1 %545 }
 0x27d   :  { %v551_v62 = vsel %vm496_vm2, %v546_v61, 0  ;;  %v458_v61 = vld [vmem:[%s9676_s1 + $0x28] sm:$0xff] }
 0x27e   :  { %v495_v23 = vpop.permute.xlu0 %494 }
 0x27f   :  { %v501_v60 = vsel %vm496_vm2, %v495_v23, 0 }
 0x280   :  { %6194 = vmatpush3.bf16.xpose.msra.mxu1 %v501_v60 }
 0x281   :  { %6199 = vmatprep.subr.bf16.mxu1 %v9679_v15 }
 0x286   :  { %v596_v63 = vpop.permute.xlu1 %595 }
 0x287   :  { %6196 = vmatmul.mubr.msk.bf16.vlgmr.msra.gmra.mxu1 %vm496_vm2, %v7406_v31  ;;  %v601_v44 = vsel %vm496_vm2, %v596_v63, 0 }
 0x288   :  { %6200 = vmatpush3.bf16.xpose.msra.mxu1 %v551_v62  ;;  %6201 = vmatprep.mubr.msk.bf16.mxu1 %vm7088_vm1, %v9679_v15 }
 0x289   :  { %6205 = vmatprep.subr.bf16.mxu1 %v9679_v15 }
 0x28a   :  { %v646_v3 = vpop.permute.xlu1 %645 }
 0x28b   :  { %v651_v37 = vsel %vm496_vm2, %v646_v3, 0 }
 0x28d   :  { %v696_v2 = vpop.permute.xlu0 %695 }
 0x28e   :  { %v701_v17 = vsel %vm496_vm2, %v696_v2, 0  ;;  %v746_v5 = vpop.permute.xlu1 %745 }
 0x28f   :  { %6202 = vmatmul.mubr.msk.bf16.vlgmr.msra.gmra.mxu1 %vm496_vm2, %v7404_v16  ;;  %6218 = vmatpush3.bf16.xpose.msra.mxu0 %v701_v17  ;;  %v751_v7 = vsel %vm496_vm2, %v746_v5, 0  ;;  %v459_v5 = vld [vmem:[%s9676_s1 + $0x30] sm:$0xff] }
 0x290   :  { %6206 = vmatpush3.bf16.xpose.msra.mxu1 %v601_v44  ;;  %6207 = vmatprep.mubr.msk.bf16.mxu1 %vm7088_vm1, %v9679_v15 }
 0x291   :  { %6211 = vmatprep.subr.bf16.mxu1 %v9679_v15  ;;  %6229 = vmatprep.subr.bf16.mxu0 %v9679_v15 }
 0x293   :  { %v846_v9 = vpop.permute.xlu1 %845 }
 0x294   :  { %v851_v21 = vsel %vm496_vm2, %v846_v9, 0 }
 0x295   :  { %v796_v35 = vpop.permute.xlu0 %795 }
 0x296   :  { %v801_v4 = vsel %vm496_vm2, %v796_v35, 0  ;;  %6220 = vmatmul.mubr.msk.bf16.vlgmr.msra.gmra.mxu0 %vm496_vm2, %v7420_v52 }
 0x297   :  { %6208 = vmatmul.mubr.msk.bf16.vlgmr.msra.gmra.mxu1 %vm496_vm2, %v7412_v40  ;;  %6230 = vmatpush3.bf16.xpose.msra.mxu0 %v801_v4  ;;  %v1143_v47 = vpop.permute.xlu1 %1142 }
 0x298   :  { %6212 = vmatpush3.bf16.xpose.msra.mxu1 %v651_v37  ;;  %6213 = vmatprep.mubr.msk.bf16.mxu1 %vm7088_vm1, %v9679_v15 }
 0x299   :  { %6231 = vmatprep.mubr.msk.bf16.mxu0 %vm7088_vm1, %v9679_v15  ;;  %6223 = vmatprep.subr.bf16.mxu1 %v9679_v15  ;;  %v1096_v6 = vpop.permute.xlu0 %1095 }
 0x29a   :  { %6241 = vmatprep.subr.bf16.mxu0 %v9679_v15 }
 0x29e   :  { %6232 = vmatmul.mubr.msk.bf16.vlgmr.msra.gmra.mxu0 %vm496_vm2, %v7430_v59 }
 0x29f   :  { %6214 = vmatmul.mubr.msk.bf16.vlgmr.msra.gmra.mxu1 %vm496_vm2, %v7416_v43  ;;  %6242 = vmatpush3.bf16.msra.mxu0 %v1096_v6  ;;  %v460_v6 = vld [vmem:[%s9676_s1 + $0x38] sm:$0xff] }
 0x2a0   :  { %6224 = vmatpush3.bf16.xpose.msra.mxu1 %v751_v7  ;;  %6225 = vmatprep.mubr.msk.bf16.mxu1 %vm7088_vm1, %v9679_v15 }
 0x2a1   :  { %6235 = vmatprep.subr.bf16.mxu1 %v9679_v15  ;;  %6243 = vmatprep.mubr.msk.bf16.mxu0 %vm7088_vm1, %v9679_v15 }
 0x2a2   :  { %6253 = vmatprep.subr.bf16.mxu0 %v9679_v15 }
 0x2a7   :  { %6226 = vmatmul.mubr.msk.bf16.vlgmr.msra.gmra.mxu1 %vm496_vm2, %v7422_v28 }
 0x2a8   :  { %6236 = vmatpush3.bf16.xpose.msra.mxu1 %v851_v21  ;;  %6237 = vmatprep.mubr.msk.bf16.mxu1 %vm7088_vm1, %v9679_v15 }
 0x2a9   :  { %6247 = vmatprep.subr.bf16.mxu1 %v9679_v15 }
 0x2af   :  { %6238 = vmatmul.mubr.msk.bf16.vlgmr.msra.gmra.mxu1 %vm496_vm2, %v7428_v58 }
 0x2b0   :  { %6248 = vmatpush3.bf16.msra.mxu1 %v1143_v47  ;;  %6249 = vmatprep.mubr.msk.bf16.mxu1 %vm7088_vm1, %v9679_v15 }
 0x2b1   :  { %6259 = vmatprep.subr.bf16.mxu1 %v9679_v15 }
 0x347   :  { %v537_v13 = vpop.f32.mrf.mxu1 }
 0x348   :  { %v7497_v14 = vadd.f32 %v537_v13, %v453_v12 }
 0x349   :  { %v6197_v25 = vpop.f32.mrf.mxu1 }
 0x34a   :  { %v911_v34 = vsel %vm910_vm3, %v7497_v14, -inf }
 0x34b   :  { %912 = vmax.xlane.f32.xlu0 %v911_v34  ;;  %v540_v19 = vpop.f32.mrf.mxu1 }
 0x34c   :  { %v7504_v45 = vadd.f32 %v540_v19, %v454_v18 }
 0x34d   :  { %v6198_v22 = vpop.f32.mrf.mxu1 }
 0x34e   :  { %v914_v49 = vsel %vm910_vm3, %v7504_v45, -inf }
 0x34f   :  { %915 = vmax.xlane.f32.xlu1 %v914_v49  ;;  %v587_v54 = vpop.f32.mrf.mxu1 }
 0x350   :  { %v7513_v55 = vadd.f32 %v587_v54, %v455_v32 }
 0x351   :  { %v6203_v27 = vpop.f32.mrf.mxu1 }
 0x352   :  { %v917_v1 = vsel %vm910_vm3, %v7513_v55, -inf }
 0x353   :  { %v590_v30 = vpop.f32.mrf.mxu1 }
 0x354   :  { %v7531_v11 = vadd.f32 %v590_v30, %v456_v10 }
 0x355   :  { %v6204_v26 = vpop.f32.mrf.mxu1 }
 0x356   :  { %v737_v33 = vpop.f32.mrf.mxu0  ;;  %v920_v4 = vsel %vm910_vm3, %v7531_v11, -inf }
 0x357   :  { %v637_v20 = vpop.f32.mrf.mxu1  ;;  %v7511_v38 = vadd.f32 %v737_v33, %v453_v12 }
 0x358   :  { %v6221_v39 = vpop.f32.mrf.mxu0  ;;  %v7540_v44 = vadd.f32 %v637_v20, %v457_v29 }
 0x359   :  { %v6209_v41 = vpop.f32.mrf.mxu1  ;;  %v935_v0 = vsel %vm910_vm3, %v7511_v38, -inf }
 0x35a   :  { %936 = vmax.xlane.f32.xlu0 %v935_v0  ;;  %v740_v42 = vpop.f32.mrf.mxu0  ;;  %v923_v12 = vsel %vm910_vm3, %v7540_v44, -inf }
 0x35b   :  { %v640_v46 = vpop.f32.mrf.mxu1  ;;  %v7517_v24 = vadd.f32 %v740_v42, %v454_v18  ;;  %v7586_v42 = vpop.permute.xlu1 %1236 }
 0x35c   :  { %v6222_v48 = vpop.f32.mrf.mxu0  ;;  %v7542_v3 = vadd.f32 %v640_v46, %v458_v61 }
 0x35d   :  { %v6210_v50 = vpop.f32.mrf.mxu1  ;;  %v938_v51 = vsel %vm910_vm3, %v7517_v24, -inf }
 0x35e   :  { %918 = vmax.xlane.f32.xlu0 %v917_v1  ;;  %939 = vmax.xlane.f32.xlu1 %v938_v51  ;;  %v837_v53 = vpop.f32.mrf.mxu0  ;;  %v926_v13 = vsel %vm910_vm3, %v7542_v3, -inf }
 0x35f   :  { %v687_v36 = vpop.f32.mrf.mxu1  ;;  %v7529_v56 = vadd.f32 %v837_v53, %v457_v29  ;;  %v7588_v46 = vpop.permute.xlu1 %1189 }
 0x360   :  { %v6233_v57 = vpop.f32.mrf.mxu0  ;;  %v7554_v9 = vadd.f32 %v687_v36, %v459_v5 }
 0x361   :  { %v6215_v23 = vpop.f32.mrf.mxu1  ;;  %v947_v60 = vsel %vm910_vm3, %v7529_v56, -inf }
 0x362   :  { %948 = vmax.xlane.f32.xlu0 %v947_v60  ;;  %v840_v62 = vpop.f32.mrf.mxu0  ;;  %v929_v22 = vsel %vm910_vm3, %v7554_v9, -inf }
 0x363   :  { %v690_v63 = vpop.f32.mrf.mxu1  ;;  %v7538_v2 = vadd.f32 %v840_v62, %v458_v61 }
 0x364   :  { %v6234_v17 = vpop.f32.mrf.mxu0  ;;  %v7556_v21 = vadd.f32 %v690_v63, %v460_v6 }
 0x365   :  { %v6216_v35 = vpop.f32.mrf.mxu1  ;;  %v950_v37 = vsel %vm910_vm3, %v7538_v2, -inf }
 0x366   :  { %921 = vmax.xlane.f32.xlu0 %v920_v4  ;;  %951 = vmax.xlane.f32.xlu1 %v950_v37  ;;  %v932_v49 = vsel %vm910_vm3, %v7556_v21, -inf }
 0x367   :  { %v787_v7 = vpop.f32.mrf.mxu1 }
 0x368   :  { %v7562_v18 = vadd.f32 %v787_v7, %v455_v32 }
 0x369   :  { %v6227_v47 = vpop.f32.mrf.mxu1 }
 0x36a   :  { %924 = vmax.xlane.f32.xlu0 %v923_v12  ;;  %927 = vmax.xlane.f32.xlu1 %v926_v13  ;;  %v941_v26 = vsel %vm910_vm3, %v7562_v18, -inf }
 0x36b   :  { %v790_v25 = vpop.f32.mrf.mxu1 }
 0x36c   :  { %v7564_v34 = vadd.f32 %v790_v25, %v456_v10 }
 0x36d   :  { %v6228_v19 = vpop.f32.mrf.mxu1 }
 0x36e   :  { %930 = vmax.xlane.f32.xlu0 %v929_v22  ;;  %933 = vmax.xlane.f32.xlu1 %v932_v49  ;;  %v944_v32 = vsel %vm910_vm3, %v7564_v34, -inf }
 0x36f   :  { %v887_v54 = vpop.f32.mrf.mxu1 }
 0x370   :  { %v7570_v27 = vadd.f32 %v887_v54, %v459_v5 }
 0x371   :  { %v6239_v30 = vpop.f32.mrf.mxu1 }
 0x372   :  { %942 = vmax.xlane.f32.xlu0 %v941_v26  ;;  %945 = vmax.xlane.f32.xlu1 %v944_v32  ;;  %v953_v39 = vsel %vm910_vm3, %v7570_v27, -inf }
 0x373   :  { %v890_v33 = vpop.f32.mrf.mxu1 }
 0x374   :  { %v7582_v41 = vadd.f32 %v890_v33, %v460_v6 }
 0x375   :  { %v6240_v20 = vpop.f32.mrf.mxu1 }
 0x376   :  { %954 = vmax.xlane.f32.xlu0 %v953_v39  ;;  %v956_v0 = vsel %vm910_vm3, %v7582_v41, -inf }
 0x383   :  { %1330 = vrot.lane.b32.xlu1 %v7422_v28, %s7090_s7 }
 0x38c   :  { %1283 = vrot.lane.b32.xlu0 %v7420_v52, %s7090_s7 }
 0x3a7   :  { %957 = vmax.xlane.f32.xlu1 %v956_v0 }
 0x3d4   :  { %v913_v48 = vpop.xlane.xlu0 %912 }
 0x3d5   :  { %v959_v50 = vsub.f32 %v7497_v14, %v913_v48 }
 0x3d7   :  { %v975_v1 = vmul.f32 1.442695, %v959_v50 }
 0x3d8   :  { %v916_v51 = vpop.xlane.xlu1 %915 }
 0x3d9   :  { %6715 = vpow2.f32 %v975_v1  ;;  %v960_v10 = vsub.f32 %v7504_v45, %v916_v51 }
 0x3db   :  { %v977_v29 = vmul.f32 1.442695, %v960_v10 }
 0x3dd   :  { %6717 = vpow2.f32 %v977_v29 }
 0x3e3   :  { %v937_v53 = vpop.xlane.xlu0 %936 }
 0x3e4   :  { %v967_v36 = vsub.f32 %v7511_v38, %v937_v53 }
 0x3e6   :  { %v7593_v57 = vpop.eup %6715  ;;  %v991_v23 = vmul.f32 1.442695, %v967_v36 }
 0x3e7   :  { %v940_v60 = vpop.xlane.xlu1 %939  ;;  %v1007_v61 = vsel %vm910_vm3, %v7593_v57, 0.0  ;;  %v919_v62 = vpop.xlane.xlu0 %918 }
 0x3e8   :  { %6719 = vpow2.f32 %v991_v23  ;;  %v968_v14 = vsub.f32 %v7517_v24, %v940_v60  ;;  %1008 = vadd.xlane.f32.xlu0 %v1007_v61  ;;  %v961_v63 = vsub.f32 %v7513_v55, %v919_v62 }
 0x3ea   :  { %v7599_v45 = vpop.eup %6717  ;;  %v993_v17 = vmul.f32 1.442695, %v968_v14  ;;  %v979_v35 = vmul.f32 1.442695, %v961_v63 }
 0x3eb   :  { %v1010_v38 = vsel %vm910_vm3, %v7599_v45, 0.0  ;;  %v949_v4 = vpop.xlane.xlu0 %948 }
 0x3ec   :  { %6721 = vpow2.f32 %v993_v17  ;;  %1011 = vadd.xlane.f32.xlu1 %v1010_v38  ;;  %v971_v37 = vsub.f32 %v7529_v56, %v949_v4 }
 0x3ed   :  { %6723 = vpow2.f32 %v979_v35 }
 0x3ee   :  { %v999_v5 = vmul.f32 1.442695, %v971_v37 }
 0x3ef   :  { %v952_v6 = vpop.xlane.xlu1 %951  ;;  %v922_v7 = vpop.xlane.xlu0 %921 }
 0x3f0   :  { %6725 = vpow2.f32 %v999_v5  ;;  %v972_v24 = vsub.f32 %v7538_v2, %v952_v6  ;;  %v962_v55 = vsub.f32 %v7531_v11, %v922_v7 }
 0x3f2   :  { %v981_v47 = vmul.f32 1.442695, %v962_v55  ;;  %v1001_v12 = vmul.f32 1.442695, %v972_v24 }
 0x3f3   :  { %v928_v13 = vpop.xlane.xlu1 %927  ;;  %v925_v25 = vpop.xlane.xlu0 %924 }
 0x3f4   :  { %v964_v19 = vsub.f32 %v7542_v3, %v928_v13  ;;  %v963_v22 = vsub.f32 %v7540_v44, %v925_v25  ;;  %6727 = vpow2.f32 %v981_v47 }
 0x3f5   :  { %v7608_v49 = vpop.eup %6719  ;;  %6729 = vpow2.f32 %v1001_v12 }
 0x3f6   :  { %v983_v56 = vmul.f32 1.442695, %v963_v22  ;;  %v1031_v54 = vsel %vm910_vm3, %v7608_v49, 0.0  ;;  %v985_v30 = vmul.f32 1.442695, %v964_v19 }
 0x3f7   :  { %v934_v2 = vpop.xlane.xlu1 %933  ;;  %1032 = vadd.xlane.f32.xlu0 %v1031_v54  ;;  %v931_v11 = vpop.xlane.xlu0 %930 }
 0x3f8   :  { %v966_v26 = vsub.f32 %v7556_v21, %v934_v2  ;;  %v965_v32 = vsub.f32 %v7554_v9, %v931_v11  ;;  %6731 = vpow2.f32 %v983_v56 }
 0x3f9   :  { %v7614_v33 = vpop.eup %6721  ;;  %6733 = vpow2.f32 %v985_v30 }
 0x3fa   :  { %v7616_v44 = vpop.eup %6723  ;;  %v987_v3 = vmul.f32 1.442695, %v965_v32  ;;  %v1034_v20 = vsel %vm910_vm3, %v7614_v33, 0.0  ;;  %v989_v39 = vmul.f32 1.442695, %v966_v26 }
 0x3fb   :  { %1035 = vadd.xlane.f32.xlu1 %v1034_v20  ;;  %v1013_v0 = vsel %vm910_vm3, %v7616_v44, 0.0  ;;  %v943_v48 = vpop.xlane.xlu0 %942  ;;  %v946_v38 = vpop.xlane.xlu1 %945 }
 0x3fc   :  { %1014 = vadd.xlane.f32.xlu0 %v1013_v0  ;;  %v969_v21 = vsub.f32 %v7562_v18, %v943_v48  ;;  %6735 = vpow2.f32 %v987_v3  ;;  %v970_v37 = vsub.f32 %v7564_v34, %v946_v38 }
 0x3fd   :  { %v7623_v9 = vpop.eup %6725  ;;  %6737 = vpow2.f32 %v989_v39 }
 0x3fe   :  { %v995_v50 = vmul.f32 1.442695, %v969_v21  ;;  %v1043_v1 = vsel %vm910_vm3, %v7623_v9, 0.0  ;;  %v997_v6 = vmul.f32 1.442695, %v970_v37 }
 0x3ff   :  { %v955_v4 = vpop.xlane.xlu0 %954  ;;  %v7671_v34 = vpop.permute.xlu1 %1330 }
 0x400   :  { %1044 = vadd.xlane.f32.xlu0 %v1043_v1  ;;  %6739 = vpow2.f32 %v995_v50  ;;  %v973_v5 = vsub.f32 %v7570_v27, %v955_v4 }
 0x401   :  { %v7627_v51 = vpop.eup %6727  ;;  %6741 = vpow2.f32 %v997_v6 }
 0x402   :  { %v1016_v10 = vsel %vm910_vm3, %v7627_v51, 0.0  ;;  %v7631_v29 = vpop.eup %6729  ;;  %v1003_v7 = vmul.f32 1.442695, %v973_v5 }
 0x403   :  { %1017 = vadd.xlane.f32.xlu1 %v1016_v10  ;;  %v1046_v18 = vsel %vm910_vm3, %v7631_v29, 0.0  ;;  %v7684_v19 = vpop.permute.xlu0 %1283 }
 0x404   :  { %6743 = vpow2.f32 %v1003_v7 }
 0x405   :  { %v7633_v53 = vpop.eup %6731 }
 0x406   :  { %v1019_v36 = vsel %vm910_vm3, %v7633_v53, 0.0  ;;  %v7639_v23 = vpop.eup %6733 }
 0x407   :  { %1047 = vadd.xlane.f32.xlu1 %v1046_v18  ;;  %1020 = vadd.xlane.f32.xlu0 %v1019_v36  ;;  %v1022_v61 = vsel %vm910_vm3, %v7639_v23, 0.0 }
 0x409   :  { %v7641_v60 = vpop.eup %6735 }
 0x40a   :  { %v1025_v62 = vsel %vm910_vm3, %v7641_v60, 0.0  ;;  %v7647_v14 = vpop.eup %6737 }
 0x40b   :  { %1023 = vadd.xlane.f32.xlu1 %v1022_v61  ;;  %1026 = vadd.xlane.f32.xlu0 %v1025_v62  ;;  %v1028_v17 = vsel %vm910_vm3, %v7647_v14, 0.0 }
 0x40d   :  { %v7649_v63 = vpop.eup %6739 }
 0x40e   :  { %v1037_v35 = vsel %vm910_vm3, %v7649_v63, 0.0  ;;  %v7661_v24 = vpop.eup %6741 }
 0x40f   :  { %1029 = vadd.xlane.f32.xlu1 %v1028_v17  ;;  %1038 = vadd.xlane.f32.xlu0 %v1037_v35  ;;  %v1040_v47 = vsel %vm910_vm3, %v7661_v24, 0.0 }
 0x411   :  { %v7663_v55 = vpop.eup %6743 }
 0x412   :  { %v1049_v12 = vsel %vm910_vm3, %v7663_v55, 0.0 }
 0x420   :  { %1424 = vrot.lane.b32.xlu1 %v7428_v58, %s7090_s7 }
 0x425   :  { %1377 = vrot.lane.b32.xlu0 %v7430_v59, %s7090_s7 }
 0x430   :  { %v958_v27 = vpop.xlane.xlu1 %957 }
 0x431   :  { %v974_v13 = vsub.f32 %v7582_v41, %v958_v27 }
 0x433   :  { %v1005_v25 = vmul.f32 1.442695, %v974_v13 }
 0x435   :  { %6745 = vpow2.f32 %v1005_v25 }
 0x442   :  { %v7690_v56 = vpop.eup %6745 }
 0x443   :  { %v1052_v54 = vsel %vm910_vm3, %v7690_v56, 0.0 }
 0x444   :  { %1041 = vadd.xlane.f32.xlu1 %v1040_v47  ;;  %1050 = vadd.xlane.f32.xlu0 %v1049_v12 }
 0x455   :  { %1540 = vrot.lane.b32.xlu1 %v7404_v16, %s7091_s24 }
 0x45a   :  { %1489 = vrot.lane.b32.xlu0 %v7406_v31, %s7091_s24 }
 0x45e   :  { %1487 = vrot.lane.b32.xlu0 %v7406_v31, %s7092_s25 }
 0x462   :  { %1538 = vrot.lane.b32.xlu0 %v7404_v16, %s7092_s25 }
 0x466   :  { %1589 = vrot.lane.b32.xlu0 %v7412_v40, %s7092_s25 }
 0x46a   :  { %1640 = vrot.lane.b32.xlu0 %v7416_v43, %s7092_s25 }
 0x46e   :  { %1691 = vrot.lane.b32.xlu0 %v7420_v52, %s7092_s25 }
 0x471   :  { %v1009_v22 = vpop.xlane.xlu0 %1008 }
 0x472   :  { %1742 = vrot.lane.b32.xlu0 %v7422_v28, %s7092_s25  ;;  %6747 = vrcp.f32 %v1009_v22 }
 0x475   :  { %v1012_v41 = vpop.xlane.xlu1 %1011 }
 0x476   :  { %6749 = vrcp.f32 %v1012_v41  ;;  %1793 = vrot.lane.b32.xlu0 %v7430_v59, %s7092_s25 }
 0x479   :  { %1053 = vadd.xlane.f32.xlu1 %v1052_v54 }
 0x47f   :  { %v6748_v30 = vpop.eup %6747 }
 0x480   :  { %v1033_v2 = vpop.xlane.xlu0 %1032  ;;  %v1071_v26 = vmul.f32 %v6748_v30, %v7593_v57 }
 0x483   :  { %v6750_v11 = vpop.eup %6749 }
 0x484   :  { %v1072_v32 = vmul.f32 %v6750_v11, %v7599_v45  ;;  %v1036_v39 = vpop.xlane.xlu1 %1035 }
 0x485   :  { %v1015_v20 = vpop.xlane.xlu0 %1014 }
 0x486   :  { %v1087_v3 = vpack.c.bf16 %v1072_v32, %v1071_v26  ;;  %6751 = vrcp.f32 %v1015_v20 }
 0x488   :  { %6244 = vmatmul.mubr.msk.bf16.vlgmr.msra.gmra.mxu0 %vm910_vm3, %v1087_v3 }
 0x489   :  { %6254 = vmatpush3.bf16.msra.mxu0 %v7588_v46  ;;  %6255 = vmatprep.mubr.msk.bf16.mxu0 %vm7088_vm1, %v9679_v15  ;;  %v1045_v0 = vpop.xlane.xlu0 %1044 }
 0x48a   :  { %6265 = vmatprep.subr.bf16.mxu0 %v9679_v15  ;;  %1591 = vrot.lane.b32.xlu1 %v7412_v40, %s7091_s24 }
 0x48c   :  { %v1018_v57 = vpop.xlane.xlu1 %1017 }
 0x48d   :  { %6753 = vrcp.f32 %v1018_v57 }
 0x48e   :  { %1642 = vrot.lane.b32.xlu1 %v7416_v43, %s7091_s24 }
 0x490   :  { %v1048_v45 = vpop.xlane.xlu1 %1047  ;;  %v1021_v48 = vpop.xlane.xlu0 %1020 }
 0x491   :  { %6755 = vrcp.f32 %v1021_v48 }
 0x492   :  { %1693 = vrot.lane.b32.xlu1 %v7420_v52, %s7091_s24 }
 0x493   :  { %v6752_v50 = vpop.eup %6751 }
 0x494   :  { %v1024_v46 = vpop.xlane.xlu1 %1023  ;;  %v1027_v21 = vpop.xlane.xlu0 %1026  ;;  %v1073_v18 = vmul.f32 %v6752_v50, %v7616_v44 }
 0x495   :  { %6757 = vrcp.f32 %v1024_v46 }
 0x496   :  { %1744 = vrot.lane.b32.xlu1 %v7422_v28, %s7091_s24  ;;  %6759 = vrcp.f32 %v1027_v21 }
 0x497   :  { %6761 = vrcp.f32 %v1036_v39 }
 0x498   :  { %v1030_v1 = vpop.xlane.xlu1 %1029  ;;  %v1039_v7 = vpop.xlane.xlu0 %1038 }
 0x499   :  { %6763 = vrcp.f32 %v1030_v1 }
 0x49a   :  { %v6754_v10 = vpop.eup %6753  ;;  %1795 = vrot.lane.b32.xlu1 %v7430_v59, %s7091_s24  ;;  %6765 = vrcp.f32 %v1033_v2 }
 0x49b   :  { %v1074_v36 = vmul.f32 %v6754_v10, %v7627_v51  ;;  %6767 = vrcp.f32 %v1048_v45 }
 0x49c   :  { %6769 = vrcp.f32 %v1045_v0  ;;  %v1378_v12 = vpop.permute.xlu0 %1377  ;;  %v1425_v13 = vpop.permute.xlu1 %1424 }
 0x49d   :  { %v1088_v61 = vpack.c.bf16 %v1074_v36, %v1073_v18  ;;  %6771 = vrcp.f32 %v1039_v7 }
 0x49e   :  { %1846 = vrot.lane.b32.xlu1 %v7428_v58, %s7091_s24  ;;  %v6756_v62 = vpop.eup %6755 }
 0x49f   :  { %6250 = vmatmul.mubr.msk.bf16.vlgmr.msra.gmra.mxu1 %vm910_vm3, %v1088_v61  ;;  %v1075_v44 = vmul.f32 %v6756_v62, %v7633_v53 }
 0x4a0   :  { %6260 = vmatpush3.bf16.msra.mxu1 %v7586_v42  ;;  %6261 = vmatprep.mubr.msk.bf16.mxu1 %vm7088_vm1, %v9679_v15 }
 0x4a1   :  { %6271 = vmatprep.subr.bf16.mxu1 %v9679_v15 }
 0x4a2   :  { %v6758_v17 = vpop.eup %6757  ;;  %1844 = vrot.lane.b32.xlu1 %v7428_v58, %s7092_s25 }
 0x4a3   :  { %v1076_v51 = vmul.f32 %v6758_v17, %v7639_v23  ;;  %v6760_v35 = vpop.eup %6759 }
 0x4a4   :  { %v6762_v38 = vpop.eup %6761  ;;  %v1077_v42 = vmul.f32 %v6760_v35, %v7641_v60 }
 0x4a5   :  { %v1089_v4 = vpack.c.bf16 %v1076_v51, %v1075_v44  ;;  %v1080_v23 = vmul.f32 %v6762_v38, %v7614_v33 }
 0x4a6   :  { %v6764_v37 = vpop.eup %6763 }
 0x4a7   :  { %6256 = vmatmul.mubr.msk.bf16.vlgmr.msra.gmra.mxu0 %vm910_vm3, %v1089_v4  ;;  %v1078_v5 = vmul.f32 %v6764_v37, %v7647_v14  ;;  %v6766_v6 = vpop.eup %6765 }
 0x4a8   :  { %6266 = vmatpush3.bf16.msra.mxu0 %v7684_v19  ;;  %6267 = vmatprep.mubr.msk.bf16.mxu0 %vm7088_vm1, %v9679_v15  ;;  %v1079_v47 = vmul.f32 %v6766_v6, %v7608_v49  ;;  %v6768_v14 = vpop.eup %6767 }
 0x4a9   :  { %v1090_v53 = vpack.c.bf16 %v1078_v5, %v1077_v42  ;;  %6277 = vmatprep.subr.bf16.mxu0 %v9679_v15  ;;  %v6770_v27 = vpop.eup %6769  ;;  %v1084_v33 = vmul.f32 %v6768_v14, %v7631_v29 }
 0x4aa   :  { %v1091_v60 = vpack.c.bf16 %v1080_v23, %v1079_v47  ;;  %v1083_v49 = vmul.f32 %v6770_v27, %v7623_v9  ;;  %v6772_v29 = vpop.eup %6771 }
 0x4ab   :  { %6262 = vmatmul.mubr.msk.bf16.vlgmr.msra.gmra.mxu1 %vm910_vm3, %v1090_v53  ;;  %v1081_v30 = vmul.f32 %v6772_v29, %v7649_v63 }
 0x4ac   :  { %6272 = vmatpush3.bf16.msra.mxu1 %v7671_v34  ;;  %6273 = vmatprep.mubr.msk.bf16.mxu1 %vm7088_vm1, %v9679_v15  ;;  %v1093_v34 = vpack.c.bf16 %v1084_v33, %v1083_v49 }
 0x4ad   :  { %6283 = vmatprep.subr.bf16.mxu1 %v9679_v15 }
 0x4af   :  { %6268 = vmatmul.mubr.msk.bf16.vlgmr.msra.gmra.mxu0 %vm910_vm3, %v1091_v60 }
 0x4b0   :  { %6278 = vmatpush3.bf16.msra.mxu0 %v1378_v12  ;;  %6279 = vmatprep.mubr.msk.bf16.mxu0 %vm7088_vm1, %v9679_v15 }
 0x4b1   :  { %6289 = vmatprep.subr.bf16.mxu0 %v9679_v15 }
 0x4b7   :  { %6280 = vmatmul.mubr.msk.bf16.vlgmr.msra.gmra.mxu0 %vm910_vm3, %v1093_v34 }
 0x4b8   :  { %6291 = vmatprep.mubr.msk.bf16.mxu0 %vm7088_vm1, %v9679_v15 }
 0x4cd   :  { %v1042_v25 = vpop.xlane.xlu1 %1041  ;;  %v1051_v19 = vpop.xlane.xlu0 %1050 }
 0x4ce   :  { %6773 = vrcp.f32 %v1042_v25 }
 0x4cf   :  { %6775 = vrcp.f32 %v1051_v19 }
 0x4d1   :  { %v1490_v22 = vpop.permute.xlu0 %1489  ;;  %v1541_v26 = vpop.permute.xlu1 %1540 }
 0x4d2   :  { %v1495_v41 = vsel %vm496_vm2, %v1490_v22, 0  ;;  %v1546_v36 = vsel %vm496_vm2, %v1541_v26, 0 }
 0x4d3   :  { %6290 = vmatpush3.bf16.xpose.msra.mxu0 %v1495_v41 }
 0x4d4   :  { %6301 = vmatprep.subr.bf16.mxu0 %v9679_v15 }
 0x4d5   :  { %v1488_v54 = vpop.permute.xlu0 %1487 }
 0x4d9   :  { %v1539_v32 = vpop.permute.xlu0 %1538 }
 0x4da   :  { %6292 = vmatmul.mubr.msk.bf16.vlgmr.msra.gmra.mxu0 %vm496_vm2, %v1488_v54 }
 0x4db   :  { %v6774_v9 = vpop.eup %6773  ;;  %6303 = vmatprep.mubr.msk.bf16.mxu0 %vm7088_vm1, %v9679_v15 }
 0x4dc   :  { %v1082_v2 = vmul.f32 %v6774_v9, %v7661_v24  ;;  %v6776_v57 = vpop.eup %6775 }
 0x4dd   :  { %v1590_v20 = vpop.permute.xlu0 %1589  ;;  %v1085_v21 = vmul.f32 %v6776_v57, %v7663_v55 }
 0x4de   :  { %v1092_v11 = vpack.c.bf16 %v1082_v2, %v1081_v30  ;;  %v7815_v30 = vld [vmem:[%s9676_s1 + $0x40] sm:$0xff] }
 0x4e0   :  { %6274 = vmatmul.mubr.msk.bf16.vlgmr.msra.gmra.mxu1 %vm910_vm3, %v1092_v11 }
 0x4e1   :  { %6284 = vmatpush3.bf16.msra.mxu1 %v1425_v13  ;;  %6285 = vmatprep.mubr.msk.bf16.mxu1 %vm7088_vm1, %v9679_v15  ;;  %v1641_v0 = vpop.permute.xlu0 %1640 }
 0x4e2   :  { %6295 = vmatprep.subr.bf16.mxu1 %v9679_v15 }
 0x4e5   :  { %v1692_v1 = vpop.permute.xlu0 %1691 }
 0x4e9   :  { %v1743_v55 = vpop.permute.xlu0 %1742 }
 0x4ed   :  { %v1794_v17 = vpop.permute.xlu0 %1793 }
 0x502   :  { %v1054_v3 = vpop.xlane.xlu1 %1053 }
 0x503   :  { %6777 = vrcp.f32 %v1054_v3 }
 0x506   :  { %v1592_v39 = vpop.permute.xlu1 %1591 }
 0x507   :  { %v1597_v63 = vsel %vm496_vm2, %v1592_v39, 0 }
 0x508   :  { %6302 = vmatpush3.bf16.xpose.msra.mxu0 %v1597_v63 }
 0x509   :  { %6313 = vmatprep.subr.bf16.mxu0 %v9679_v15 }
 0x50a   :  { %v1643_v24 = vpop.permute.xlu1 %1642 }
 0x50e   :  { %v1694_v45 = vpop.permute.xlu1 %1693 }
 0x50f   :  { %v1699_v48 = vsel %vm496_vm2, %v1694_v45, 0  ;;  %6304 = vmatmul.mubr.msk.bf16.vlgmr.msra.gmra.mxu0 %vm496_vm2, %v1590_v20 }
 0x510   :  { %v6778_v46 = vpop.eup %6777  ;;  %6314 = vmatpush3.bf16.xpose.msra.mxu0 %v1699_v48  ;;  %6315 = vmatprep.mubr.msk.bf16.mxu0 %vm7088_vm1, %v9679_v15 }
 0x511   :  { %v1086_v50 = vmul.f32 %v6778_v46, %v7690_v56  ;;  %6325 = vmatprep.subr.bf16.mxu0 %v9679_v15  ;;  %v1648_v56 = vsel %vm496_vm2, %v1643_v24, 0 }
 0x512   :  { %v1745_v10 = vpop.permute.xlu1 %1744 }
 0x513   :  { %v1094_v18 = vpack.c.bf16 %v1086_v50, %v1085_v21  ;;  %v1750_v44 = vsel %vm496_vm2, %v1745_v10, 0  ;;  %v466_v50 = vld [vmem:[%s9676_s1 + $0x68] sm:$0xff] }
 0x515   :  { %6286 = vmatmul.mubr.msk.bf16.vlgmr.msra.gmra.mxu1 %vm910_vm3, %v1094_v18 }
 0x516   :  { %6296 = vmatpush3.bf16.xpose.msra.mxu1 %v1546_v36  ;;  %v1796_v61 = vpop.permute.xlu1 %1795  ;;  %6297 = vmatprep.mubr.msk.bf16.mxu1 %vm7088_vm1, %v9679_v15 }
 0x517   :  { %v1801_v62 = vsel %vm496_vm2, %v1796_v61, 0  ;;  %6316 = vmatmul.mubr.msk.bf16.vlgmr.msra.gmra.mxu0 %vm496_vm2, %v1692_v1  ;;  %6307 = vmatprep.subr.bf16.mxu1 %v9679_v15 }
 0x518   :  { %6326 = vmatpush3.bf16.xpose.msra.mxu0 %v1801_v62  ;;  %6327 = vmatprep.mubr.msk.bf16.mxu0 %vm7088_vm1, %v9679_v15 }
 0x519   :  { %6337 = vmatprep.subr.bf16.mxu0 %v9679_v15 }
 0x51a   :  { %v1847_v51 = vpop.permute.xlu1 %1846 }
 0x51b   :  { %v1852_v35 = vsel %vm496_vm2, %v1847_v51, 0 }
 0x51d   :  { %6298 = vmatmul.mubr.msk.bf16.vlgmr.msra.gmra.mxu1 %vm496_vm2, %v1539_v32  ;;  %v462_v32 = vld [vmem:[%s9676_s1 + $0x48] sm:$0xff] }
 0x51e   :  { %6308 = vmatpush3.bf16.xpose.msra.mxu1 %v1648_v56  ;;  %6309 = vmatprep.mubr.msk.bf16.mxu1 %vm7088_vm1, %v9679_v15  ;;  %v1845_v38 = vpop.permute.xlu1 %1844 }
 0x51f   :  { %6328 = vmatmul.mubr.msk.bf16.vlgmr.msra.gmra.mxu0 %vm496_vm2, %v1794_v17  ;;  %6319 = vmatprep.subr.bf16.mxu1 %v9679_v15 }
 0x520   :  { %6339 = vmatprep.mubr.msk.bf16.mxu0 %vm7088_vm1, %v9679_v15 }
 0x525   :  { %6310 = vmatmul.mubr.msk.bf16.vlgmr.msra.gmra.mxu1 %vm496_vm2, %v1641_v0 }
 0x526   :  { %6320 = vmatpush3.bf16.xpose.msra.mxu1 %v1750_v44  ;;  %6321 = vmatprep.mubr.msk.bf16.mxu1 %vm7088_vm1, %v9679_v15 }
 0x527   :  { %6331 = vmatprep.subr.bf16.mxu1 %v9679_v15 }
 0x52d   :  { %6322 = vmatmul.mubr.msk.bf16.vlgmr.msra.gmra.mxu1 %vm496_vm2, %v1743_v55 }
 0x52e   :  { %6332 = vmatpush3.bf16.xpose.msra.mxu1 %v1852_v35  ;;  %6333 = vmatprep.mubr.msk.bf16.mxu1 %vm7088_vm1, %v9679_v15  ;;  %v463_v35 = vld [vmem:[%s9676_s1 + $0x50] sm:$0xff] }
 0x52f   :  { %6343 = vmatprep.subr.bf16.mxu1 %v9679_v15 }
 0x535   :  { %6334 = vmatmul.mubr.msk.bf16.vlgmr.msra.gmra.mxu1 %vm496_vm2, %v1845_v38 }
 0x536   :  { %6345 = vmatprep.mubr.msk.bf16.mxu1 %vm7088_vm1, %v9679_v15 }
 0x548   :  { %v1135_v4 = vpop.f32.mrf.mxu0 }
 0x549   :  { %1471 = vst.msk [vmem:[#allocation2] sm:$0xff] %vm496_vm2, %v1135_v4 }
 0x54a   :  { %v6245_v37 = vpop.f32.mrf.mxu0 }
 0x54c   :  { %v1138_v42 = vpop.f32.mrf.mxu0 }
 0x54d   :  { %1472 = vst.msk [vmem:[#allocation2 + $0x8] sm:$0xff] %vm496_vm2, %v1138_v42 }
 0x54e   :  { %v6246_v5 = vpop.f32.mrf.mxu0 }
 0x55f   :  { %v1182_v6 = vpop.f32.mrf.mxu1 }
 0x560   :  { %1473 = vst.msk [vmem:[#allocation2 + $0x10] sm:$0xff] %vm496_vm2, %v1182_v6  ;;  %v464_v6 = vld [vmem:[%s9676_s1 + $0x58] sm:$0xff] }
 0x561   :  { %v6251_v7 = vpop.f32.mrf.mxu1 }
 0x563   :  { %v1185_v53 = vpop.f32.mrf.mxu1 }
 0x564   :  { %1474 = vst.msk [vmem:[#allocation2 + $0x18] sm:$0xff] %vm496_vm2, %v1185_v53  ;;  %v465_v53 = vld [vmem:[%s9676_s1 + $0x60] sm:$0xff] }
 0x565   :  { %v6252_v23 = vpop.f32.mrf.mxu1 }
 0x567   :  { %v1229_v47 = vpop.f32.mrf.mxu0 }
 0x568   :  { %1475 = vst.msk [vmem:[#allocation2 + $0x20] sm:$0xff] %vm496_vm2, %v1229_v47 }
 0x569   :  { %v6257_v60 = vpop.f32.mrf.mxu0 }
 0x56b   :  { %v1232_v14 = vpop.f32.mrf.mxu0  ;;  %v1276_v12 = vpop.f32.mrf.mxu1 }
 0x56c   :  { %1476 = vst.msk [vmem:[#allocation2 + $0x28] sm:$0xff] %vm496_vm2, %v1232_v14  ;;  %1477 = vst.msk [vmem:[#allocation2 + $0x30] sm:$0xff] %vm496_vm2, %v1276_v12 }
 0x56d   :  { %v6258_v27 = vpop.f32.mrf.mxu0  ;;  %v6263_v33 = vpop.f32.mrf.mxu1 }
 0x56f   :  { %v1279_v49 = vpop.f32.mrf.mxu1  ;;  %v1323_v34 = vpop.f32.mrf.mxu0 }
 0x570   :  { %1478 = vst.msk [vmem:[#allocation2 + $0x38] sm:$0xff] %vm496_vm2, %v1279_v49  ;;  %1479 = vst.msk [vmem:[#allocation2 + $0x40] sm:$0xff] %vm496_vm2, %v1323_v34  ;;  %v467_v49 = vld [vmem:[%s9676_s1 + $0x70] sm:$0xff] }
 0x571   :  { %v6264_v13 = vpop.f32.mrf.mxu1  ;;  %v6269_v25 = vpop.f32.mrf.mxu0 }
 0x573   :  { %v1326_v19 = vpop.f32.mrf.mxu0 }
 0x574   :  { %1480 = vst.msk [vmem:[#allocation2 + $0x48] sm:$0xff] %vm496_vm2, %v1326_v19  ;;  %v468_v19 = vld [vmem:[%s9676_s1 + $0x78] sm:$0xff] }
 0x575   :  { %v6270_v22 = vpop.f32.mrf.mxu0 }
 0x577   :  { %v1417_v41 = vpop.f32.mrf.mxu0 }
 0x578   :  { %1483 = vst.msk [vmem:[#allocation2 + $0x60] sm:$0xff] %vm496_vm2, %v1417_v41 }
 0x579   :  { %v6281_v29 = vpop.f32.mrf.mxu0 }
 0x57b   :  { %v1420_v54 = vpop.f32.mrf.mxu0 }
 0x57c   :  { %1484 = vst.msk [vmem:[#allocation2 + $0x68] sm:$0xff] %vm496_vm2, %v1420_v54 }
 0x57d   :  { %v6282_v9 = vpop.f32.mrf.mxu0 }
 0x59a   :  { %v1531_v2 = vpop.f32.mrf.mxu0 }
 0x59b   :  { %v7818_v11 = vadd.f32 %v1531_v2, %v7815_v30 }
 0x59c   :  { %v6293_v26 = vpop.f32.mrf.mxu0 }
 0x59d   :  { %v1911_v3 = vsel %vm910_vm3, %v7818_v11, -inf }
 0x59e   :  { %1912 = vmax.xlane.f32.xlu0 %v1911_v3  ;;  %v1534_v20 = vpop.f32.mrf.mxu0 }
 0x59f   :  { %v7825_v39 = vadd.f32 %v1534_v20, %v462_v32 }
 0x5a0   :  { %v1370_v63 = vpop.f32.mrf.mxu1  ;;  %v6294_v24 = vpop.f32.mrf.mxu0 }
 0x5a1   :  { %1481 = vst.msk [vmem:[#allocation2 + $0x50] sm:$0xff] %vm496_vm2, %v1370_v63  ;;  %v1914_v0 = vsel %vm910_vm3, %v7825_v39, -inf }
 0x5a2   :  { %v6275_v57 = vpop.f32.mrf.mxu1  ;;  %1915 = vmax.xlane.f32.xlu1 %v1914_v0 }
 0x5a4   :  { %v1373_v45 = vpop.f32.mrf.mxu1 }
 0x5a5   :  { %1482 = vst.msk [vmem:[#allocation2 + $0x58] sm:$0xff] %vm496_vm2, %v1373_v45 }
 0x5a6   :  { %v6276_v48 = vpop.f32.mrf.mxu1 }
 0x5cf   :  { %v1633_v46 = vpop.f32.mrf.mxu0 }
 0x5d0   :  { %v7855_v27 = vadd.f32 %v1633_v46, %v465_v53 }
 0x5d1   :  { %v6305_v21 = vpop.f32.mrf.mxu0 }
 0x5d2   :  { %v1923_v41 = vsel %vm910_vm3, %v7855_v27, -inf }
 0x5d3   :  { %v1636_v1 = vpop.f32.mrf.mxu0 }
 0x5d4   :  { %v7834_v10 = vadd.f32 %v1636_v1, %v466_v50 }
 0x5d5   :  { %v1464_v18 = vpop.f32.mrf.mxu1  ;;  %v6306_v36 = vpop.f32.mrf.mxu0 }
 0x5d6   :  { %1485 = vst.msk [vmem:[#allocation2 + $0x70] sm:$0xff] %vm496_vm2, %v1464_v18  ;;  %v1926_v61 = vsel %vm910_vm3, %v7834_v10, -inf }
 0x5d7   :  { %v6287_v62 = vpop.f32.mrf.mxu1  ;;  %1927 = vmax.xlane.f32.xlu1 %v1926_v61  ;;  %v1735_v55 = vpop.f32.mrf.mxu0 }
 0x5d8   :  { %v7872_v2 = vadd.f32 %v1735_v55, %v7815_v30 }
 0x5d9   :  { %v1467_v56 = vpop.f32.mrf.mxu1  ;;  %v6317_v17 = vpop.f32.mrf.mxu0 }
 0x5da   :  { %1486 = vst.msk [vmem:[#allocation2 + $0x78] sm:$0xff] %vm496_vm2, %v1467_v56  ;;  %v1935_v57 = vsel %vm910_vm3, %v7872_v2, -inf }
 0x5db   :  { %v6288_v44 = vpop.f32.mrf.mxu1  ;;  %v1738_v51 = vpop.f32.mrf.mxu0 }
 0x5dc   :  { %v7874_v26 = vadd.f32 %v1738_v51, %v462_v32 }
 0x5dd   :  { %v1582_v38 = vpop.f32.mrf.mxu1  ;;  %v6318_v4 = vpop.f32.mrf.mxu0 }
 0x5de   :  { %v7843_v37 = vadd.f32 %v1582_v38, %v463_v35  ;;  %v1938_v30 = vsel %vm910_vm3, %v7874_v26, -inf }
 0x5df   :  { %v6299_v42 = vpop.f32.mrf.mxu1  ;;  %v1837_v5 = vpop.f32.mrf.mxu0 }
 0x5e0   :  { %v1917_v7 = vsel %vm910_vm3, %v7843_v37, -inf  ;;  %v7888_v46 = vadd.f32 %v1837_v5, %v465_v53 }
 0x5e1   :  { %1918 = vmax.xlane.f32.xlu0 %v1917_v7  ;;  %v1585_v23 = vpop.f32.mrf.mxu1  ;;  %v6329_v47 = vpop.f32.mrf.mxu0 }
 0x5e2   :  { %v7853_v60 = vadd.f32 %v1585_v23, %v464_v6  ;;  %v1947_v55 = vsel %vm910_vm3, %v7888_v46, -inf }
 0x5e3   :  { %v6300_v14 = vpop.f32.mrf.mxu1  ;;  %v1840_v12 = vpop.f32.mrf.mxu0 }
 0x5e4   :  { %v1920_v33 = vsel %vm910_vm3, %v7853_v60, -inf  ;;  %v7890_v21 = vadd.f32 %v1840_v12, %v466_v50 }
 0x5e5   :  { %1921 = vmax.xlane.f32.xlu0 %v1920_v33  ;;  %v1684_v34 = vpop.f32.mrf.mxu1  ;;  %v6330_v13 = vpop.f32.mrf.mxu0 }
 0x5e6   :  { %v7865_v22 = vadd.f32 %v1684_v34, %v467_v49  ;;  %v1950_v56 = vsel %vm910_vm3, %v7890_v21, -inf }
 0x5e7   :  { %v6311_v25 = vpop.f32.mrf.mxu1 }
 0x5e8   :  { %v1929_v3 = vsel %vm910_vm3, %v7865_v22, -inf }
 0x5e9   :  { %1924 = vmax.xlane.f32.xlu0 %v1923_v41  ;;  %v1687_v29 = vpop.f32.mrf.mxu1 }
 0x5ea   :  { %v7869_v54 = vadd.f32 %v1687_v29, %v468_v19 }
 0x5eb   :  { %v6312_v9 = vpop.f32.mrf.mxu1 }
 0x5ec   :  { %v1932_v20 = vsel %vm910_vm3, %v7869_v54, -inf }
 0x5ed   :  { %1930 = vmax.xlane.f32.xlu0 %v1929_v3  ;;  %1933 = vmax.xlane.f32.xlu1 %v1932_v20  ;;  %v1786_v63 = vpop.f32.mrf.mxu1 }
 0x5ee   :  { %v7880_v0 = vadd.f32 %v1786_v63, %v463_v35 }
 0x5ef   :  { %v6323_v24 = vpop.f32.mrf.mxu1 }
 0x5f0   :  { %v1941_v1 = vsel %vm910_vm3, %v7880_v0, -inf }
 0x5f1   :  { %1936 = vmax.xlane.f32.xlu0 %v1935_v57  ;;  %1939 = vmax.xlane.f32.xlu1 %v1938_v30  ;;  %v1789_v32 = vpop.f32.mrf.mxu1 }
 0x5f2   :  { %v7886_v45 = vadd.f32 %v1789_v32, %v464_v6 }
 0x5f3   :  { %v6324_v48 = vpop.f32.mrf.mxu1 }
 0x5f4   :  { %v1944_v18 = vsel %vm910_vm3, %v7886_v45, -inf }
 0x5f5   :  { %1942 = vmax.xlane.f32.xlu0 %v1941_v1  ;;  %1945 = vmax.xlane.f32.xlu1 %v1944_v18  ;;  %v1888_v36 = vpop.f32.mrf.mxu1 }
 0x5f6   :  { %v7896_v62 = vadd.f32 %v1888_v36, %v467_v49 }
 0x5f7   :  { %v6335_v61 = vpop.f32.mrf.mxu1 }
 0x5f8   :  { %v1953_v44 = vsel %vm910_vm3, %v7896_v62, -inf }
 0x5f9   :  { %v1891_v50 = vpop.f32.mrf.mxu1  ;;  %1948 = vmax.xlane.f32.xlu0 %v1947_v55  ;;  %1951 = vmax.xlane.f32.xlu1 %v1950_v56 }
 0x5fa   :  { %v7912_v4 = vadd.f32 %v1891_v50, %v468_v19 }
 0x5fb   :  { %v6336_v17 = vpop.f32.mrf.mxu1 }
 0x5fc   :  { %v1956_v5 = vsel %vm910_vm3, %v7912_v4, -inf }
 0x5fd   :  { %1954 = vmax.xlane.f32.xlu0 %v1953_v44 }
 0x60a   :  { %2142 = vrot.lane.b32.xlu1 %v7404_v16, %s7093_s17 }
 0x60e   :  { %2189 = vrot.lane.b32.xlu1 %v7412_v40, %s7093_s17 }
 0x612   :  { %2236 = vrot.lane.b32.xlu1 %v7416_v43, %s7093_s17 }
 0x613   :  { %2095 = vrot.lane.b32.xlu0 %v7406_v31, %s7093_s17 }
 0x616   :  { %2330 = vrot.lane.b32.xlu1 %v7422_v28, %s7093_s17 }
 0x617   :  { %2283 = vrot.lane.b32.xlu0 %v7420_v52, %s7093_s17 }
 0x61b   :  { %2377 = vrot.lane.b32.xlu0 %v7430_v59, %s7093_s17 }
 0x627   :  { %v1913_v51 = vpop.xlane.xlu0 %1912 }
 0x628   :  { %v1959_v35 = vsub.f32 %v7818_v11, %v1913_v51 }
 0x62a   :  { %v1975_v38 = vmul.f32 1.442695, %v1959_v35 }
 0x62b   :  { %v1916_v7 = vpop.xlane.xlu1 %1915 }
 0x62c   :  { %6779 = vpow2.f32 %v1975_v38  ;;  %v1960_v53 = vsub.f32 %v7825_v39, %v1916_v7 }
 0x62e   :  { %v1977_v11 = vmul.f32 1.442695, %v1960_v53 }
 0x630   :  { %6781 = vpow2.f32 %v1977_v11 }
 0x639   :  { %v7914_v42 = vpop.eup %6779 }
 0x63a   :  { %1957 = vmax.xlane.f32.xlu1 %v1956_v5  ;;  %v2007_v6 = vsel %vm910_vm3, %v7914_v42, 0.0 }
 0x63b   :  { %2008 = vadd.xlane.f32.xlu0 %v2007_v6 }
 0x63d   :  { %v7922_v14 = vpop.eup %6781 }
 0x63e   :  { %v2010_v13 = vsel %vm910_vm3, %v7922_v14, 0.0 }
 0x64b   :  { %2424 = vrot.lane.b32.xlu1 %v7428_v58, %s7093_s17 }
 0x660   :  { %v1928_v23 = vpop.xlane.xlu1 %1927 }
 0x661   :  { %v1964_v33 = vsub.f32 %v7834_v10, %v1928_v23 }
 0x663   :  { %v1985_v39 = vmul.f32 1.442695, %v1964_v33 }
 0x66a   :  { %v1919_v47 = vpop.xlane.xlu0 %1918 }
 0x66b   :  { %v1961_v12 = vsub.f32 %v7843_v37, %v1919_v47 }
 0x66d   :  { %v1979_v49 = vmul.f32 1.442695, %v1961_v12 }
 0x66e   :  { %v1922_v34 = vpop.xlane.xlu0 %1921 }
 0x66f   :  { %6783 = vpow2.f32 %v1979_v49  ;;  %v1962_v25 = vsub.f32 %v7853_v60, %v1922_v34  ;;  %2011 = vadd.xlane.f32.xlu1 %v2010_v13 }
 0x671   :  { %v1981_v19 = vmul.f32 1.442695, %v1962_v25 }
 0x672   :  { %v1925_v41 = vpop.xlane.xlu0 %1924 }
 0x673   :  { %6785 = vpow2.f32 %v1981_v19  ;;  %v1963_v29 = vsub.f32 %v7855_v27, %v1925_v41 }
 0x674   :  { %6787 = vpow2.f32 %v1985_v39 }
 0x675   :  { %v1983_v9 = vmul.f32 1.442695, %v1963_v29 }
 0x676   :  { %v1934_v37 = vpop.xlane.xlu1 %1933  ;;  %v1931_v3 = vpop.xlane.xlu0 %1930 }
 0x677   :  { %6789 = vpow2.f32 %v1983_v9  ;;  %v1966_v10 = vsub.f32 %v7869_v54, %v1934_v37  ;;  %v1965_v20 = vsub.f32 %v7865_v22, %v1931_v3 }
 0x679   :  { %v1989_v63 = vmul.f32 1.442695, %v1966_v10  ;;  %v1987_v24 = vmul.f32 1.442695, %v1965_v20 }
 0x67a   :  { %v1940_v57 = vpop.xlane.xlu1 %1939  ;;  %v1937_v60 = vpop.xlane.xlu0 %1936 }
 0x67b   :  { %6791 = vpow2.f32 %v1989_v63  ;;  %v1968_v30 = vsub.f32 %v7874_v26, %v1940_v57  ;;  %v1967_v32 = vsub.f32 %v7872_v2, %v1937_v60 }
 0x67c   :  { %v7934_v48 = vpop.eup %6783  ;;  %6793 = vpow2.f32 %v1987_v24 }
 0x67d   :  { %v1993_v27 = vmul.f32 1.442695, %v1968_v30  ;;  %v1991_v1 = vmul.f32 1.442695, %v1967_v32  ;;  %v2013_v18 = vsel %vm910_vm3, %v7934_v48, 0.0 }
 0x67e   :  { %v1946_v54 = vpop.xlane.xlu1 %1945  ;;  %2014 = vadd.xlane.f32.xlu0 %v2013_v18  ;;  %v1943_v22 = vpop.xlane.xlu0 %1942 }
 0x67f   :  { %6795 = vpow2.f32 %v1993_v27  ;;  %v1970_v36 = vsub.f32 %v7886_v45, %v1946_v54  ;;  %v1969_v61 = vsub.f32 %v7880_v0, %v1943_v22 }
 0x680   :  { %v7940_v55 = vpop.eup %6785  ;;  %6797 = vpow2.f32 %v1991_v1 }
 0x681   :  { %v1997_v2 = vmul.f32 1.442695, %v1970_v36  ;;  %v1995_v26 = vmul.f32 1.442695, %v1969_v61  ;;  %v2016_v56 = vsel %vm910_vm3, %v7940_v55, 0.0  ;;  %v7944_v50 = vpop.eup %6787 }
 0x682   :  { %v1952_v17 = vpop.xlane.xlu1 %1951  ;;  %2017 = vadd.xlane.f32.xlu1 %v2016_v56  ;;  %v1949_v44 = vpop.xlane.xlu0 %1948  ;;  %v2022_v5 = vsel %vm910_vm3, %v7944_v50, 0.0 }
 0x683   :  { %6799 = vpow2.f32 %v1997_v2  ;;  %v1972_v51 = vsub.f32 %v7890_v21, %v1952_v17  ;;  %v1971_v45 = vsub.f32 %v7888_v46, %v1949_v44 }
 0x684   :  { %v7948_v35 = vpop.eup %6789  ;;  %6801 = vpow2.f32 %v1995_v26 }
 0x685   :  { %v2001_v0 = vmul.f32 1.442695, %v1972_v51  ;;  %v1999_v38 = vmul.f32 1.442695, %v1971_v45  ;;  %v2019_v6 = vsel %vm910_vm3, %v7948_v35, 0.0 }
 0x686   :  { %v2143_v7 = vpop.permute.xlu1 %2142  ;;  %2023 = vadd.xlane.f32.xlu1 %v2022_v5  ;;  %2020 = vadd.xlane.f32.xlu0 %v2019_v6  ;;  %v1955_v53 = vpop.xlane.xlu0 %1954 }
 0x687   :  { %6803 = vpow2.f32 %v2001_v0  ;;  %v1973_v21 = vsub.f32 %v7896_v62, %v1955_v53  ;;  %6344 = vmatpush3.bf16.msra.mxu1 %v2143_v7 }
 0x688   :  { %v7955_v46 = vpop.eup %6791  ;;  %6805 = vpow2.f32 %v1999_v38  ;;  %6355 = vmatprep.subr.bf16.mxu1 %v9679_v15 }
 0x689   :  { %v7958_v11 = vpop.eup %6793  ;;  %v2003_v23 = vmul.f32 1.442695, %v1973_v21  ;;  %v2028_v47 = vsel %vm910_vm3, %v7955_v46, 0.0 }
 0x68a   :  { %2029 = vadd.xlane.f32.xlu1 %v2028_v47  ;;  %v2025_v12 = vsel %vm910_vm3, %v7958_v11, 0.0  ;;  %v2096_v33 = vpop.permute.xlu0 %2095  ;;  %v2190_v63 = vpop.permute.xlu1 %2189 }
 0x68b   :  { %6807 = vpow2.f32 %v2003_v23  ;;  %2026 = vadd.xlane.f32.xlu0 %v2025_v12  ;;  %6338 = vmatpush3.bf16.msra.mxu0 %v2096_v33 }
 0x68c   :  { %v7964_v62 = vpop.eup %6795  ;;  %6349 = vmatprep.subr.bf16.mxu0 %v9679_v15 }
 0x68d   :  { %v7967_v49 = vpop.eup %6797  ;;  %v2034_v34 = vsel %vm910_vm3, %v7964_v62, 0.0 }
 0x68e   :  { %2035 = vadd.xlane.f32.xlu1 %v2034_v34  ;;  %v2031_v13 = vsel %vm910_vm3, %v7967_v49, 0.0  ;;  %v7999_v24 = vpop.permute.xlu1 %2236 }
 0x68f   :  { %2032 = vadd.xlane.f32.xlu0 %v2031_v13 }
 0x690   :  { %v7973_v25 = vpop.eup %6799 }
 0x691   :  { %v7975_v39 = vpop.eup %6801  ;;  %v2040_v19 = vsel %vm910_vm3, %v7973_v25, 0.0 }
 0x692   :  { %2041 = vadd.xlane.f32.xlu1 %v2040_v19  ;;  %v2037_v41 = vsel %vm910_vm3, %v7975_v39, 0.0  ;;  %v8005_v57 = vpop.permute.xlu1 %2330 }
 0x693   :  { %2038 = vadd.xlane.f32.xlu0 %v2037_v41 }
 0x694   :  { %v7981_v29 = vpop.eup %6803 }
 0x695   :  { %v7983_v9 = vpop.eup %6805  ;;  %v2046_v37 = vsel %vm910_vm3, %v7981_v29, 0.0 }
 0x696   :  { %2047 = vadd.xlane.f32.xlu1 %v2046_v37  ;;  %v2043_v3 = vsel %vm910_vm3, %v7983_v9, 0.0 }
 0x697   :  { %2044 = vadd.xlane.f32.xlu0 %v2043_v3 }
 0x698   :  { %v7989_v10 = vpop.eup %6807 }
 0x699   :  { %v2049_v20 = vsel %vm910_vm3, %v7989_v10, 0.0 }
 0x69b   :  { %2050 = vadd.xlane.f32.xlu0 %v2049_v20 }
 0x6a7   :  { %2605 = vrot.lane.b32.xlu1 %v7404_v16, %s7094_s18 }
 0x6b1   :  { %2554 = vrot.lane.b32.xlu0 %v7406_v31, %s7094_s18 }
 0x6b5   :  { %2552 = vrot.lane.b32.xlu0 %v7406_v31, %s7095_s19 }
 0x6b9   :  { %2603 = vrot.lane.b32.xlu0 %v7404_v16, %s7095_s19 }
 0x6bd   :  { %2654 = vrot.lane.b32.xlu0 %v7412_v40, %s7095_s19 }
 0x6c1   :  { %2705 = vrot.lane.b32.xlu0 %v7416_v43, %s7095_s19 }
 0x6c3   :  { %v1958_v60 = vpop.xlane.xlu1 %1957 }
 0x6c4   :  { %v1974_v30 = vsub.f32 %v7912_v4, %v1958_v60  ;;  %v8022_v4 = vpop.permute.xlu0 %2283 }
 0x6c5   :  { %2756 = vrot.lane.b32.xlu0 %v7420_v52, %s7095_s19 }
 0x6c6   :  { %v2005_v32 = vmul.f32 1.442695, %v1974_v30 }
 0x6c7   :  { %v8030_v22 = vpop.permute.xlu1 %2424 }
 0x6c8   :  { %6809 = vpow2.f32 %v2005_v32  ;;  %v8026_v18 = vpop.permute.xlu0 %2377 }
 0x6c9   :  { %2807 = vrot.lane.b32.xlu0 %v7422_v28, %s7095_s19 }
 0x6cc   :  { %v2009_v54 = vpop.xlane.xlu0 %2008 }
 0x6cd   :  { %2858 = vrot.lane.b32.xlu0 %v7430_v59, %s7095_s19  ;;  %6811 = vrcp.f32 %v2009_v54 }
 0x6d5   :  { %v8016_v27 = vpop.eup %6809 }
 0x6d6   :  { %v2052_v1 = vsel %vm910_vm3, %v8016_v27, 0.0 }
 0x6d7   :  { %2053 = vadd.xlane.f32.xlu1 %v2052_v1 }
 0x6da   :  { %v6812_v61 = vpop.eup %6811 }
 0x6db   :  { %v2071_v56 = vmul.f32 %v6812_v61, %v7914_v42 }
 0x6e8   :  { %2656 = vrot.lane.b32.xlu1 %v7412_v40, %s7094_s18 }
 0x6ec   :  { %2707 = vrot.lane.b32.xlu1 %v7416_v43, %s7094_s18 }
 0x6f0   :  { %2758 = vrot.lane.b32.xlu1 %v7420_v52, %s7094_s18 }
 0x6f4   :  { %2809 = vrot.lane.b32.xlu1 %v7422_v28, %s7094_s18 }
 0x6f8   :  { %v2012_v36 = vpop.xlane.xlu1 %2011  ;;  %2860 = vrot.lane.b32.xlu1 %v7430_v59, %s7094_s18 }
 0x6f9   :  { %6813 = vrcp.f32 %v2012_v36 }
 0x6fc   :  { %2911 = vrot.lane.b32.xlu1 %v7428_v58, %s7094_s18 }
 0x700   :  { %2909 = vrot.lane.b32.xlu1 %v7428_v58, %s7095_s19 }
 0x706   :  { %v6814_v2 = vpop.eup %6813 }
 0x707   :  { %v2015_v26 = vpop.xlane.xlu0 %2014  ;;  %v2072_v17 = vmul.f32 %v6814_v2, %v7922_v14 }
 0x708   :  { %6815 = vrcp.f32 %v2015_v26 }
 0x709   :  { %v2087_v44 = vpack.c.bf16 %v2072_v17, %v2071_v56 }
 0x70b   :  { %v2018_v51 = vpop.xlane.xlu1 %2017  ;;  %6340 = vmatmul.mubr.msk.bf16.vlgmr.msra.gmra.mxu0 %vm910_vm3, %v2087_v44 }
 0x70c   :  { %6817 = vrcp.f32 %v2018_v51  ;;  %6350 = vmatpush3.bf16.msra.mxu0 %v2190_v63  ;;  %6351 = vmatprep.mubr.msk.bf16.mxu0 %vm7088_vm1, %v9679_v15 }
 0x70d   :  { %6361 = vmatprep.subr.bf16.mxu0 %v9679_v15 }
 0x70f   :  { %v2024_v45 = vpop.xlane.xlu1 %2023  ;;  %v2021_v0 = vpop.xlane.xlu0 %2020 }
 0x710   :  { %6819 = vrcp.f32 %v2024_v45 }
 0x711   :  { %6821 = vrcp.f32 %v2021_v0 }
 0x713   :  { %v2030_v38 = vpop.xlane.xlu1 %2029 }
 0x714   :  { %6823 = vrcp.f32 %v2030_v38  ;;  %v2027_v42 = vpop.xlane.xlu0 %2026 }
 0x715   :  { %6825 = vrcp.f32 %v2027_v42  ;;  %v6816_v14 = vpop.eup %6815 }
 0x716   :  { %v2073_v53 = vmul.f32 %v6816_v14, %v7934_v48 }
 0x717   :  { %v2036_v5 = vpop.xlane.xlu1 %2035 }
 0x718   :  { %6827 = vrcp.f32 %v2036_v5  ;;  %v2033_v6 = vpop.xlane.xlu0 %2032 }
 0x719   :  { %v6818_v7 = vpop.eup %6817  ;;  %6829 = vrcp.f32 %v2033_v6 }
 0x71a   :  { %v2074_v21 = vmul.f32 %v6818_v7, %v7940_v55 }
 0x71b   :  { %v2042_v23 = vpop.xlane.xlu1 %2041 }
 0x71c   :  { %6831 = vrcp.f32 %v2042_v23  ;;  %v2039_v47 = vpop.xlane.xlu0 %2038  ;;  %v2088_v12 = vpack.c.bf16 %v2074_v21, %v2073_v53 }
 0x71d   :  { %v6820_v33 = vpop.eup %6819  ;;  %6833 = vrcp.f32 %v2039_v47 }
 0x71e   :  { %v6822_v34 = vpop.eup %6821  ;;  %6346 = vmatmul.mubr.msk.bf16.vlgmr.msra.gmra.mxu1 %vm910_vm3, %v2088_v12  ;;  %v2076_v13 = vmul.f32 %v6820_v33, %v7944_v50 }
 0x71f   :  { %6356 = vmatpush3.bf16.msra.mxu1 %v7999_v24  ;;  %v2048_v19 = vpop.xlane.xlu1 %2047  ;;  %v2075_v41 = vmul.f32 %v6822_v34, %v7948_v35  ;;  %6357 = vmatprep.mubr.msk.bf16.mxu1 %vm7088_vm1, %v9679_v15 }
 0x720   :  { %6835 = vrcp.f32 %v2048_v19  ;;  %v2045_v48 = vpop.xlane.xlu0 %2044  ;;  %6367 = vmatprep.subr.bf16.mxu1 %v9679_v15 }
 0x721   :  { %v6824_v55 = vpop.eup %6823  ;;  %6837 = vrcp.f32 %v2045_v48  ;;  %v2089_v37 = vpack.c.bf16 %v2076_v13, %v2075_v41 }
 0x722   :  { %v6826_v3 = vpop.eup %6825  ;;  %v2078_v20 = vmul.f32 %v6824_v55, %v7955_v46 }
 0x723   :  { %6352 = vmatmul.mubr.msk.bf16.vlgmr.msra.gmra.mxu0 %vm910_vm3, %v2089_v37  ;;  %v2077_v50 = vmul.f32 %v6826_v3, %v7958_v11 }
 0x724   :  { %6362 = vmatpush3.bf16.msra.mxu0 %v8022_v4  ;;  %6363 = vmatprep.mubr.msk.bf16.mxu0 %vm7088_vm1, %v9679_v15  ;;  %v2051_v1 = vpop.xlane.xlu0 %2050 }
 0x725   :  { %v6828_v35 = vpop.eup %6827  ;;  %v2090_v63 = vpack.c.bf16 %v2078_v20, %v2077_v50  ;;  %6373 = vmatprep.subr.bf16.mxu0 %v9679_v15  ;;  %6839 = vrcp.f32 %v2051_v1 }
 0x726   :  { %v6830_v24 = vpop.eup %6829  ;;  %v2080_v60 = vmul.f32 %v6828_v35, %v7964_v62 }
 0x727   :  { %6358 = vmatmul.mubr.msk.bf16.vlgmr.msra.gmra.mxu1 %vm910_vm3, %v2090_v63  ;;  %v2079_v46 = vmul.f32 %v6830_v24, %v7967_v49 }
 0x728   :  { %6368 = vmatpush3.bf16.msra.mxu1 %v8005_v57  ;;  %6369 = vmatprep.mubr.msk.bf16.mxu1 %vm7088_vm1, %v9679_v15  ;;  %v2555_v61 = vpop.permute.xlu0 %2554 }
 0x729   :  { %v6832_v11 = vpop.eup %6831  ;;  %v2091_v30 = vpack.c.bf16 %v2080_v60, %v2079_v46  ;;  %6379 = vmatprep.subr.bf16.mxu1 %v9679_v15 }
 0x72a   :  { %v6834_v32 = vpop.eup %6833  ;;  %v2082_v4 = vmul.f32 %v6832_v11, %v7973_v25 }
 0x72b   :  { %6364 = vmatmul.mubr.msk.bf16.vlgmr.msra.gmra.mxu0 %vm910_vm3, %v2091_v30  ;;  %v2081_v62 = vmul.f32 %v6834_v32, %v7975_v39 }
 0x72c   :  { %6374 = vmatpush3.bf16.msra.mxu0 %v8026_v18  ;;  %6375 = vmatprep.mubr.msk.bf16.mxu0 %vm7088_vm1, %v9679_v15  ;;  %v2560_v18 = vsel %vm496_vm2, %v2555_v61, 0 }
 0x72d   :  { %v6836_v49 = vpop.eup %6835  ;;  %v2092_v57 = vpack.c.bf16 %v2082_v4, %v2081_v62  ;;  %6385 = vmatprep.subr.bf16.mxu0 %v9679_v15 }
 0x72e   :  { %v6838_v54 = vpop.eup %6837  ;;  %v2084_v36 = vmul.f32 %v6836_v49, %v7981_v29  ;;  %v2553_v29 = vpop.permute.xlu0 %2552 }
 0x72f   :  { %6370 = vmatmul.mubr.msk.bf16.vlgmr.msra.gmra.mxu1 %vm910_vm3, %v2092_v57  ;;  %v2083_v25 = vmul.f32 %v6838_v54, %v7983_v9  ;;  %v2606_v9 = vpop.permute.xlu1 %2605 }
 0x730   :  { %6380 = vmatpush3.bf16.msra.mxu1 %v8030_v22  ;;  %6381 = vmatprep.mubr.msk.bf16.mxu1 %vm7088_vm1, %v9679_v15  ;;  %v2611_v21 = vsel %vm496_vm2, %v2606_v9, 0 }
 0x731   :  { %v2093_v39 = vpack.c.bf16 %v2084_v36, %v2083_v25  ;;  %6391 = vmatprep.subr.bf16.mxu1 %v9679_v15 }
 0x732   :  { %v2604_v22 = vpop.permute.xlu0 %2603  ;;  %v6840_v45 = vpop.eup %6839 }
 0x733   :  { %6376 = vmatmul.mubr.msk.bf16.vlgmr.msra.gmra.mxu0 %vm910_vm3, %v2093_v39  ;;  %v2085_v14 = vmul.f32 %v6840_v45, %v7989_v10 }
 0x734   :  { %6386 = vmatpush3.bf16.xpose.msra.mxu0 %v2560_v18  ;;  %6387 = vmatprep.mubr.msk.bf16.mxu0 %vm7088_vm1, %v9679_v15 }
 0x735   :  { %6397 = vmatprep.subr.bf16.mxu0 %v9679_v15 }
 0x736   :  { %v2655_v26 = vpop.permute.xlu0 %2654 }
 0x73a   :  { %v2706_v51 = vpop.permute.xlu0 %2705 }
 0x73b   :  { %6388 = vmatmul.mubr.msk.bf16.vlgmr.msra.gmra.mxu0 %vm496_vm2, %v2553_v29 }
 0x73c   :  { %6399 = vmatprep.mubr.msk.bf16.mxu0 %vm7088_vm1, %v9679_v15 }
 0x73e   :  { %v2757_v6 = vpop.permute.xlu0 %2756 }
 0x742   :  { %v2808_v10 = vpop.permute.xlu0 %2807 }
 0x746   :  { %v2859_v12 = vpop.permute.xlu0 %2858 }
 0x760   :  { %v2054_v2 = vpop.xlane.xlu1 %2053 }
 0x761   :  { %6841 = vrcp.f32 %v2054_v2 }
 0x764   :  { %v2657_v56 = vpop.permute.xlu1 %2656 }
 0x765   :  { %v2662_v17 = vsel %vm496_vm2, %v2657_v56, 0 }
 0x766   :  { %6398 = vmatpush3.bf16.xpose.msra.mxu0 %v2662_v17  ;;  %v470_v17 = vld [vmem:[%s9676_s1 + $0x88] sm:$0xff] }
 0x767   :  { %6409 = vmatprep.subr.bf16.mxu0 %v9679_v15 }
 0x768   :  { %v2708_v44 = vpop.permute.xlu1 %2707 }
 0x76c   :  { %v2759_v0 = vpop.permute.xlu1 %2758 }
 0x76d   :  { %v2764_v38 = vsel %vm496_vm2, %v2759_v0, 0  ;;  %6400 = vmatmul.mubr.msk.bf16.vlgmr.msra.gmra.mxu0 %vm496_vm2, %v2655_v26 }
 0x76e   :  { %v6842_v42 = vpop.eup %6841  ;;  %6410 = vmatpush3.bf16.xpose.msra.mxu0 %v2764_v38  ;;  %6411 = vmatprep.mubr.msk.bf16.mxu0 %vm7088_vm1, %v9679_v15 }
 0x76f   :  { %v2086_v5 = vmul.f32 %v6842_v42, %v8016_v27  ;;  %6421 = vmatprep.subr.bf16.mxu0 %v9679_v15  ;;  %v2713_v27 = vsel %vm496_vm2, %v2708_v44, 0 }
 0x770   :  { %v2810_v7 = vpop.permute.xlu1 %2809 }
 0x771   :  { %v2094_v53 = vpack.c.bf16 %v2086_v5, %v2085_v14  ;;  %v2815_v33 = vsel %vm496_vm2, %v2810_v7, 0  ;;  %v474_v5 = vld [vmem:[%s9676_s1 + $0xa8] sm:$0xff] }
 0x773   :  { %6382 = vmatmul.mubr.msk.bf16.vlgmr.msra.gmra.mxu1 %vm910_vm3, %v2094_v53 }
 0x774   :  { %6392 = vmatpush3.bf16.xpose.msra.mxu1 %v2611_v21  ;;  %v2861_v23 = vpop.permute.xlu1 %2860  ;;  %6393 = vmatprep.mubr.msk.bf16.mxu1 %vm7088_vm1, %v9679_v15 }
 0x775   :  { %v2866_v47 = vsel %vm496_vm2, %v2861_v23, 0  ;;  %6412 = vmatmul.mubr.msk.bf16.vlgmr.msra.gmra.mxu0 %vm496_vm2, %v2757_v6  ;;  %6403 = vmatprep.subr.bf16.mxu1 %v9679_v15 }
 0x776   :  { %6422 = vmatpush3.bf16.xpose.msra.mxu0 %v2866_v47  ;;  %6423 = vmatprep.mubr.msk.bf16.mxu0 %vm7088_vm1, %v9679_v15 }
 0x777   :  { %6433 = vmatprep.subr.bf16.mxu0 %v9679_v15 }
 0x778   :  { %v2912_v34 = vpop.permute.xlu1 %2911 }
 0x779   :  { %v2917_v13 = vsel %vm496_vm2, %v2912_v34, 0 }
 0x77b   :  { %6394 = vmatmul.mubr.msk.bf16.vlgmr.msra.gmra.mxu1 %vm496_vm2, %v2604_v22  ;;  %v469_v22 = vld [vmem:[%s9676_s1 + $0x80] sm:$0xff] }
 0x77c   :  { %6404 = vmatpush3.bf16.xpose.msra.mxu1 %v2713_v27  ;;  %6405 = vmatprep.mubr.msk.bf16.mxu1 %vm7088_vm1, %v9679_v15  ;;  %v2910_v19 = vpop.permute.xlu1 %2909 }
 0x77d   :  { %6424 = vmatmul.mubr.msk.bf16.vlgmr.msra.gmra.mxu0 %vm496_vm2, %v2859_v12  ;;  %6415 = vmatprep.subr.bf16.mxu1 %v9679_v15 }
 0x77e   :  { %6435 = vmatprep.mubr.msk.bf16.mxu0 %vm7088_vm1, %v9679_v15 }
 0x783   :  { %6406 = vmatmul.mubr.msk.bf16.vlgmr.msra.gmra.mxu1 %vm496_vm2, %v2706_v51 }
 0x784   :  { %6416 = vmatpush3.bf16.xpose.msra.mxu1 %v2815_v33  ;;  %6417 = vmatprep.mubr.msk.bf16.mxu1 %vm7088_vm1, %v9679_v15 }
 0x785   :  { %6427 = vmatprep.subr.bf16.mxu1 %v9679_v15 }
 0x78b   :  { %6418 = vmatmul.mubr.msk.bf16.vlgmr.msra.gmra.mxu1 %vm496_vm2, %v2808_v10 }
 0x78c   :  { %6428 = vmatpush3.bf16.xpose.msra.mxu1 %v2917_v13  ;;  %6429 = vmatprep.mubr.msk.bf16.mxu1 %vm7088_vm1, %v9679_v15  ;;  %v471_v13 = vld [vmem:[%s9676_s1 + $0x90] sm:$0xff] }
 0x78d   :  { %6439 = vmatprep.subr.bf16.mxu1 %v9679_v15 }
 0x793   :  { %6430 = vmatmul.mubr.msk.bf16.vlgmr.msra.gmra.mxu1 %vm496_vm2, %v2910_v19 }
 0x794   :  { %6441 = vmatprep.mubr.msk.bf16.mxu1 %vm7088_vm1, %v9679_v15 }
 0x7cb   :  { %v8131_v41 = vpop.f32.mrf.mxu0 }
 0x7cd   :  { %v6341_v48 = vpop.f32.mrf.mxu0 }
 0x7cf   :  { %v8133_v55 = vpop.f32.mrf.mxu0 }
 0x7d1   :  { %v6342_v37 = vpop.f32.mrf.mxu0 }
 0x7de   :  { %v8135_v3 = vpop.f32.mrf.mxu1 }
 0x7e0   :  { %v6347_v20 = vpop.f32.mrf.mxu1 }
 0x7e2   :  { %v8137_v50 = vpop.f32.mrf.mxu1 }
 0x7e3   :  { %v8139_v35 = vpop.f32.mrf.mxu0 }
 0x7e4   :  { %v6348_v63 = vpop.f32.mrf.mxu1 }
 0x7e5   :  { %v6353_v24 = vpop.f32.mrf.mxu0 }
 0x7e6   :  { %v472_v24 = vld [vmem:[%s9676_s1 + $0x98] sm:$0xff] }
 0x7e7   :  { %v8141_v60 = vpop.f32.mrf.mxu0  ;;  %v8143_v46 = vpop.f32.mrf.mxu1 }
 0x7e9   :  { %v6354_v11 = vpop.f32.mrf.mxu0  ;;  %v6359_v30 = vpop.f32.mrf.mxu1 }
 0x7ea   :  { %v473_v30 = vld [vmem:[%s9676_s1 + $0xa0] sm:$0xff] }
 0x7eb   :  { %v8145_v32 = vpop.f32.mrf.mxu1  ;;  %v8147_v1 = vpop.f32.mrf.mxu0 }
 0x7ed   :  { %v6360_v4 = vpop.f32.mrf.mxu1  ;;  %v6365_v62 = vpop.f32.mrf.mxu0 }
 0x7ef   :  { %v8149_v49 = vpop.f32.mrf.mxu0  ;;  %v8151_v57 = vpop.f32.mrf.mxu1 }
 0x7f1   :  { %v6366_v54 = vpop.f32.mrf.mxu0  ;;  %v6371_v36 = vpop.f32.mrf.mxu1 }
 0x7f3   :  { %v8153_v25 = vpop.f32.mrf.mxu1  ;;  %v8155_v61 = vpop.f32.mrf.mxu0 }
 0x7f5   :  { %v6372_v39 = vpop.f32.mrf.mxu1  ;;  %v6377_v18 = vpop.f32.mrf.mxu0 }
 0x7f7   :  { %v8157_v29 = vpop.f32.mrf.mxu0 }
 0x7f8   :  { %9697 = vst [vmem:[#allocation4_spill] sm:$0xff] %v8157_v29 }
 0x7f9   :  { %v6378_v9 = vpop.f32.mrf.mxu0 }
 0x7fb   :  { %v2596_v2 = vpop.f32.mrf.mxu0 }
 0x7fc   :  { %v8162_v26 = vadd.f32 %v2596_v2, %v469_v22  ;;  %v475_v2 = vld [vmem:[%s9676_s1 + $0xb0] sm:$0xff] }
 0x7fd   :  { %v6389_v56 = vpop.f32.mrf.mxu0 }
 0x7fe   :  { %v2976_v44 = vsel %vm910_vm3, %v8162_v26, -inf }
 0x7ff   :  { %2977 = vmax.xlane.f32.xlu0 %v2976_v44  ;;  %v2599_v51 = vpop.f32.mrf.mxu0 }
 0x800   :  { %v8169_v45 = vadd.f32 %v2599_v51, %v470_v17 }
 0x801   :  { %v6390_v0 = vpop.f32.mrf.mxu0 }
 0x802   :  { %v2979_v38 = vsel %vm910_vm3, %v8169_v45, -inf  ;;  %v476_v0 = vld [vmem:[%s9676_s1 + $0xb8] sm:$0xff] }
 0x803   :  { %2980 = vmax.xlane.f32.xlu1 %v2979_v38 }
 0x82d   :  { %v2698_v42 = vpop.f32.mrf.mxu0 }
 0x82e   :  { %v8199_v18 = vadd.f32 %v2698_v42, %v473_v30 }
 0x82f   :  { %v6401_v14 = vpop.f32.mrf.mxu0 }
 0x830   :  { %v2988_v42 = vsel %vm910_vm3, %v8199_v18, -inf }
 0x831   :  { %v2701_v6 = vpop.f32.mrf.mxu0 }
 0x832   :  { %v8176_v7 = vadd.f32 %v2701_v6, %v474_v5 }
 0x833   :  { %v8178_v53 = vpop.f32.mrf.mxu1  ;;  %v6402_v21 = vpop.f32.mrf.mxu0 }
 0x834   :  { %v2991_v23 = vsel %vm910_vm3, %v8176_v7, -inf }
 0x835   :  { %v6383_v47 = vpop.f32.mrf.mxu1  ;;  %2992 = vmax.xlane.f32.xlu1 %v2991_v23  ;;  %v2800_v10 = vpop.f32.mrf.mxu0 }
 0x836   :  { %v8215_v23 = vadd.f32 %v2800_v10, %v469_v22 }
 0x837   :  { %v8182_v27 = vpop.f32.mrf.mxu1  ;;  %v6413_v12 = vpop.f32.mrf.mxu0 }
 0x838   :  { %9698 = vst [vmem:[#allocation5_spill] sm:$0xff] %v8182_v27 }
 0x839   :  { %v6384_v33 = vpop.f32.mrf.mxu1  ;;  %v2803_v34 = vpop.f32.mrf.mxu0 }
 0x83a   :  { %v8217_v47 = vadd.f32 %v2803_v34, %v470_v17 }
 0x83b   :  { %v2647_v19 = vpop.f32.mrf.mxu1  ;;  %v6414_v48 = vpop.f32.mrf.mxu0 }
 0x83c   :  { %v8187_v37 = vadd.f32 %v2647_v19, %v471_v13  ;;  %v3003_v22 = vsel %vm910_vm3, %v8217_v47, -inf }
 0x83d   :  { %v6395_v20 = vpop.f32.mrf.mxu1  ;;  %v2902_v63 = vpop.f32.mrf.mxu0 }
 0x83e   :  { %v2982_v11 = vsel %vm910_vm3, %v8187_v37, -inf }
 0x83f   :  { %2983 = vmax.xlane.f32.xlu0 %v2982_v11  ;;  %v2650_v4 = vpop.f32.mrf.mxu1  ;;  %v6425_v62 = vpop.f32.mrf.mxu0  ;;  %v3000_v11 = vsel %vm910_vm3, %v8215_v23, -inf }
 0x840   :  { %v8197_v54 = vadd.f32 %v2650_v4, %v472_v24  ;;  %v8231_v4 = vadd.f32 %v2902_v63, %v473_v30 }
 0x841   :  { %v6396_v36 = vpop.f32.mrf.mxu1  ;;  %v2905_v39 = vpop.f32.mrf.mxu0 }
 0x842   :  { %v2985_v9 = vsel %vm910_vm3, %v8197_v54, -inf  ;;  %v8233_v62 = vadd.f32 %v2905_v39, %v474_v5 }
 0x843   :  { %2986 = vmax.xlane.f32.xlu0 %v2985_v9  ;;  %v2749_v56 = vpop.f32.mrf.mxu1  ;;  %v6426_v44 = vpop.f32.mrf.mxu0 }
 0x844   :  { %v8209_v38 = vadd.f32 %v2749_v56, %v475_v2  ;;  %v3015_v63 = vsel %vm910_vm3, %v8233_v62, -inf }
 0x845   :  { %v6407_v51 = vpop.f32.mrf.mxu1 }
 0x846   :  { %v2994_v12 = vsel %vm910_vm3, %v8209_v38, -inf }
 0x847   :  { %2989 = vmax.xlane.f32.xlu0 %v2988_v42  ;;  %v2752_v14 = vpop.f32.mrf.mxu1 }
 0x848   :  { %v8213_v6 = vadd.f32 %v2752_v14, %v476_v0 }
 0x849   :  { %v6408_v21 = vpop.f32.mrf.mxu1 }
 0x84a   :  { %v2997_v33 = vsel %vm910_vm3, %v8213_v6, -inf }
 0x84b   :  { %2995 = vmax.xlane.f32.xlu0 %v2994_v12  ;;  %2998 = vmax.xlane.f32.xlu1 %v2997_v33  ;;  %v2851_v19 = vpop.f32.mrf.mxu1 }
 0x84c   :  { %v8223_v20 = vadd.f32 %v2851_v19, %v471_v13 }
 0x84d   :  { %v6419_v48 = vpop.f32.mrf.mxu1 }
 0x84e   :  { %v3006_v13 = vsel %vm910_vm3, %v8223_v20, -inf }
 0x84f   :  { %3001 = vmax.xlane.f32.xlu0 %v3000_v11  ;;  %3004 = vmax.xlane.f32.xlu1 %v3003_v22  ;;  %v2854_v17 = vpop.f32.mrf.mxu1 }
 0x850   :  { %v8229_v10 = vadd.f32 %v2854_v17, %v472_v24  ;;  %v3012_v24 = vsel %vm910_vm3, %v8231_v4, -inf }
 0x851   :  { %v6420_v34 = vpop.f32.mrf.mxu1 }
 0x852   :  { %v3009_v36 = vsel %vm910_vm3, %v8229_v10, -inf }
 0x853   :  { %3007 = vmax.xlane.f32.xlu0 %v3006_v13  ;;  %3010 = vmax.xlane.f32.xlu1 %v3009_v36  ;;  %v2953_v9 = vpop.f32.mrf.mxu1 }
 0x854   :  { %v8239_v44 = vadd.f32 %v2953_v9, %v475_v2 }
 0x855   :  { %v6431_v56 = vpop.f32.mrf.mxu1 }
 0x856   :  { %v3018_v39 = vsel %vm910_vm3, %v8239_v44, -inf }
 0x857   :  { %v2956_v5 = vpop.f32.mrf.mxu1  ;;  %3013 = vmax.xlane.f32.xlu0 %v3012_v24  ;;  %3016 = vmax.xlane.f32.xlu1 %v3015_v63 }
 0x858   :  { %v8255_v14 = vadd.f32 %v2956_v5, %v476_v0 }
 0x859   :  { %v6432_v30 = vpop.f32.mrf.mxu1 }
 0x85a   :  { %v3021_v21 = vsel %vm910_vm3, %v8255_v14, -inf }
 0x85b   :  { %3019 = vmax.xlane.f32.xlu0 %v3018_v39 }
 0x868   :  { %3207 = vrot.lane.b32.xlu1 %v7404_v16, %s7096_s11 }
 0x86c   :  { %3254 = vrot.lane.b32.xlu1 %v7412_v40, %s7096_s11 }
 0x870   :  { %3301 = vrot.lane.b32.xlu1 %v7416_v43, %s7096_s11 }
 0x871   :  { %3160 = vrot.lane.b32.xlu0 %v7406_v31, %s7096_s11 }
 0x874   :  { %3395 = vrot.lane.b32.xlu1 %v7422_v28, %s7096_s11 }
 0x875   :  { %3348 = vrot.lane.b32.xlu0 %v7420_v52, %s7096_s11 }
 0x879   :  { %3442 = vrot.lane.b32.xlu0 %v7430_v59, %s7096_s11 }
 0x888   :  { %v2978_v2 = vpop.xlane.xlu0 %2977 }
 0x889   :  { %v3024_v51 = vsub.f32 %v8162_v26, %v2978_v2 }
 0x88b   :  { %v3040_v42 = vmul.f32 1.442695, %v3024_v51 }
 0x88c   :  { %v2981_v19 = vpop.xlane.xlu1 %2980 }
 0x88d   :  { %6843 = vpow2.f32 %v3040_v42  ;;  %v3025_v48 = vsub.f32 %v8169_v45, %v2981_v19 }
 0x88f   :  { %v3042_v26 = vmul.f32 1.442695, %v3025_v48 }
 0x891   :  { %6845 = vpow2.f32 %v3042_v26 }
 0x898   :  { %3022 = vmax.xlane.f32.xlu1 %v3021_v21 }
 0x89a   :  { %v8259_v12 = vpop.eup %6843 }
 0x89b   :  { %v3072_v33 = vsel %vm910_vm3, %v8259_v12, 0.0 }
 0x89c   :  { %3073 = vadd.xlane.f32.xlu0 %v3072_v33 }
 0x89e   :  { %v8265_v22 = vpop.eup %6845 }
 0x89f   :  { %v3075_v9 = vsel %vm910_vm3, %v8265_v22, 0.0 }
 0x8a9   :  { %3489 = vrot.lane.b32.xlu1 %v7428_v58, %s7096_s11 }
 0x8be   :  { %v2993_v11 = vpop.xlane.xlu1 %2992 }
 0x8bf   :  { %v3029_v34 = vsub.f32 %v8176_v7, %v2993_v11 }
 0x8c1   :  { %v3050_v45 = vmul.f32 1.442695, %v3029_v34 }
 0x8c8   :  { %v2984_v0 = vpop.xlane.xlu0 %2983 }
 0x8c9   :  { %v3026_v17 = vsub.f32 %v8187_v37, %v2984_v0 }
 0x8cb   :  { %v3044_v13 = vmul.f32 1.442695, %v3026_v17 }
 0x8cc   :  { %v2987_v36 = vpop.xlane.xlu0 %2986 }
 0x8cd   :  { %6847 = vpow2.f32 %v3044_v13  ;;  %v3027_v56 = vsub.f32 %v8197_v54, %v2987_v36  ;;  %3076 = vadd.xlane.f32.xlu1 %v3075_v9 }
 0x8cf   :  { %v3046_v24 = vmul.f32 1.442695, %v3027_v56 }
 0x8d0   :  { %v2990_v63 = vpop.xlane.xlu0 %2989 }
 0x8d1   :  { %6849 = vpow2.f32 %v3046_v24  ;;  %v3028_v5 = vsub.f32 %v8199_v18, %v2990_v63 }
 0x8d2   :  { %6851 = vpow2.f32 %v3050_v45 }
 0x8d3   :  { %v3048_v30 = vmul.f32 1.442695, %v3028_v5 }
 0x8d4   :  { %v2999_v37 = vpop.xlane.xlu1 %2998  ;;  %v2996_v39 = vpop.xlane.xlu0 %2995 }
 0x8d5   :  { %6853 = vpow2.f32 %v3048_v30  ;;  %v3031_v7 = vsub.f32 %v8213_v6, %v2999_v37  ;;  %v3030_v2 = vsub.f32 %v8209_v38, %v2996_v39 }
 0x8d7   :  { %v3054_v51 = vmul.f32 1.442695, %v3031_v7  ;;  %v3052_v42 = vmul.f32 1.442695, %v3030_v2 }
 0x8d8   :  { %v3005_v21 = vpop.xlane.xlu1 %3004  ;;  %v3002_v54 = vpop.xlane.xlu0 %3001 }
 0x8d9   :  { %6855 = vpow2.f32 %v3054_v51  ;;  %v3033_v33 = vsub.f32 %v8217_v47, %v3005_v21  ;;  %v3032_v19 = vsub.f32 %v8215_v23, %v3002_v54 }
 0x8da   :  { %v8277_v48 = vpop.eup %6847  ;;  %6857 = vpow2.f32 %v3052_v42 }
 0x8db   :  { %v3058_v18 = vmul.f32 1.442695, %v3033_v33  ;;  %v3056_v26 = vmul.f32 1.442695, %v3032_v19  ;;  %v3078_v11 = vsel %vm910_vm3, %v8277_v48, 0.0 }
 0x8dc   :  { %v3011_v6 = vpop.xlane.xlu1 %3010  ;;  %3079 = vadd.xlane.f32.xlu0 %v3078_v11  ;;  %v3008_v38 = vpop.xlane.xlu0 %3007 }
 0x8dd   :  { %6859 = vpow2.f32 %v3058_v18  ;;  %v3035_v0 = vsub.f32 %v8229_v10, %v3011_v6  ;;  %v3034_v17 = vsub.f32 %v8223_v20, %v3008_v38 }
 0x8de   :  { %v8283_v34 = vpop.eup %6849  ;;  %6861 = vpow2.f32 %v3056_v26 }
 0x8df   :  { %v3062_v23 = vmul.f32 1.442695, %v3035_v0  ;;  %v3060_v47 = vmul.f32 1.442695, %v3034_v17  ;;  %v3081_v13 = vsel %vm910_vm3, %v8283_v34, 0.0  ;;  %v8287_v36 = vpop.eup %6851 }
 0x8e0   :  { %v3017_v9 = vpop.xlane.xlu1 %3016  ;;  %3082 = vadd.xlane.f32.xlu1 %v3081_v13  ;;  %v3014_v56 = vpop.xlane.xlu0 %3013  ;;  %v3087_v5 = vsel %vm910_vm3, %v8287_v36, 0.0 }
 0x8e1   :  { %6863 = vpow2.f32 %v3062_v23  ;;  %v3037_v45 = vsub.f32 %v8233_v62, %v3017_v9  ;;  %v3036_v10 = vsub.f32 %v8231_v4, %v3014_v56 }
 0x8e2   :  { %v8291_v24 = vpop.eup %6853  ;;  %6865 = vpow2.f32 %v3060_v47 }
 0x8e3   :  { %v3066_v20 = vmul.f32 1.442695, %v3037_v45  ;;  %v3064_v63 = vmul.f32 1.442695, %v3036_v10  ;;  %v3084_v30 = vsel %vm910_vm3, %v8291_v24, 0.0 }
 0x8e4   :  { %v3208_v37 = vpop.permute.xlu1 %3207  ;;  %3088 = vadd.xlane.f32.xlu1 %v3087_v5  ;;  %3085 = vadd.xlane.f32.xlu0 %v3084_v30  ;;  %v3020_v39 = vpop.xlane.xlu0 %3019 }
 0x8e5   :  { %6867 = vpow2.f32 %v3066_v20  ;;  %v3038_v62 = vsub.f32 %v8239_v44, %v3020_v39  ;;  %6440 = vmatpush3.bf16.msra.mxu1 %v3208_v37 }
 0x8e6   :  { %v8298_v4 = vpop.eup %6855  ;;  %6869 = vpow2.f32 %v3064_v63  ;;  %6451 = vmatprep.subr.bf16.mxu1 %v9679_v15 }
 0x8e7   :  { %v8301_v7 = vpop.eup %6857  ;;  %v3068_v2 = vmul.f32 1.442695, %v3038_v62  ;;  %v3093_v51 = vsel %vm910_vm3, %v8298_v4, 0.0 }
 0x8e8   :  { %3094 = vadd.xlane.f32.xlu1 %v3093_v51  ;;  %v3090_v42 = vsel %vm910_vm3, %v8301_v7, 0.0  ;;  %v3161_v21 = vpop.permute.xlu0 %3160  ;;  %v3255_v9 = vpop.permute.xlu1 %3254 }
 0x8e9   :  { %6871 = vpow2.f32 %v3068_v2  ;;  %3091 = vadd.xlane.f32.xlu0 %v3090_v42  ;;  %6434 = vmatpush3.bf16.msra.mxu0 %v3161_v21 }
 0x8ea   :  { %v8307_v44 = vpop.eup %6859  ;;  %6445 = vmatprep.subr.bf16.mxu0 %v9679_v15 }
 0x8eb   :  { %v8310_v54 = vpop.eup %6861  ;;  %v3099_v33 = vsel %vm910_vm3, %v8307_v44, 0.0 }
 0x8ec   :  { %3100 = vadd.xlane.f32.xlu1 %v3099_v33  ;;  %v3096_v19 = vsel %vm910_vm3, %v8310_v54, 0.0  ;;  %v8342_v56 = vpop.permute.xlu1 %3301 }
 0x8ed   :  { %3097 = vadd.xlane.f32.xlu0 %v3096_v19 }
 0x8ee   :  { %v8316_v18 = vpop.eup %6863 }
 0x8ef   :  { %v8318_v26 = vpop.eup %6865  ;;  %v3105_v11 = vsel %vm910_vm3, %v8316_v18, 0.0 }
 0x8f0   :  { %3106 = vadd.xlane.f32.xlu1 %v3105_v11  ;;  %v3102_v6 = vsel %vm910_vm3, %v8318_v26, 0.0  ;;  %v8348_v45 = vpop.permute.xlu1 %3395 }
 0x8f1   :  { %3103 = vadd.xlane.f32.xlu0 %v3102_v6 }
 0x8f2   :  { %v8324_v38 = vpop.eup %6867 }
 0x8f3   :  { %v8326_v0 = vpop.eup %6869  ;;  %v3111_v17 = vsel %vm910_vm3, %v8324_v38, 0.0 }
 0x8f4   :  { %3112 = vadd.xlane.f32.xlu1 %v3111_v17  ;;  %v3108_v23 = vsel %vm910_vm3, %v8326_v0, 0.0 }
 0x8f5   :  { %3109 = vadd.xlane.f32.xlu0 %v3108_v23 }
 0x8f6   :  { %v8332_v47 = vpop.eup %6871 }
 0x8f7   :  { %v3114_v13 = vsel %vm910_vm3, %v8332_v47, 0.0 }
 0x8f9   :  { %3115 = vadd.xlane.f32.xlu0 %v3114_v13 }
 0x905   :  { %3670 = vrot.lane.b32.xlu1 %v7404_v16, %s7097_s12 }
 0x90f   :  { %3619 = vrot.lane.b32.xlu0 %v7406_v31, %s7097_s12 }
 0x913   :  { %3617 = vrot.lane.b32.xlu0 %v7406_v31, %s7098_s13 }
 0x917   :  { %3668 = vrot.lane.b32.xlu0 %v7404_v16, %s7098_s13 }
 0x91b   :  { %3719 = vrot.lane.b32.xlu0 %v7412_v40, %s7098_s13 }
 0x91f   :  { %3770 = vrot.lane.b32.xlu0 %v7416_v43, %s7098_s13 }
 0x921   :  { %v3023_v10 = vpop.xlane.xlu1 %3022 }
 0x922   :  { %v3039_v20 = vsub.f32 %v8255_v14, %v3023_v10  ;;  %v8365_v14 = vpop.permute.xlu0 %3348 }
 0x923   :  { %3821 = vrot.lane.b32.xlu0 %v7420_v52, %s7098_s13 }
 0x924   :  { %v3070_v63 = vmul.f32 1.442695, %v3039_v20 }
 0x925   :  { %v8373_v62 = vpop.permute.xlu1 %3489 }
 0x926   :  { %6873 = vpow2.f32 %v3070_v63  ;;  %v8369_v37 = vpop.permute.xlu0 %3442 }
 0x927   :  { %3872 = vrot.lane.b32.xlu0 %v7422_v28, %s7098_s13 }
 0x92a   :  { %v3074_v39 = vpop.xlane.xlu0 %3073 }
 0x92b   :  { %3923 = vrot.lane.b32.xlu0 %v7430_v59, %s7098_s13  ;;  %6875 = vrcp.f32 %v3074_v39 }
 0x933   :  { %v8359_v5 = vpop.eup %6873 }
 0x934   :  { %v3117_v30 = vsel %vm910_vm3, %v8359_v5, 0.0 }
 0x935   :  { %3118 = vadd.xlane.f32.xlu1 %v3117_v30 }
 0x938   :  { %v6876_v51 = vpop.eup %6875 }
 0x939   :  { %v3136_v33 = vmul.f32 %v6876_v51, %v8259_v12 }
 0x946   :  { %3721 = vrot.lane.b32.xlu1 %v7412_v40, %s7097_s12 }
 0x94a   :  { %3772 = vrot.lane.b32.xlu1 %v7416_v43, %s7097_s12 }
 0x94e   :  { %3823 = vrot.lane.b32.xlu1 %v7420_v52, %s7097_s12 }
 0x952   :  { %3874 = vrot.lane.b32.xlu1 %v7422_v28, %s7097_s12 }
 0x956   :  { %v3077_v2 = vpop.xlane.xlu1 %3076  ;;  %3925 = vrot.lane.b32.xlu1 %v7430_v59, %s7097_s12 }
 0x957   :  { %6877 = vrcp.f32 %v3077_v2 }
 0x95a   :  { %3976 = vrot.lane.b32.xlu1 %v7428_v58, %s7097_s12  ;;  %s7103_s12 = smov 24  }
 0x95e   :  { %3974 = vrot.lane.b32.xlu1 %v7428_v58, %s7098_s13 }
 0x964   :  { %v6878_v42 = vpop.eup %6877 }
 0x965   :  { %v3080_v21 = vpop.xlane.xlu0 %3079  ;;  %v3137_v19 = vmul.f32 %v6878_v42, %v8265_v22 }
 0x966   :  { %6879 = vrcp.f32 %v3080_v21 }
 0x967   :  { %v3152_v11 = vpack.c.bf16 %v3137_v19, %v3136_v33 }
 0x969   :  { %v3083_v6 = vpop.xlane.xlu1 %3082  ;;  %6436 = vmatmul.mubr.msk.bf16.vlgmr.msra.gmra.mxu0 %vm910_vm3, %v3152_v11 }
 0x96a   :  { %6881 = vrcp.f32 %v3083_v6  ;;  %6446 = vmatpush3.bf16.msra.mxu0 %v3255_v9  ;;  %6447 = vmatprep.mubr.msk.bf16.mxu0 %vm7088_vm1, %v9679_v15 }
 0x96b   :  { %6457 = vmatprep.subr.bf16.mxu0 %v9679_v15 }
 0x96d   :  { %v3089_v17 = vpop.xlane.xlu1 %3088  ;;  %v3086_v23 = vpop.xlane.xlu0 %3085 }
 0x96e   :  { %6883 = vrcp.f32 %v3089_v17 }
 0x96f   :  { %6885 = vrcp.f32 %v3086_v23 }
 0x971   :  { %v3095_v13 = vpop.xlane.xlu1 %3094 }
 0x972   :  { %6887 = vrcp.f32 %v3095_v13  ;;  %v3092_v12 = vpop.xlane.xlu0 %3091 }
 0x973   :  { %6889 = vrcp.f32 %v3092_v12  ;;  %v6880_v22 = vpop.eup %6879 }
 0x974   :  { %v3138_v9 = vmul.f32 %v6880_v22, %v8277_v48 }
 0x975   :  { %v3101_v10 = vpop.xlane.xlu1 %3100 }
 0x976   :  { %6891 = vrcp.f32 %v3101_v10  ;;  %v3098_v20 = vpop.xlane.xlu0 %3097 }
 0x977   :  { %v6882_v63 = vpop.eup %6881  ;;  %6893 = vrcp.f32 %v3098_v20 }
 0x978   :  { %v3139_v30 = vmul.f32 %v6882_v63, %v8283_v34 }
 0x979   :  { %v3107_v39 = vpop.xlane.xlu1 %3106 }
 0x97a   :  { %6895 = vrcp.f32 %v3107_v39  ;;  %v3104_v2 = vpop.xlane.xlu0 %3103  ;;  %v3153_v51 = vpack.c.bf16 %v3139_v30, %v3138_v9 }
 0x97b   :  { %v6884_v42 = vpop.eup %6883  ;;  %6897 = vrcp.f32 %v3104_v2 }
 0x97c   :  { %v6886_v21 = vpop.eup %6885  ;;  %6442 = vmatmul.mubr.msk.bf16.vlgmr.msra.gmra.mxu1 %vm910_vm3, %v3153_v51  ;;  %v3141_v33 = vmul.f32 %v6884_v42, %v8287_v36 }
 0x97d   :  { %6452 = vmatpush3.bf16.msra.mxu1 %v8342_v56  ;;  %v3113_v19 = vpop.xlane.xlu1 %3112  ;;  %v3140_v11 = vmul.f32 %v6886_v21, %v8291_v24  ;;  %6453 = vmatprep.mubr.msk.bf16.mxu1 %vm7088_vm1, %v9679_v15 }
 0x97e   :  { %6899 = vrcp.f32 %v3113_v19  ;;  %v3110_v48 = vpop.xlane.xlu0 %3109  ;;  %6463 = vmatprep.subr.bf16.mxu1 %v9679_v15 }
 0x97f   :  { %v6888_v34 = vpop.eup %6887  ;;  %6901 = vrcp.f32 %v3110_v48  ;;  %v3154_v6 = vpack.c.bf16 %v3141_v33, %v3140_v11 }
 0x980   :  { %v6890_v17 = vpop.eup %6889  ;;  %v3143_v23 = vmul.f32 %v6888_v34, %v8298_v4 }
 0x981   :  { %6448 = vmatmul.mubr.msk.bf16.vlgmr.msra.gmra.mxu0 %vm910_vm3, %v3154_v6  ;;  %v3142_v36 = vmul.f32 %v6890_v17, %v8301_v7 }
 0x982   :  { %6458 = vmatpush3.bf16.msra.mxu0 %v8365_v14  ;;  %6459 = vmatprep.mubr.msk.bf16.mxu0 %vm7088_vm1, %v9679_v15  ;;  %v3116_v10 = vpop.xlane.xlu0 %3115 }
 0x983   :  { %v6892_v24 = vpop.eup %6891  ;;  %v3155_v56 = vpack.c.bf16 %v3143_v23, %v3142_v36  ;;  %6469 = vmatprep.subr.bf16.mxu0 %v9679_v15  ;;  %6903 = vrcp.f32 %v3116_v10 }
 0x984   :  { %v6894_v13 = vpop.eup %6893  ;;  %v3145_v12 = vmul.f32 %v6892_v24, %v8307_v44 }
 0x985   :  { %6454 = vmatmul.mubr.msk.bf16.vlgmr.msra.gmra.mxu1 %vm910_vm3, %v3155_v56  ;;  %v3144_v4 = vmul.f32 %v6894_v13, %v8310_v54 }
 0x986   :  { %6464 = vmatpush3.bf16.msra.mxu1 %v8348_v45  ;;  %6465 = vmatprep.mubr.msk.bf16.mxu1 %vm7088_vm1, %v9679_v15  ;;  %v3620_v30 = vpop.permute.xlu0 %3619 }
 0x987   :  { %v6896_v7 = vpop.eup %6895  ;;  %v3156_v14 = vpack.c.bf16 %v3145_v12, %v3144_v4  ;;  %6475 = vmatprep.subr.bf16.mxu1 %v9679_v15 }
 0x988   :  { %v6898_v22 = vpop.eup %6897  ;;  %v3147_v20 = vmul.f32 %v6896_v7, %v8316_v18 }
 0x989   :  { %6460 = vmatmul.mubr.msk.bf16.vlgmr.msra.gmra.mxu0 %vm910_vm3, %v3156_v14  ;;  %v3146_v44 = vmul.f32 %v6898_v22, %v8318_v26 }
 0x98a   :  { %6470 = vmatpush3.bf16.msra.mxu0 %v8369_v37  ;;  %6471 = vmatprep.mubr.msk.bf16.mxu0 %vm7088_vm1, %v9679_v15  ;;  %v3625_v37 = vsel %vm496_vm2, %v3620_v30, 0 }
 0x98b   :  { %v6900_v54 = vpop.eup %6899  ;;  %v3157_v45 = vpack.c.bf16 %v3147_v20, %v3146_v44  ;;  %6481 = vmatprep.subr.bf16.mxu0 %v9679_v15 }
 0x98c   :  { %v6902_v63 = vpop.eup %6901  ;;  %v3149_v9 = vmul.f32 %v6900_v54, %v8324_v38  ;;  %v3618_v38 = vpop.permute.xlu0 %3617 }
 0x98d   :  { %6466 = vmatmul.mubr.msk.bf16.vlgmr.msra.gmra.mxu1 %vm910_vm3, %v3157_v45  ;;  %v3148_v18 = vmul.f32 %v6902_v63, %v8326_v0  ;;  %v3671_v0 = vpop.permute.xlu1 %3670 }
 0x98e   :  { %6476 = vmatpush3.bf16.msra.mxu1 %v8373_v62  ;;  %6477 = vmatprep.mubr.msk.bf16.mxu1 %vm7088_vm1, %v9679_v15  ;;  %v3676_v56 = vsel %vm496_vm2, %v3671_v0, 0 }
 0x98f   :  { %v3158_v26 = vpack.c.bf16 %v3149_v9, %v3148_v18  ;;  %6487 = vmatprep.subr.bf16.mxu1 %v9679_v15 }
 0x990   :  { %v3669_v62 = vpop.permute.xlu0 %3668  ;;  %v6904_v19 = vpop.eup %6903 }
 0x991   :  { %6472 = vmatmul.mubr.msk.bf16.vlgmr.msra.gmra.mxu0 %vm910_vm3, %v3158_v26  ;;  %v3150_v6 = vmul.f32 %v6904_v19, %v8332_v47 }
 0x992   :  { %6482 = vmatpush3.bf16.xpose.msra.mxu0 %v3625_v37  ;;  %6483 = vmatprep.mubr.msk.bf16.mxu0 %vm7088_vm1, %v9679_v15 }
 0x993   :  { %6493 = vmatprep.subr.bf16.mxu0 %v9679_v15 }
 0x994   :  { %v3720_v2 = vpop.permute.xlu0 %3719 }
 0x998   :  { %v3771_v33 = vpop.permute.xlu0 %3770 }
 0x999   :  { %6484 = vmatmul.mubr.msk.bf16.vlgmr.msra.gmra.mxu0 %vm496_vm2, %v3618_v38 }
 0x99a   :  { %6495 = vmatprep.mubr.msk.bf16.mxu0 %vm7088_vm1, %v9679_v15 }
 0x99c   :  { %v3822_v23 = vpop.permute.xlu0 %3821 }
 0x9a0   :  { %v3873_v47 = vpop.permute.xlu0 %3872 }
 0x9a4   :  { %v3924_v4 = vpop.permute.xlu0 %3923 }
 0x9be   :  { %v3119_v39 = vpop.xlane.xlu1 %3118 }
 0x9bf   :  { %6905 = vrcp.f32 %v3119_v39 }
 0x9c2   :  { %v3722_v51 = vpop.permute.xlu1 %3721 }
 0x9c3   :  { %v3727_v42 = vsel %vm496_vm2, %v3722_v51, 0 }
 0x9c4   :  { %6494 = vmatpush3.bf16.xpose.msra.mxu0 %v3727_v42 }
 0x9c5   :  { %6505 = vmatprep.subr.bf16.mxu0 %v9679_v15 }
 0x9c6   :  { %v3773_v21 = vpop.permute.xlu1 %3772 }
 0x9ca   :  { %v3824_v11 = vpop.permute.xlu1 %3823 }
 0x9cb   :  { %v3829_v48 = vsel %vm496_vm2, %v3824_v11, 0  ;;  %6496 = vmatmul.mubr.msk.bf16.vlgmr.msra.gmra.mxu0 %vm496_vm2, %v3720_v2 }
 0x9cc   :  { %v6906_v34 = vpop.eup %6905  ;;  %6506 = vmatpush3.bf16.xpose.msra.mxu0 %v3829_v48  ;;  %6507 = vmatprep.mubr.msk.bf16.mxu0 %vm7088_vm1, %v9679_v15 }
 0x9cd   :  { %v3151_v17 = vmul.f32 %v6906_v34, %v8359_v5  ;;  %6517 = vmatprep.subr.bf16.mxu0 %v9679_v15  ;;  %v3778_v5 = vsel %vm496_vm2, %v3773_v21, 0 }
 0x9ce   :  { %v3875_v36 = vpop.permute.xlu1 %3874 }
 0x9cf   :  { %v3159_v24 = vpack.c.bf16 %v3151_v17, %v3150_v6  ;;  %v3880_v7 = vsel %vm496_vm2, %v3875_v36, 0 }
 0x9d1   :  { %6478 = vmatmul.mubr.msk.bf16.vlgmr.msra.gmra.mxu1 %vm910_vm3, %v3159_v24 }
 0x9d2   :  { %6488 = vmatpush3.bf16.xpose.msra.mxu1 %v3676_v56  ;;  %v3926_v13 = vpop.permute.xlu1 %3925  ;;  %6489 = vmatprep.mubr.msk.bf16.mxu1 %vm7088_vm1, %v9679_v15  ;;  %v477_v56 = vld [vmem:[%s9676_s1 + $0xc0] sm:$0xff] }
 0x9d3   :  { %v3931_v12 = vsel %vm496_vm2, %v3926_v13, 0  ;;  %6508 = vmatmul.mubr.msk.bf16.vlgmr.msra.gmra.mxu0 %vm496_vm2, %v3822_v23  ;;  %6499 = vmatprep.subr.bf16.mxu1 %v9679_v15 }
 0x9d4   :  { %6518 = vmatpush3.bf16.xpose.msra.mxu0 %v3931_v12  ;;  %6519 = vmatprep.mubr.msk.bf16.mxu0 %vm7088_vm1, %v9679_v15 }
 0x9d5   :  { %6529 = vmatprep.subr.bf16.mxu0 %v9679_v15 }
 0x9d6   :  { %v3977_v14 = vpop.permute.xlu1 %3976 }
 0x9d7   :  { %v3982_v22 = vsel %vm496_vm2, %v3977_v14, 0 }
 0x9d9   :  { %6490 = vmatmul.mubr.msk.bf16.vlgmr.msra.gmra.mxu1 %vm496_vm2, %v3669_v62 }
 0x9da   :  { %6500 = vmatpush3.bf16.xpose.msra.mxu1 %v3778_v5  ;;  %6501 = vmatprep.mubr.msk.bf16.mxu1 %vm7088_vm1, %v9679_v15  ;;  %v3975_v10 = vpop.permute.xlu1 %3974  ;;  %v478_v5 = vld [vmem:[%s9676_s1 + $0xc8] sm:$0xff] }
 0x9db   :  { %6520 = vmatmul.mubr.msk.bf16.vlgmr.msra.gmra.mxu0 %vm496_vm2, %v3924_v4  ;;  %6511 = vmatprep.subr.bf16.mxu1 %v9679_v15 }
 0x9dc   :  { %6531 = vmatprep.mubr.msk.bf16.mxu0 %vm7088_vm1, %v9679_v15 }
 0x9e1   :  { %6502 = vmatmul.mubr.msk.bf16.vlgmr.msra.gmra.mxu1 %vm496_vm2, %v3771_v33 }
 0x9e2   :  { %6512 = vmatpush3.bf16.xpose.msra.mxu1 %v3880_v7  ;;  %6513 = vmatprep.mubr.msk.bf16.mxu1 %vm7088_vm1, %v9679_v15 }
 0x9e3   :  { %6523 = vmatprep.subr.bf16.mxu1 %v9679_v15 }
 0x9e9   :  { %6514 = vmatmul.mubr.msk.bf16.vlgmr.msra.gmra.mxu1 %vm496_vm2, %v3873_v47 }
 0x9ea   :  { %6524 = vmatpush3.bf16.xpose.msra.mxu1 %v3982_v22  ;;  %6525 = vmatprep.mubr.msk.bf16.mxu1 %vm7088_vm1, %v9679_v15 }
 0x9eb   :  { %6535 = vmatprep.subr.bf16.mxu1 %v9679_v15 }
 0x9f1   :  { %6526 = vmatmul.mubr.msk.bf16.vlgmr.msra.gmra.mxu1 %vm496_vm2, %v3975_v10 }
 0x9f2   :  { %6537 = vmatprep.mubr.msk.bf16.mxu1 %vm7088_vm1, %v9679_v15  ;;  %v483_v15 = vld [vmem:[%s9676_s1 + $0xf0] sm:$0xff] }
 0xa29   :  { %v8474_v20 = vpop.f32.mrf.mxu0 }
 0xa2b   :  { %v6437_v44 = vpop.f32.mrf.mxu0 }
 0xa2d   :  { %v8476_v54 = vpop.f32.mrf.mxu0 }
 0xa2f   :  { %v6438_v45 = vpop.f32.mrf.mxu0 }
 0xa3c   :  { %v8478_v63 = vpop.f32.mrf.mxu1 }
 0xa3e   :  { %v6443_v9 = vpop.f32.mrf.mxu1 }
 0xa3f   :  { %v482_v9 = vld [vmem:[%s9676_s1 + $0xe8] sm:$0xff] }
 0xa40   :  { %v8480_v18 = vpop.f32.mrf.mxu1 }
 0xa41   :  { %v8482_v30 = vpop.f32.mrf.mxu0 }
 0xa42   :  { %v6444_v26 = vpop.f32.mrf.mxu1 }
 0xa43   :  { %v6449_v37 = vpop.f32.mrf.mxu0 }
 0xa45   :  { %v8484_v38 = vpop.f32.mrf.mxu0  ;;  %v8486_v0 = vpop.f32.mrf.mxu1 }
 0xa47   :  { %v6450_v62 = vpop.f32.mrf.mxu0  ;;  %v6455_v39 = vpop.f32.mrf.mxu1 }
 0xa49   :  { %v8488_v2 = vpop.f32.mrf.mxu1  ;;  %v8490_v51 = vpop.f32.mrf.mxu0 }
 0xa4b   :  { %v6456_v42 = vpop.f32.mrf.mxu1  ;;  %v6461_v21 = vpop.f32.mrf.mxu0 }
 0xa4d   :  { %v8492_v33 = vpop.f32.mrf.mxu0  ;;  %v8494_v19 = vpop.f32.mrf.mxu1 }
 0xa4e   :  { %9699 = vst [vmem:[#allocation6_spill] sm:$0xff] %v8492_v33 }
 0xa4f   :  { %v6462_v11 = vpop.f32.mrf.mxu0  ;;  %v6467_v48 = vpop.f32.mrf.mxu1 }
 0xa51   :  { %v8496_v34 = vpop.f32.mrf.mxu1  ;;  %v8498_v6 = vpop.f32.mrf.mxu0 }
 0xa52   :  { %9700 = vst [vmem:[#allocation7_spill] sm:$0xff] %v8496_v34 }
 0xa53   :  { %v6468_v17 = vpop.f32.mrf.mxu1  ;;  %v6473_v23 = vpop.f32.mrf.mxu0 }
 0xa55   :  { %v8500_v36 = vpop.f32.mrf.mxu0 }
 0xa56   :  { %9701 = vst [vmem:[#allocation8_spill] sm:$0xff] %v8500_v36 }
 0xa57   :  { %v6474_v24 = vpop.f32.mrf.mxu0 }
 0xa59   :  { %v3661_v13 = vpop.f32.mrf.mxu0 }
 0xa5a   :  { %v8505_v12 = vadd.f32 %v3661_v13, %v477_v56  ;;  %v479_v13 = vld [vmem:[%s9676_s1 + $0xd0] sm:$0xff] }
 0xa5b   :  { %v6485_v47 = vpop.f32.mrf.mxu0 }
 0xa5c   :  { %v4041_v4 = vsel %vm910_vm3, %v8505_v12, -inf }
 0xa5d   :  { %4042 = vmax.xlane.f32.xlu0 %v4041_v4  ;;  %v3664_v7 = vpop.f32.mrf.mxu0 }
 0xa5e   :  { %v8512_v14 = vadd.f32 %v3664_v7, %v478_v5 }
 0xa5f   :  { %v6486_v22 = vpop.f32.mrf.mxu0 }
 0xa60   :  { %v4044_v10 = vsel %vm910_vm3, %v8512_v14, -inf }
 0xa61   :  { %4045 = vmax.xlane.f32.xlu1 %v4044_v10 }
 0xa8b   :  { %v3763_v44 = vpop.f32.mrf.mxu0 }
 0xa8d   :  { %v6497_v45 = vpop.f32.mrf.mxu0 }
 0xa8e   :  { %v480_v45 = vld [vmem:[%s9676_s1 + $0xd8] sm:$0xff] }
 0xa8f   :  { %v3766_v26 = vpop.f32.mrf.mxu0 }
 0xa90   :  { %v8519_v37 = vadd.f32 %v3766_v26, %v482_v9 }
 0xa91   :  { %v8521_v62 = vpop.f32.mrf.mxu1  ;;  %v6498_v39 = vpop.f32.mrf.mxu0 }
 0xa92   :  { %v4056_v42 = vsel %vm910_vm3, %v8519_v37, -inf  ;;  %v481_v39 = vld [vmem:[%s9676_s1 + $0xe0] sm:$0xff] }
 0xa93   :  { %v6479_v21 = vpop.f32.mrf.mxu1  ;;  %4057 = vmax.xlane.f32.xlu1 %v4056_v42  ;;  %v3865_v11 = vpop.f32.mrf.mxu0 }
 0xa94   :  { %v8558_v27 = vadd.f32 %v3865_v11, %v477_v56 }
 0xa95   :  { %v8525_v48 = vpop.f32.mrf.mxu1  ;;  %v6509_v17 = vpop.f32.mrf.mxu0 }
 0xa96   :  { %9702 = vst [vmem:[#allocation9_spill] sm:$0xff] %v8525_v48 }
 0xa97   :  { %v6480_v23 = vpop.f32.mrf.mxu1  ;;  %v3868_v24 = vpop.f32.mrf.mxu0 }
 0xa98   :  { %v8560_v29 = vadd.f32 %v3868_v24, %v478_v5 }
 0xa99   :  { %v3712_v47 = vpop.f32.mrf.mxu1  ;;  %v6510_v4 = vpop.f32.mrf.mxu0 }
 0xa9a   :  { %v8530_v7 = vadd.f32 %v3712_v47, %v479_v13  ;;  %v8542_v4 = vadd.f32 %v3763_v44, %v481_v39  ;;  %v4068_v56 = vsel %vm910_vm3, %v8560_v29, -inf }
 0xa9b   :  { %v6491_v22 = vpop.f32.mrf.mxu1  ;;  %v3967_v10 = vpop.f32.mrf.mxu0 }
 0xa9c   :  { %v4047_v26 = vsel %vm910_vm3, %v8530_v7, -inf  ;;  %v4053_v44 = vsel %vm910_vm3, %v8542_v4, -inf }
 0xa9d   :  { %4048 = vmax.xlane.f32.xlu0 %v4047_v26  ;;  %v3715_v42 = vpop.f32.mrf.mxu1  ;;  %v6521_v21 = vpop.f32.mrf.mxu0  ;;  %v484_v26 = vld [vmem:[%s9676_s1 + $0xf8] sm:$0xff]  ;;  %s7099_s1 = smov 40  }
 0xa9e   :  { %v8540_v17 = vadd.f32 %v3715_v42, %v480_v45 }
 0xa9f   :  { %v6492_v23 = vpop.f32.mrf.mxu1  ;;  %v3970_v47 = vpop.f32.mrf.mxu0 }
 0xaa0   :  { %v4050_v22 = vsel %vm910_vm3, %v8540_v17, -inf }
 0xaa1   :  { %4051 = vmax.xlane.f32.xlu0 %v4050_v22  ;;  %v3814_v8 = vpop.f32.mrf.mxu1  ;;  %v6522_v48 = vpop.f32.mrf.mxu0 }
 0xaa2   :  { %v8552_v42 = vadd.f32 %v3814_v8, %v483_v15 }
 0xaa3   :  { %v6503_v36 = vpop.f32.mrf.mxu1 }
 0xaa4   :  { %v4059_v36 = vsel %vm910_vm3, %v8552_v42, -inf }
 0xaa5   :  { %4054 = vmax.xlane.f32.xlu0 %v4053_v44  ;;  %v3817_v21 = vpop.f32.mrf.mxu1  ;;  %v4065_v44 = vsel %vm910_vm3, %v8558_v27, -inf }
 0xaa6   :  { %v8556_v23 = vadd.f32 %v3817_v21, %v484_v26  ;;  %v8574_v21 = vadd.f32 %v3967_v10, %v481_v39 }
 0xaa7   :  { %v6504_v22 = vpop.f32.mrf.mxu1 }
 0xaa8   :  { %v4062_v48 = vsel %vm910_vm3, %v8556_v23, -inf  ;;  %v8576_v22 = vadd.f32 %v3970_v47, %v482_v9 }
 0xaa9   :  { %4060 = vmax.xlane.f32.xlu0 %v4059_v36  ;;  %4063 = vmax.xlane.f32.xlu1 %v4062_v48  ;;  %v3916_v8 = vpop.f32.mrf.mxu1 }
 0xaaa   :  { %v8566_v33 = vadd.f32 %v3916_v8, %v479_v13  ;;  %v4080_v10 = vsel %vm910_vm3, %v8576_v22, -inf }
 0xaab   :  { %v6515_v34 = vpop.f32.mrf.mxu1 }
 0xaac   :  { %v4071_v34 = vsel %vm910_vm3, %v8566_v33, -inf }
 0xaad   :  { %4066 = vmax.xlane.f32.xlu0 %v4065_v44  ;;  %4069 = vmax.xlane.f32.xlu1 %v4068_v56  ;;  %v3919_v5 = vpop.f32.mrf.mxu1 }
 0xaae   :  { %v8572_v11 = vadd.f32 %v3919_v5, %v480_v45  ;;  %v4077_v45 = vsel %vm910_vm3, %v8574_v21, -inf }
 0xaaf   :  { %v6516_v24 = vpop.f32.mrf.mxu1 }
 0xab0   :  { %v4074_v13 = vsel %vm910_vm3, %v8572_v11, -inf }
 0xab1   :  { %4072 = vmax.xlane.f32.xlu0 %v4071_v34  ;;  %4075 = vmax.xlane.f32.xlu1 %v4074_v13  ;;  %v4018_v36 = vpop.f32.mrf.mxu1 }
 0xab2   :  { %v8582_v8 = vadd.f32 %v4018_v36, %v483_v15 }
 0xab3   :  { %v6527_v48 = vpop.f32.mrf.mxu1 }
 0xab4   :  { %v4083_v47 = vsel %vm910_vm3, %v8582_v8, -inf }
 0xab5   :  { %v4021_v9 = vpop.f32.mrf.mxu1  ;;  %4078 = vmax.xlane.f32.xlu0 %v4077_v45  ;;  %4081 = vmax.xlane.f32.xlu1 %v4080_v10 }
 0xab6   :  { %v8601_v5 = vadd.f32 %v4021_v9, %v484_v26 }
 0xab7   :  { %v6528_v39 = vpop.f32.mrf.mxu1 }
 0xab9   :  { %4084 = vmax.xlane.f32.xlu0 %v4083_v47 }
 0xac6   :  { %4272 = vrot.lane.b32.xlu1 %v7404_v16, %s7099_s1  ;;  %v4086_v16 = vsel %vm910_vm3, %v8601_v5, -inf }
 0xaca   :  { %4319 = vrot.lane.b32.xlu1 %v7412_v40, %s7099_s1 }
 0xace   :  { %4366 = vrot.lane.b32.xlu1 %v7416_v43, %s7099_s1 }
 0xacf   :  { %4225 = vrot.lane.b32.xlu0 %v7406_v31, %s7099_s1 }
 0xad3   :  { %4413 = vrot.lane.b32.xlu0 %v7420_v52, %s7099_s1 }
 0xae6   :  { %v4043_v15 = vpop.xlane.xlu0 %4042 }
 0xae7   :  { %v4089_v44 = vsub.f32 %v8505_v12, %v4043_v15 }
 0xae9   :  { %v4105_v56 = vmul.f32 1.442695, %v4089_v44 }
 0xaea   :  { %v4046_v31 = vpop.xlane.xlu1 %4045 }
 0xaeb   :  { %6907 = vpow2.f32 %v4105_v56  ;;  %v4090_v52 = vsub.f32 %v8512_v14, %v4046_v31 }
 0xaed   :  { %v4107_v12 = vmul.f32 1.442695, %v4090_v52 }
 0xaef   :  { %6909 = vpow2.f32 %v4107_v12 }
 0xaf2   :  { %4087 = vmax.xlane.f32.xlu1 %v4086_v16 }
 0xaf8   :  { %v8605_v40 = vpop.eup %6907 }
 0xaf9   :  { %v4137_v43 = vsel %vm910_vm3, %v8605_v40, 0.0 }
 0xafa   :  { %4138 = vadd.xlane.f32.xlu0 %v4137_v43 }
 0xafc   :  { %v8612_v26 = vpop.eup %6909 }
 0xafd   :  { %v4140_v13 = vsel %vm910_vm3, %v8612_v26, 0.0 }
 0xb03   :  { %4460 = vrot.lane.b32.xlu1 %v7422_v28, %s7099_s1 }
 0xb1c   :  { %v4058_v24 = vpop.xlane.xlu1 %4057 }
 0xb1d   :  { %v4094_v48 = vsub.f32 %v8519_v37, %v4058_v24 }
 0xb1f   :  { %v4115_v14 = vmul.f32 1.442695, %v4094_v48 }
 0xb26   :  { %v4049_v34 = vpop.xlane.xlu0 %4048 }
 0xb27   :  { %v4091_v36 = vsub.f32 %v8530_v7, %v4049_v34  ;;  %4141 = vadd.xlane.f32.xlu1 %v4140_v13 }
 0xb29   :  { %v4109_v45 = vmul.f32 1.442695, %v4091_v36 }
 0xb2a   :  { %v4052_v10 = vpop.xlane.xlu0 %4051 }
 0xb2b   :  { %6911 = vpow2.f32 %v4109_v45  ;;  %v4092_v28 = vsub.f32 %v8540_v17, %v4052_v10 }
 0xb2d   :  { %v4111_v9 = vmul.f32 1.442695, %v4092_v28 }
 0xb2e   :  { %v4055_v39 = vpop.xlane.xlu0 %4054 }
 0xb2f   :  { %6913 = vpow2.f32 %v4111_v9  ;;  %v4093_v47 = vsub.f32 %v8542_v4, %v4055_v39 }
 0xb30   :  { %6915 = vpow2.f32 %v4115_v14 }
 0xb31   :  { %v4113_v15 = vmul.f32 1.442695, %v4093_v47 }
 0xb32   :  { %v4064_v44 = vpop.xlane.xlu1 %4063  ;;  %v4061_v56 = vpop.xlane.xlu0 %4060 }
 0xb33   :  { %6917 = vpow2.f32 %v4113_v15  ;;  %v4096_v7 = vsub.f32 %v8556_v23, %v4064_v44  ;;  %v4095_v37 = vsub.f32 %v8552_v42, %v4061_v56 }
 0xb35   :  { %v4119_v16 = vmul.f32 1.442695, %v4096_v7  ;;  %v4117_v43 = vmul.f32 1.442695, %v4095_v37 }
 0xb36   :  { %v4070_v31 = vpop.xlane.xlu1 %4069  ;;  %v4067_v52 = vpop.xlane.xlu0 %4066 }
 0xb37   :  { %6919 = vpow2.f32 %v4119_v16  ;;  %v4098_v17 = vsub.f32 %v8560_v29, %v4070_v31  ;;  %v4097_v12 = vsub.f32 %v8558_v27, %v4067_v52  ;;  %v9703_v16 = vmov 0.0  }
 0xb38   :  { %v8624_v24 = vpop.eup %6911  ;;  %6921 = vpow2.f32 %v4117_v43 }
 0xb39   :  { %v4123_v4 = vmul.f32 1.442695, %v4098_v17  ;;  %v4121_v34 = vmul.f32 1.442695, %v4097_v12  ;;  %v4143_v13 = vsel %vm910_vm3, %v8624_v24, 0.0 }
 0xb3a   :  { %v4076_v23 = vpop.xlane.xlu1 %4075  ;;  %4144 = vadd.xlane.f32.xlu0 %v4143_v13  ;;  %v4073_v42 = vpop.xlane.xlu0 %4072 }
 0xb3b   :  { %6923 = vpow2.f32 %v4123_v4  ;;  %v4100_v36 = vsub.f32 %v8572_v11, %v4076_v23  ;;  %v4099_v48 = vsub.f32 %v8566_v33, %v4073_v42 }
 0xb3c   :  { %v8630_v45 = vpop.eup %6913  ;;  %6925 = vpow2.f32 %v4121_v34 }
 0xb3d   :  { %v4127_v29 = vmul.f32 1.442695, %v4100_v36  ;;  %v4125_v27 = vmul.f32 1.442695, %v4099_v48  ;;  %v4146_v10 = vsel %vm910_vm3, %v8630_v45, 0.0  ;;  %v8634_v28 = vpop.eup %6915 }
 0xb3e   :  { %v4082_v14 = vpop.xlane.xlu1 %4081  ;;  %4147 = vadd.xlane.f32.xlu1 %v4146_v10  ;;  %v4079_v9 = vpop.xlane.xlu0 %4078  ;;  %v4152_v44 = vsel %vm910_vm3, %v8634_v28, 0.0 }
 0xb3f   :  { %6927 = vpow2.f32 %v4127_v29  ;;  %v4102_v39 = vsub.f32 %v8576_v22, %v4082_v14  ;;  %v4101_v11 = vsub.f32 %v8574_v21, %v4079_v9 }
 0xb40   :  { %v8638_v47 = vpop.eup %6917  ;;  %6929 = vpow2.f32 %v4125_v27 }
 0xb41   :  { %v4131_v33 = vmul.f32 1.442695, %v4102_v39  ;;  %v4129_v15 = vmul.f32 1.442695, %v4101_v11  ;;  %v4149_v56 = vsel %vm910_vm3, %v8638_v47, 0.0 }
 0xb42   :  { %v4273_v7 = vpop.permute.xlu1 %4272  ;;  %4153 = vadd.xlane.f32.xlu1 %v4152_v44  ;;  %4150 = vadd.xlane.f32.xlu0 %v4149_v56  ;;  %v4085_v37 = vpop.xlane.xlu0 %4084  ;;  %v9706_v56 = vld [vmem:[#allocation4_spill] sm:$0xff] }
 0xb43   :  { %6931 = vpow2.f32 %v4131_v33  ;;  %v4103_v22 = vsub.f32 %v8582_v8, %v4085_v37  ;;  %6536 = vmatpush3.bf16.msra.mxu1 %v4273_v7 }
 0xb44   :  { %v8645_v21 = vpop.eup %6919  ;;  %6933 = vpow2.f32 %v4129_v15  ;;  %6547 = vmatprep.subr.bf16.mxu1 %v9703_v16 }
 0xb45   :  { %v8648_v43 = vpop.eup %6921  ;;  %v4133_v31 = vmul.f32 1.442695, %v4103_v22  ;;  %v4158_v52 = vsel %vm910_vm3, %v8645_v21, 0.0 }
 0xb46   :  { %4159 = vadd.xlane.f32.xlu1 %v4158_v52  ;;  %v4155_v17 = vsel %vm910_vm3, %v8648_v43, 0.0  ;;  %v4226_v12 = vpop.permute.xlu0 %4225  ;;  %v4320_v11 = vpop.permute.xlu1 %4319  ;;  %v9707_v52 = vld [vmem:[#allocation5_spill] sm:$0xff] }
 0xb47   :  { %6935 = vpow2.f32 %v4133_v31  ;;  %4156 = vadd.xlane.f32.xlu0 %v4155_v17  ;;  %6530 = vmatpush3.bf16.msra.mxu0 %v4226_v12 }
 0xb48   :  { %v8654_v8 = vpop.eup %6923  ;;  %6541 = vmatprep.subr.bf16.mxu0 %v9703_v16 }
 0xb49   :  { %v8657_v4 = vpop.eup %6925  ;;  %v4164_v34 = vsel %vm910_vm3, %v8654_v8, 0.0 }
 0xb4a   :  { %4165 = vadd.xlane.f32.xlu1 %v4164_v34  ;;  %v4161_v13 = vsel %vm910_vm3, %v8657_v4, 0.0  ;;  %v8689_v33 = vpop.permute.xlu1 %4366 }
 0xb4b   :  { %4162 = vadd.xlane.f32.xlu0 %v4161_v13 }
 0xb4c   :  { %v8663_v23 = vpop.eup %6927 }
 0xb4d   :  { %v8665_v42 = vpop.eup %6929  ;;  %v4170_v36 = vsel %vm910_vm3, %v8663_v23, 0.0 }
 0xb4e   :  { %4171 = vadd.xlane.f32.xlu1 %v4170_v36  ;;  %v4167_v48 = vsel %vm910_vm3, %v8665_v42, 0.0  ;;  %v9708_v36 = vld [vmem:[#allocation8_spill] sm:$0xff] }
 0xb4f   :  { %4168 = vadd.xlane.f32.xlu0 %v4167_v48 }
 0xb50   :  { %v8671_v29 = vpop.eup %6931 }
 0xb51   :  { %v8673_v27 = vpop.eup %6933  ;;  %v4176_v10 = vsel %vm910_vm3, %v8671_v29, 0.0 }
 0xb52   :  { %4177 = vadd.xlane.f32.xlu1 %v4176_v10  ;;  %v4173_v14 = vsel %vm910_vm3, %v8673_v27, 0.0 }
 0xb53   :  { %4174 = vadd.xlane.f32.xlu0 %v4173_v14 }
 0xb54   :  { %v8679_v9 = vpop.eup %6935 }
 0xb55   :  { %v4179_v39 = vsel %vm910_vm3, %v8679_v9, 0.0 }
 0xb57   :  { %4180 = vadd.xlane.f32.xlu0 %v4179_v39 }
 0xb6d   :  { %4507 = vrot.lane.b32.xlu0 %v7430_v59, %s7099_s1 }
 0xb71   :  { %2487 = vrot.lane.b32.xlu0 %v8131_v41, %s7100_s30  ;;  %v7067_v41 = vld [vmem:[%s9674_s3 + $0x10] ss:$8 sps:$4 sm:$0xff]  }
 0xb75   :  { %2491 = vrot.lane.b32.xlu0 %v8135_v3, %s7100_s30 }
 0xb79   :  { %3552 = vrot.lane.b32.xlu0 %v8474_v20, %s7101_s6 }
 0xb7b   :  { %v4088_v15 = vpop.xlane.xlu1 %4087 }
 0xb7c   :  { %v4104_v44 = vsub.f32 %v8601_v5, %v4088_v15 }
 0xb7d   :  { %3556 = vrot.lane.b32.xlu0 %v8478_v63, %s7101_s6 }
 0xb7e   :  { %v4135_v59 = vmul.f32 1.442695, %v4104_v44 }
 0xb80   :  { %6937 = vpow2.f32 %v4135_v59 }
 0xb81   :  { %4712 = vrot.lane.b32.xlu0 %v7067_v41, %s7102_s9 }
 0xb85   :  { %2497 = vrot.lane.b32.xlu0 %v8141_v60, %s7100_s30  ;;  %v8726_v60 = vpop.permute.xlu0 %4413 }
 0xb89   :  { %2501 = vrot.lane.b32.xlu0 %v8145_v32, %s7100_s30  ;;  %v8732_v32 = vpop.permute.xlu1 %4460 }
 0xb8d   :  { %v8704_v3 = vpop.eup %6937  ;;  %3562 = vrot.lane.b32.xlu0 %v8484_v38, %s7101_s6 }
 0xb8e   :  { %v4182_v20 = vsel %vm910_vm3, %v8704_v3, 0.0 }
 0xb8f   :  { %4183 = vadd.xlane.f32.xlu1 %v4182_v20 }
 0xb91   :  { %3564 = vrot.lane.b32.xlu0 %v8486_v0, %s7101_s6  ;;  %v9704_v0 = vld [vmem:[#allocation6_spill] sm:$0xff] }
 0xb95   :  { %2503 = vrot.lane.b32.xlu0 %v8147_v1, %s7100_s30 }
 0xb99   :  { %2507 = vrot.lane.b32.xlu0 %v8151_v57, %s7100_s30 }
 0xb9d   :  { %3568 = vrot.lane.b32.xlu0 %v8490_v51, %s7101_s6 }
 0xba0   :  { %4554 = vrot.lane.b32.xlu1 %v7428_v58, %s7099_s1  ;;  %v4139_v58 = vpop.xlane.xlu0 %4138 }
 0xba1   :  { %3572 = vrot.lane.b32.xlu0 %v8494_v19, %s7101_s6  ;;  %6939 = vrcp.f32 %v4139_v58 }
 0xba4   :  { %2489 = vrot.lane.b32.xlu1 %v8133_v55, %s7100_s30 }
 0xba5   :  { %2511 = vrot.lane.b32.xlu0 %v8155_v61, %s7100_s30 }
 0xba8   :  { %2493 = vrot.lane.b32.xlu1 %v8137_v50, %s7100_s30 }
 0xba9   :  { %2515 = vrot.lane.b32.xlu0 %v8178_v53, %s7100_s30  ;;  %v7068_v53 = vld [vmem:[%s9674_s3] ss:$8 sps:$4 sm:$0xff]  }
 0xbac   :  { %3554 = vrot.lane.b32.xlu1 %v8476_v54, %s7101_s6 }
 0xbad   :  { %3576 = vrot.lane.b32.xlu0 %v8498_v6, %s7101_s6 }
 0xbae   :  { %v6940_v50 = vpop.eup %6939 }
 0xbaf   :  { %v4201_v57 = vmul.f32 %v6940_v50, %v8605_v40 }
 0xbb0   :  { %v4142_v55 = vpop.xlane.xlu1 %4141  ;;  %3558 = vrot.lane.b32.xlu1 %v8480_v18, %s7101_s6 }
 0xbb1   :  { %6941 = vrcp.f32 %v4142_v55  ;;  %3580 = vrot.lane.b32.xlu0 %v8521_v62, %s7101_s6 }
 0xbb4   :  { %2495 = vrot.lane.b32.xlu1 %v8139_v35, %s7100_s30 }
 0xbb8   :  { %2499 = vrot.lane.b32.xlu1 %v8143_v46, %s7100_s30 }
 0xbbc   :  { %3560 = vrot.lane.b32.xlu1 %v8482_v30, %s7101_s6 }
 0xbbe   :  { %v6942_v1 = vpop.eup %6941 }
 0xbbf   :  { %v4202_v61 = vmul.f32 %v6942_v1, %v8612_v26 }
 0xbc0   :  { %4710 = vrot.lane.b32.xlu1 %v7068_v53, %s7102_s9 }
 0xbc1   :  { %v4217_v54 = vpack.c.bf16 %v4202_v61, %v4201_v57 }
 0xbc3   :  { %6532 = vmatmul.mubr.msk.bf16.vlgmr.msra.gmra.mxu0 %vm910_vm3, %v4217_v54  ;;  %v4145_v35 = vpop.xlane.xlu0 %4144 }
 0xbc4   :  { %6542 = vmatpush3.bf16.msra.mxu0 %v4320_v11  ;;  %3566 = vrot.lane.b32.xlu1 %v8488_v2, %s7101_s6  ;;  %6943 = vrcp.f32 %v4145_v35  ;;  %v9709_v11 = vld [vmem:[#allocation9_spill] sm:$0xff] }
 0xbc5   :  { %6543 = vmatprep.mubr.msk.bf16.mxu0 %vm7088_vm1, %v9703_v16  ;;  %6553 = vmatprep.subr.bf16.mxu0 %v9703_v16 }
 0xbc7   :  { %v4148_v46 = vpop.xlane.xlu1 %4147 }
 0xbc8   :  { %6945 = vrcp.f32 %v4148_v46  ;;  %2505 = vrot.lane.b32.xlu1 %v8149_v49, %s7100_s30  ;;  %v9705_v49 = vld [vmem:[#allocation7_spill] sm:$0xff] }
 0xbcb   :  { %v4154_v63 = vpop.xlane.xlu1 %4153  ;;  %v4151_v18 = vpop.xlane.xlu0 %4150 }
 0xbcc   :  { %6947 = vrcp.f32 %v4154_v63  ;;  %2509 = vrot.lane.b32.xlu1 %v8153_v25, %s7100_s30 }
 0xbcd   :  { %6949 = vrcp.f32 %v4151_v18 }
 0xbcf   :  { %v4160_v30 = vpop.xlane.xlu1 %4159 }
 0xbd0   :  { %6951 = vrcp.f32 %v4160_v30  ;;  %v4157_v38 = vpop.xlane.xlu0 %4156  ;;  %3570 = vrot.lane.b32.xlu1 %v9704_v0, %s7101_s6 }
 0xbd1   :  { %6953 = vrcp.f32 %v4157_v38  ;;  %v6944_v2 = vpop.eup %6943 }
 0xbd2   :  { %v4203_v62 = vmul.f32 %v6944_v2, %v8624_v24 }
 0xbd3   :  { %v4166_v51 = vpop.xlane.xlu1 %4165 }
 0xbd4   :  { %6955 = vrcp.f32 %v4166_v51  ;;  %v4163_v19 = vpop.xlane.xlu0 %4162  ;;  %3574 = vrot.lane.b32.xlu1 %v9705_v49, %s7101_s6 }
 0xbd5   :  { %v6946_v6 = vpop.eup %6945  ;;  %6957 = vrcp.f32 %v4163_v19 }
 0xbd6   :  { %v4204_v25 = vmul.f32 %v6946_v6, %v8630_v45 }
 0xbd7   :  { %v4172_v5 = vpop.xlane.xlu1 %4171 }
 0xbd8   :  { %v4218_v40 = vpack.c.bf16 %v4204_v25, %v4203_v62  ;;  %6959 = vrcp.f32 %v4172_v5  ;;  %v4169_v26 = vpop.xlane.xlu0 %4168  ;;  %2513 = vrot.lane.b32.xlu1 %v9706_v56, %s7100_s30 }
 0xbd9   :  { %v6948_v7 = vpop.eup %6947  ;;  %6961 = vrcp.f32 %v4169_v26 }
 0xbda   :  { %v6950_v37 = vpop.eup %6949  ;;  %v4206_v22 = vmul.f32 %v6948_v7, %v8634_v28  ;;  %6538 = vmatmul.mubr.msk.bf16.vlgmr.msra.gmra.mxu1 %vm910_vm3, %v4218_v40 }
 0xbdb   :  { %v4205_v31 = vmul.f32 %v6950_v37, %v8638_v47  ;;  %6548 = vmatpush3.bf16.msra.mxu1 %v8689_v33  ;;  %v4178_v24 = vpop.xlane.xlu1 %4177  ;;  %6549 = vmatprep.mubr.msk.bf16.mxu1 %vm7088_vm1, %v9703_v16 }
 0xbdc   :  { %6963 = vrcp.f32 %v4178_v24  ;;  %v4175_v45 = vpop.xlane.xlu0 %4174  ;;  %2517 = vrot.lane.b32.xlu1 %v9707_v52, %s7100_s30  ;;  %6559 = vmatprep.subr.bf16.mxu1 %v9703_v16 }
 0xbdd   :  { %v6952_v17 = vpop.eup %6951  ;;  %v4219_v12 = vpack.c.bf16 %v4206_v22, %v4205_v31  ;;  %6965 = vrcp.f32 %v4175_v45 }
 0xbde   :  { %v6954_v28 = vpop.eup %6953  ;;  %v4208_v34 = vmul.f32 %v6952_v17, %v8645_v21 }
 0xbdf   :  { %v4207_v47 = vmul.f32 %v6954_v28, %v8648_v43  ;;  %6544 = vmatmul.mubr.msk.bf16.vlgmr.msra.gmra.mxu0 %vm910_vm3, %v4219_v12 }
 0xbe0   :  { %6554 = vmatpush3.bf16.msra.mxu0 %v8726_v60  ;;  %v4181_v13 = vpop.xlane.xlu0 %4180  ;;  %3578 = vrot.lane.b32.xlu1 %v9708_v36, %s7101_s6 }
 0xbe1   :  { %v6956_v48 = vpop.eup %6955  ;;  %v4220_v10 = vpack.c.bf16 %v4208_v34, %v4207_v47  ;;  %6555 = vmatprep.mubr.msk.bf16.mxu0 %vm7088_vm1, %v9703_v16  ;;  %6565 = vmatprep.subr.bf16.mxu0 %v9703_v16  ;;  %6967 = vrcp.f32 %v4181_v13 }
 0xbe2   :  { %v6958_v14 = vpop.eup %6957  ;;  %v4210_v21 = vmul.f32 %v6956_v48, %v8654_v8 }
 0xbe3   :  { %v4209_v43 = vmul.f32 %v6958_v14, %v8657_v4  ;;  %6550 = vmatmul.mubr.msk.bf16.vlgmr.msra.gmra.mxu1 %vm910_vm3, %v4220_v10 }
 0xbe4   :  { %6560 = vmatpush3.bf16.msra.mxu1 %v8732_v32  ;;  %v4508_v39 = vpop.permute.xlu0 %4507  ;;  %3582 = vrot.lane.b32.xlu1 %v9709_v11, %s7101_s6 }
 0xbe5   :  { %v6960_v33 = vpop.eup %6959  ;;  %v4221_v15 = vpack.c.bf16 %v4210_v21, %v4209_v43  ;;  %6561 = vmatprep.mubr.msk.bf16.mxu1 %vm7088_vm1, %v9703_v16  ;;  %6571 = vmatprep.subr.bf16.mxu1 %v9703_v16 }
 0xbe6   :  { %v6962_v44 = vpop.eup %6961  ;;  %v4212_v8 = vmul.f32 %v6960_v33, %v8663_v23 }
 0xbe7   :  { %v4211_v4 = vmul.f32 %v6962_v44, %v8665_v42  ;;  %6556 = vmatmul.mubr.msk.bf16.vlgmr.msra.gmra.mxu0 %vm910_vm3, %v4221_v15 }
 0xbe8   :  { %6566 = vmatpush3.bf16.msra.mxu0 %v4508_v39  ;;  %v2488_v59 = vpop.permute.xlu0 %2487  ;;  %6567 = vmatprep.mubr.msk.bf16.mxu0 %vm7088_vm1, %v9703_v16 }
 0xbe9   :  { %v6964_v41 = vpop.eup %6963  ;;  %v4222_v20 = vpack.c.bf16 %v4212_v8, %v4211_v4  ;;  %2536 = vst.msk [vmem:[#allocation2] sm:$0xff] %vm2535_vm4, %v2488_v59 }
 0xbea   :  { %v6966_v60 = vpop.eup %6965  ;;  %v4214_v32 = vmul.f32 %v6964_v41, %v8671_v29 }
 0xbeb   :  { %v4213_v58 = vmul.f32 %v6966_v60, %v8673_v27  ;;  %6562 = vmatmul.mubr.msk.bf16.vlgmr.msra.gmra.mxu1 %vm910_vm3, %v4222_v20 }
 0xbec   :  { %v2492_v23 = vpop.permute.xlu0 %2491  ;;  %6573 = vmatprep.mubr.msk.bf16.mxu1 %vm7088_vm1, %v9703_v16 }
 0xbed   :  { %v4223_v42 = vpack.c.bf16 %v4214_v32, %v4213_v58  ;;  %2538 = vst.msk [vmem:[#allocation2 + $0x10] sm:$0xff] %vm2535_vm4, %v2492_v23 }
 0xbee   :  { %v6968_v0 = vpop.eup %6967 }
 0xbef   :  { %6568 = vmatmul.mubr.msk.bf16.vlgmr.msra.gmra.mxu0 %vm910_vm3, %v4223_v42  ;;  %v4215_v49 = vmul.f32 %v6968_v0, %v8679_v9 }
 0xbf0   :  { %v3553_v55 = vpop.permute.xlu0 %3552 }
 0xbf1   :  { %3601 = vst.msk [vmem:[#allocation2] sm:$0xff] %vm3600_vm5, %v3553_v55 }
 0xbf4   :  { %v3557_v50 = vpop.permute.xlu0 %3556 }
 0xbf5   :  { %3603 = vst.msk [vmem:[#allocation2 + $0x10] sm:$0xff] %vm3600_vm5, %v3557_v50 }
 0xbf8   :  { %v4713_v29 = vpop.permute.xlu0 %4712 }
 0xbf9   :  { %6577 = vmatprep.subr.bf16.mxu0 %v4713_v29 }
 0xbfa   :  { %6578 = vmatpush3.bf16.msra.mxu0 %v4713_v29 }
 0xbfc   :  { %v2498_v27 = vpop.permute.xlu0 %2497 }
 0xbfd   :  { %2541 = vst.msk [vmem:[#allocation2 + $0x28] sm:$0xff] %vm2535_vm4, %v2498_v27 }
 0xc00   :  { %v2502_v1 = vpop.permute.xlu0 %2501 }
 0xc01   :  { %2543 = vst.msk [vmem:[#allocation2 + $0x38] sm:$0xff] %vm2535_vm4, %v2502_v1 }
 0xc04   :  { %v3563_v16 = vpop.permute.xlu0 %3562 }
 0xc05   :  { %3606 = vst.msk [vmem:[#allocation2 + $0x28] sm:$0xff] %vm3600_vm5, %v3563_v16 }
 0xc08   :  { %v3565_v57 = vpop.permute.xlu0 %3564 }
 0xc0c   :  { %v2504_v61 = vpop.permute.xlu0 %2503 }
 0xc0d   :  { %2544 = vst.msk [vmem:[#allocation2 + $0x40] sm:$0xff] %vm2535_vm4, %v2504_v61 }
 0xc10   :  { %v2508_v53 = vpop.permute.xlu0 %2507 }
 0xc11   :  { %2546 = vst.msk [vmem:[#allocation2 + $0x50] sm:$0xff] %vm2535_vm4, %v2508_v53 }
 0xc14   :  { %v3569_v54 = vpop.permute.xlu0 %3568 }
 0xc15   :  { %3609 = vst.msk [vmem:[#allocation2 + $0x40] sm:$0xff] %vm3600_vm5, %v3569_v54 }
 0xc18   :  { %v3573_v35 = vpop.permute.xlu0 %3572  ;;  %v4184_v46 = vpop.xlane.xlu1 %4183 }
 0xc19   :  { %3611 = vst.msk [vmem:[#allocation2 + $0x50] sm:$0xff] %vm3600_vm5, %v3573_v35  ;;  %6969 = vrcp.f32 %v4184_v46 }
 0xc1c   :  { %v2512_v63 = vpop.permute.xlu0 %2511  ;;  %v4555_v18 = vpop.permute.xlu1 %4554 }
 0xc1d   :  { %2548 = vst.msk [vmem:[#allocation2 + $0x60] sm:$0xff] %vm2535_vm4, %v2512_v63  ;;  %6572 = vmatpush3.bf16.msra.mxu1 %v4555_v18 }
 0xc20   :  { %v2516_v30 = vpop.permute.xlu0 %2515  ;;  %v2490_v38 = vpop.permute.xlu1 %2489 }
 0xc21   :  { %2550 = vst.msk [vmem:[#allocation2 + $0x70] sm:$0xff] %vm2535_vm4, %v2516_v30  ;;  %2537 = vst.msk [vmem:[#allocation2 + $0x8] sm:$0xff] %vm2535_vm4, %v2490_v38 }
 0xc24   :  { %v3577_v2 = vpop.permute.xlu0 %3576  ;;  %v2494_v51 = vpop.permute.xlu1 %2493 }
 0xc25   :  { %3613 = vst.msk [vmem:[#allocation2 + $0x60] sm:$0xff] %vm3600_vm5, %v3577_v2 }
 0xc26   :  { %2539 = vst.msk [vmem:[#allocation2 + $0x18] sm:$0xff] %vm2535_vm4, %v2494_v51  ;;  %v6970_v19 = vpop.eup %6969 }
 0xc27   :  { %v4216_v6 = vmul.f32 %v6970_v19, %v8704_v3 }
 0xc28   :  { %v3581_v62 = vpop.permute.xlu0 %3580  ;;  %v3555_v25 = vpop.permute.xlu1 %3554 }
 0xc29   :  { %v4224_v5 = vpack.c.bf16 %v4216_v6, %v4215_v49  ;;  %3615 = vst.msk [vmem:[#allocation2 + $0x70] sm:$0xff] %vm3600_vm5, %v3581_v62  ;;  %3602 = vst.msk [vmem:[#allocation2 + $0x8] sm:$0xff] %vm3600_vm5, %v3555_v25 }
 0xc2b   :  { %6574 = vmatmul.mubr.msk.bf16.vlgmr.msra.gmra.mxu1 %vm910_vm3, %v4224_v5 }
 0xc2c   :  { %v3559_v40 = vpop.permute.xlu1 %3558 }
 0xc2d   :  { %3604 = vst.msk [vmem:[#allocation2 + $0x18] sm:$0xff] %vm3600_vm5, %v3559_v40 }
 0xc30   :  { %v2496_v26 = vpop.permute.xlu1 %2495 }
 0xc31   :  { %2540 = vst.msk [vmem:[#allocation2 + $0x20] sm:$0xff] %vm2535_vm4, %v2496_v26 }
 0xc34   :  { %v2500_v56 = vpop.permute.xlu1 %2499 }
 0xc35   :  { %2542 = vst.msk [vmem:[#allocation2 + $0x30] sm:$0xff] %vm2535_vm4, %v2500_v56 }
 0xc36   :  { %3607 = vst.msk [vmem:[#allocation2 + $0x30] sm:$0xff] %vm3600_vm5, %v3565_v57 }
 0xc38   :  { %v3561_v9 = vpop.permute.xlu1 %3560 }
 0xc39   :  { %3605 = vst.msk [vmem:[#allocation2 + $0x20] sm:$0xff] %vm3600_vm5, %v3561_v9 }
 0xc3c   :  { %v4711_v3 = vpop.permute.xlu1 %4710 }
 0xc3d   :  { %6579 = vmatprep.subr.bf16.mxu0 %v4711_v3 }
 0xc3e   :  { %6580 = vmatpush3.bf16.msra.mxu0 %v4711_v3 }
 0xc40   :  { %v3567_v7 = vpop.permute.xlu1 %3566 }
 0xc41   :  { %3608 = vst.msk [vmem:[#allocation2 + $0x38] sm:$0xff] %vm3600_vm5, %v3567_v7 }
 0xc44   :  { %v2506_v37 = vpop.permute.xlu1 %2505 }
 0xc45   :  { %2545 = vst.msk [vmem:[#allocation2 + $0x48] sm:$0xff] %vm2535_vm4, %v2506_v37 }
 0xc48   :  { %v2510_v22 = vpop.permute.xlu1 %2509 }
 0xc49   :  { %2547 = vst.msk [vmem:[#allocation2 + $0x58] sm:$0xff] %vm2535_vm4, %v2510_v22 }
 0xc4c   :  { %v3571_v31 = vpop.permute.xlu1 %3570 }
 0xc4d   :  { %3610 = vst.msk [vmem:[#allocation2 + $0x48] sm:$0xff] %vm3600_vm5, %v3571_v31 }
 0xc50   :  { %v3575_v24 = vpop.permute.xlu1 %3574 }
 0xc51   :  { %3612 = vst.msk [vmem:[#allocation2 + $0x58] sm:$0xff] %vm3600_vm5, %v3575_v24 }
 0xc54   :  { %v2514_v45 = vpop.permute.xlu1 %2513 }
 0xc55   :  { %2549 = vst.msk [vmem:[#allocation2 + $0x68] sm:$0xff] %vm2535_vm4, %v2514_v45 }
 0xc58   :  { %v2518_v52 = vpop.permute.xlu1 %2517 }
 0xc59   :  { %2551 = vst.msk [vmem:[#allocation2 + $0x78] sm:$0xff] %vm2535_vm4, %v2518_v52 }
 0xc5c   :  { %v3579_v17 = vpop.permute.xlu1 %3578 }
 0xc5d   :  { %3614 = vst.msk [vmem:[#allocation2 + $0x68] sm:$0xff] %vm3600_vm5, %v3579_v17 }
 0xc60   :  { %v3583_v12 = vpop.permute.xlu1 %3582 }
 0xc61   :  { %3616 = vst.msk [vmem:[#allocation2 + $0x78] sm:$0xff] %vm3600_vm5, %v3583_v12 }
 0xc83   :  { %v4265_v28 = vpop.f32.mrf.mxu0 }
 0xc84   :  { %4617 = vrot.lane.b32.xlu0 %v4265_v28, %s7103_s12 }
 0xc85   :  { %v6533_v34 = vpop.f32.mrf.mxu0 }
 0xc87   :  { %v4268_v47 = vpop.f32.mrf.mxu0 }
 0xc88   :  { %4619 = vrot.lane.b32.xlu1 %v4268_v47, %s7103_s12 }
 0xc89   :  { %v6534_v13 = vpop.f32.mrf.mxu0 }
 0xc9a   :  { %v4312_v36 = vpop.f32.mrf.mxu1 }
 0xc9b   :  { %4621 = vrot.lane.b32.xlu0 %v4312_v36, %s7103_s12 }
 0xc9c   :  { %v6539_v48 = vpop.f32.mrf.mxu1 }
 0xc9e   :  { %v4315_v10 = vpop.f32.mrf.mxu1 }
 0xc9f   :  { %v4359_v14 = vpop.f32.mrf.mxu0  ;;  %4623 = vrot.lane.b32.xlu1 %v4315_v10, %s7103_s12 }
 0xca0   :  { %4625 = vrot.lane.b32.xlu0 %v4359_v14, %s7103_s12  ;;  %v6540_v21 = vpop.f32.mrf.mxu1 }
 0xca1   :  { %v6545_v43 = vpop.f32.mrf.mxu0  ;;  %v9710_v21 = vld [vmem:[#allocation3_spill] sm:$0xff] }
 0xca2   :  { %v4708_v43 = vsub.s32 3, %v9710_v21 }
 0xca3   :  { %v4362_v39 = vpop.f32.mrf.mxu0  ;;  %v4406_v11 = vpop.f32.mrf.mxu1 }
 0xca4   :  { %4627 = vrot.lane.b32.xlu1 %v4362_v39, %s7103_s12  ;;  %4629 = vrot.lane.b32.xlu0 %v4406_v11, %s7103_s12  ;;  %v8889_v39 = vld [vmem:[%s9675_s2] sm:$0xff] }
 0xca5   :  { %v6546_v33 = vpop.f32.mrf.mxu0  ;;  %v6551_v15 = vpop.f32.mrf.mxu1  ;;  %v8892_v11 = vrot.slane %v8889_v39, %v4708_v43 }
 0xca7   :  { %v4409_v44 = vpop.f32.mrf.mxu1  ;;  %v4453_v8 = vpop.f32.mrf.mxu0 }
 0xca8   :  { %4631 = vrot.lane.b32.xlu1 %v4409_v44, %s7103_s12  ;;  %4633 = vrot.lane.b32.xlu0 %v4453_v8, %s7103_s12 }
 0xca9   :  { %v6552_v4 = vpop.f32.mrf.mxu1  ;;  %v6557_v59 = vpop.f32.mrf.mxu0 }
 0xcaa   :  { %v7070_v59 = vld [vmem:[%s9673_s0] sm:$0xff] }
 0xcab   :  { %v4456_v41 = vpop.f32.mrf.mxu0  ;;  %v4500_v20 = vpop.f32.mrf.mxu1 }
 0xcac   :  { %4635 = vrot.lane.b32.xlu1 %v4456_v41, %s7103_s12  ;;  %4637 = vrot.lane.b32.xlu0 %v4500_v20, %s7103_s12 }
 0xcad   :  { %v6558_v60 = vpop.f32.mrf.mxu0  ;;  %v6563_v32 = vpop.f32.mrf.mxu1 }
 0xcae   :  { %v7071_v60 = vld [vmem:[%s9673_s0 + $0x10] sm:$0xff] }
 0xcaf   :  { %v4503_v58 = vpop.f32.mrf.mxu1  ;;  %v4547_v23 = vpop.f32.mrf.mxu0 }
 0xcb0   :  { %4639 = vrot.lane.b32.xlu1 %v4503_v58, %s7103_s12  ;;  %4641 = vrot.lane.b32.xlu0 %v4547_v23, %s7103_s12 }
 0xcb1   :  { %v6564_v42 = vpop.f32.mrf.mxu1  ;;  %v6569_v55 = vpop.f32.mrf.mxu0 }
 0xcb2   :  { %v7072_v55 = vld [vmem:[%s9673_s0 + $0x8] sm:$0xff] }
 0xcb3   :  { %v4550_v50 = vpop.f32.mrf.mxu0 }
 0xcb4   :  { %4643 = vrot.lane.b32.xlu1 %v4550_v50, %s7103_s12 }
 0xcb5   :  { %v6570_v29 = vpop.f32.mrf.mxu0 }
 0xceb   :  { %v4594_v27 = vpop.f32.mrf.mxu1 }
 0xcec   :  { %4645 = vrot.lane.b32.xlu0 %v4594_v27, %s7103_s12  ;;  %v7073_v27 = vld [vmem:[%s9673_s0 + $0x18] sm:$0xff] }
 0xced   :  { %v6575_v1 = vpop.f32.mrf.mxu1 }
 0xcef   :  { %v4597_v16 = vpop.f32.mrf.mxu1 }
 0xcf0   :  { %4647 = vrot.lane.b32.xlu1 %v4597_v16, %s7103_s12 }
 0xcf1   :  { %v6576_v57 = vpop.f32.mrf.mxu1 }
 0xcf6   :  { %v4618_v61 = vpop.permute.xlu0 %4617 }
 0xcf7   :  { %4666 = vst.msk [vmem:[#allocation2] sm:$0xff] %vm4665_vm6, %v4618_v61 }
 0xcfa   :  { %v4620_v53 = vpop.permute.xlu1 %4619 }
 0xcfb   :  { %4667 = vst.msk [vmem:[#allocation2 + $0x8] sm:$0xff] %vm4665_vm6, %v4620_v53 }
 0xcfe   :  { %v4682_v54 = vld [vmem:[#allocation2] sm:$0xff] }
 0xd02   :  { %v4683_v35 = vld [vmem:[#allocation2 + $0x8] sm:$0xff] }
 0xd03   :  { %v4698_v46 = vpack.c.bf16 %v4683_v35, %v4682_v54 }
 0xd05   :  { %6581 = vmatprep.mubr.msk.bf16.mxu0 %vm58_vm0, %v4698_v46  ;;  %v7074_v46 = vld [vmem:[%s9673_s0 + $0x20] sm:$0xff] }
 0xd0d   :  { %v4622_v63 = vpop.permute.xlu0 %4621 }
 0xd0e   :  { %4668 = vst.msk [vmem:[#allocation2 + $0x10] sm:$0xff] %vm4665_vm6, %v4622_v63 }
 0xd11   :  { %v4624_v18 = vpop.permute.xlu1 %4623 }
 0xd12   :  { %4669 = vst.msk [vmem:[#allocation2 + $0x18] sm:$0xff] %vm4665_vm6, %v4624_v18  ;;  %v4626_v30 = vpop.permute.xlu0 %4625 }
 0xd13   :  { %4670 = vst.msk [vmem:[#allocation2 + $0x20] sm:$0xff] %vm4665_vm6, %v4626_v30 }
 0xd15   :  { %v4684_v2 = vld [vmem:[#allocation2 + $0x10] sm:$0xff] }
 0xd16   :  { %v4628_v38 = vpop.permute.xlu1 %4627  ;;  %v4630_v0 = vpop.permute.xlu0 %4629 }
 0xd17   :  { %4671 = vst.msk [vmem:[#allocation2 + $0x28] sm:$0xff] %vm4665_vm6, %v4628_v38  ;;  %4672 = vst.msk [vmem:[#allocation2 + $0x30] sm:$0xff] %vm4665_vm6, %v4630_v0 }
 0xd19   :  { %v4685_v51 = vld [vmem:[#allocation2 + $0x18] sm:$0xff] }
 0xd1a   :  { %v4632_v19 = vpop.permute.xlu1 %4631  ;;  %v4634_v49 = vpop.permute.xlu0 %4633  ;;  %v4699_v6 = vpack.c.bf16 %v4685_v51, %v4684_v2  ;;  %v4686_v5 = vld [vmem:[#allocation2 + $0x20] sm:$0xff]  ;;  %v7075_v51 = vld [vmem:[%s9673_s0 + $0x28] sm:$0xff] }
 0xd1b   :  { %4673 = vst.msk [vmem:[#allocation2 + $0x38] sm:$0xff] %vm4665_vm6, %v4632_v19  ;;  %4674 = vst.msk [vmem:[#allocation2 + $0x40] sm:$0xff] %vm4665_vm6, %v4634_v49  ;;  %v7076_v49 = vld [vmem:[%s9673_s0 + $0x30] sm:$0xff] }
 0xd1c   :  { %6582 = vmatmul.mubr.msk.bf16.vlgmr.msra.gmra.mxu0 %vm58_vm0, %v4699_v6 }
 0xd1e   :  { %v4636_v62 = vpop.permute.xlu1 %4635  ;;  %v4638_v25 = vpop.permute.xlu0 %4637  ;;  %v4687_v40 = vld [vmem:[#allocation2 + $0x28] sm:$0xff]  ;;  %v4688_v3 = vld [vmem:[#allocation2 + $0x30] sm:$0xff] }
 0xd1f   :  { %4675 = vst.msk [vmem:[#allocation2 + $0x48] sm:$0xff] %vm4665_vm6, %v4636_v62  ;;  %4676 = vst.msk [vmem:[#allocation2 + $0x50] sm:$0xff] %vm4665_vm6, %v4638_v25  ;;  %v4700_v26 = vpack.c.bf16 %v4687_v40, %v4686_v5  ;;  %v7077_v5 = vld [vmem:[%s9673_s0 + $0x38] sm:$0xff] }
 0xd21   :  { %6585 = vmatprep.mubr.msk.bf16.mxu0 %vm58_vm0, %v4700_v26 }
 0xd22   :  { %v4640_v56 = vpop.permute.xlu1 %4639  ;;  %v4642_v9 = vpop.permute.xlu0 %4641  ;;  %v4689_v7 = vld [vmem:[#allocation2 + $0x38] sm:$0xff]  ;;  %v4690_v31 = vld [vmem:[#allocation2 + $0x40] sm:$0xff] }
 0xd23   :  { %4677 = vst.msk [vmem:[#allocation2 + $0x58] sm:$0xff] %vm4665_vm6, %v4640_v56  ;;  %4678 = vst.msk [vmem:[#allocation2 + $0x60] sm:$0xff] %vm4665_vm6, %v4642_v9  ;;  %v4701_v37 = vpack.c.bf16 %v4689_v7, %v4688_v3  ;;  %v7078_v7 = vld [vmem:[%s9673_s0 + $0x40] sm:$0xff] }
 0xd25   :  { %6586 = vmatmul.mubr.msk.bf16.gmra.mxu0 %vm58_vm0, %v4701_v37 }
 0xd26   :  { %v4644_v22 = vpop.permute.xlu1 %4643  ;;  %v4691_v24 = vld [vmem:[#allocation2 + $0x48] sm:$0xff]  ;;  %v4692_v52 = vld [vmem:[#allocation2 + $0x50] sm:$0xff] }
 0xd27   :  { %4679 = vst.msk [vmem:[#allocation2 + $0x68] sm:$0xff] %vm4665_vm6, %v4644_v22  ;;  %v4702_v45 = vpack.c.bf16 %v4691_v24, %v4690_v31 }
 0xd29   :  { %6589 = vmatprep.mubr.msk.bf16.mxu0 %vm58_vm0, %v4702_v45 }
 0xd2a   :  { %v4693_v17 = vld [vmem:[#allocation2 + $0x58] sm:$0xff]  ;;  %v4694_v28 = vld [vmem:[#allocation2 + $0x60] sm:$0xff] }
 0xd2b   :  { %v4703_v12 = vpack.c.bf16 %v4693_v17, %v4692_v52  ;;  %v7079_v17 = vld [vmem:[%s9673_s0 + $0x48] sm:$0xff] }
 0xd2d   :  { %6590 = vmatmul.mubr.msk.bf16.gmra.mxu0 %vm58_vm0, %v4703_v12 }
 0xd2e   :  { %v4695_v34 = vld [vmem:[#allocation2 + $0x68] sm:$0xff] }
 0xd2f   :  { %v4704_v47 = vpack.c.bf16 %v4695_v34, %v4694_v28  ;;  %v7080_v28 = vld [vmem:[%s9673_s0 + $0x50] sm:$0xff] }
 0xd31   :  { %6593 = vmatprep.mubr.msk.bf16.mxu0 %vm58_vm0, %v4704_v47 }
 0xd5e   :  { %v4646_v13 = vpop.permute.xlu0 %4645 }
 0xd5f   :  { %4680 = vst.msk [vmem:[#allocation2 + $0x70] sm:$0xff] %vm4665_vm6, %v4646_v13  ;;  %v7081_v13 = vld [vmem:[%s9673_s0 + $0x58] sm:$0xff] }
 0xd62   :  { %v4648_v36 = vpop.permute.xlu1 %4647 }
 0xd63   :  { %4681 = vst.msk [vmem:[#allocation2 + $0x78] sm:$0xff] %vm4665_vm6, %v4648_v36 }
 0xd66   :  { %v4696_v48 = vld [vmem:[#allocation2 + $0x70] sm:$0xff] }
 0xd6a   :  { %v4697_v10 = vld [vmem:[#allocation2 + $0x78] sm:$0xff] }
 0xd6b   :  { %v4705_v14 = vpack.c.bf16 %v4697_v10, %v4696_v48 }
 0xd6d   :  { %6594 = vmatmul.mubr.msk.bf16.gmra.mxu0 %vm58_vm0, %v4705_v14 }
 0xddc   :  { %v6583_v33 = vpop.f32.mrf.mxu0 }
 0xddd   :  { %v4783_v44 = vadd.f32 %v6583_v33, %v8892_v11 }
 0xdde   :  { %v4774_v15 = vpop.f32.mrf.mxu0 }
 0xddf   :  { %v4775_v8 = vadd.f32 %v4774_v15, %v8892_v11  ;;  %v8904_v32 = vadd.f32 %v7071_v60, %v4783_v44  ;;  %v7083_v60 = vld [vmem:[%s9673_s0 + $0x70] sm:$0xff] }
 0xde0   :  { %v6584_v4 = vpop.f32.mrf.mxu0 }
 0xde1   :  { %v8899_v41 = vadd.f32 %v7070_v59, %v4775_v8  ;;  %v4786_v58 = vadd.f32 %v6584_v4, %v8892_v11  ;;  %v4859_v61 = vsel %vm58_vm0, %v8904_v32, 0.0  ;;  %v7082_v4 = vld [vmem:[%s9673_s0 + $0x60] sm:$0xff] }
 0xde2   :  { %v4777_v20 = vpop.f32.mrf.mxu0 }
 0xde3   :  { %v4778_v23 = vadd.f32 %v4777_v20, %v8892_v11  ;;  %v4853_v42 = vsel %vm58_vm0, %v8899_v41, 0.0  ;;  %v8918_v1 = vadd.f32 %v7073_v27, %v4786_v58 }
 0xde4   :  { %4854 = vadd.xlane.f32.xlu0 %v4853_v42 }
 0xde5   :  { %v8913_v50 = vadd.f32 %v7072_v55, %v4778_v23  ;;  %v6587_v29 = vpop.f32.mrf.mxu0  ;;  %v4862_v30 = vsel %vm58_vm0, %v8918_v1, 0.0 }
 0xde6   :  { %v4799_v35 = vadd.f32 %v6587_v29, %v8892_v11  ;;  %v7084_v29 = vld [vmem:[%s9673_s0 + $0x68] sm:$0xff] }
 0xde7   :  { %v4790_v16 = vpop.f32.mrf.mxu0  ;;  %v4856_v57 = vsel %vm58_vm0, %v8913_v50, 0.0 }
 0xde8   :  { %v4791_v53 = vadd.f32 %v4790_v16, %v8892_v11  ;;  %4857 = vadd.xlane.f32.xlu1 %v4856_v57  ;;  %4860 = vadd.xlane.f32.xlu0 %v4859_v61  ;;  %v8943_v6 = vadd.f32 %v7076_v49, %v4799_v35  ;;  %v7085_v16 = vld [vmem:[%s9673_s0 + $0x78] sm:$0xff] }
 0xde9   :  { %v6588_v54 = vpop.f32.mrf.mxu0 }
 0xdea   :  { %v8929_v63 = vadd.f32 %v7074_v46, %v4791_v53  ;;  %v4802_v38 = vadd.f32 %v6588_v54, %v8892_v11  ;;  %v4871_v31 = vsel %vm58_vm0, %v8943_v6, 0.0 }
 0xdeb   :  { %v4793_v18 = vpop.f32.mrf.mxu0 }
 0xdec   :  { %9711 = vst [vmem:[#allocation6_spill] sm:$0xff] %v8929_v63  ;;  %v4794_v0 = vadd.f32 %v4793_v18, %v8892_v11  ;;  %4863 = vadd.xlane.f32.xlu0 %v4862_v30  ;;  %v4865_v25 = vsel %vm58_vm0, %v8929_v63, 0.0  ;;  %v8950_v40 = vadd.f32 %v7077_v5, %v4802_v38 }
 0xded   :  { %v6591_v2 = vpop.f32.mrf.mxu0 }
 0xdee   :  { %v8938_v19 = vadd.f32 %v7075_v51, %v4794_v0  ;;  %9713 = vst [vmem:[#allocation4_spill] sm:$0xff] %v8950_v40  ;;  %v4815_v3 = vadd.f32 %v6591_v2, %v8892_v11  ;;  %v4874_v52 = vsel %vm58_vm0, %v8950_v40, 0.0 }
 0xdef   :  { %v4806_v62 = vpop.f32.mrf.mxu0 }
 0xdf0   :  { %9712 = vst [vmem:[#allocation7_spill] sm:$0xff] %v8938_v19  ;;  %v4807_v26 = vadd.f32 %v4806_v62, %v8892_v11  ;;  %v4868_v56 = vsel %vm58_vm0, %v8938_v19, 0.0  ;;  %4866 = vadd.xlane.f32.xlu0 %v4865_v25  ;;  %v8975_v34 = vadd.f32 %v7080_v28, %v4815_v3 }
 0xdf1   :  { %4869 = vadd.xlane.f32.xlu1 %v4868_v56  ;;  %v6592_v9 = vpop.f32.mrf.mxu0 }
 0xdf2   :  { %v8959_v37 = vadd.f32 %v7078_v7, %v4807_v26  ;;  %v4818_v24 = vadd.f32 %v6592_v9, %v8892_v11  ;;  %9716 = vst [vmem:[#allocation9_spill] sm:$0xff] %v8975_v34  ;;  %v4883_v10 = vsel %vm58_vm0, %v8975_v34, 0.0 }
 0xdf3   :  { %v4809_v22 = vpop.f32.mrf.mxu0 }
 0xdf4   :  { %9714 = vst [vmem:[#allocation5_spill] sm:$0xff] %v8959_v37  ;;  %v4810_v45 = vadd.f32 %v4809_v22, %v8892_v11  ;;  %4872 = vadd.xlane.f32.xlu0 %v4871_v31  ;;  %v4877_v47 = vsel %vm58_vm0, %v8959_v37, 0.0  ;;  %v8982_v36 = vadd.f32 %v7081_v13, %v4818_v24 }
 0xdf5   :  { %4875 = vadd.xlane.f32.xlu1 %v4874_v52 }
 0xdf6   :  { %v8970_v12 = vadd.f32 %v7079_v17, %v4810_v45  ;;  %9717 = vst [vmem:[#allocation3_spill] sm:$0xff] %v8982_v36  ;;  %v4886_v14 = vsel %vm58_vm0, %v8982_v36, 0.0 }
 0xdf8   :  { %9715 = vst [vmem:[#allocation8_spill] sm:$0xff] %v8970_v12  ;;  %v4880_v48 = vsel %vm58_vm0, %v8970_v12, 0.0  ;;  %4878 = vadd.xlane.f32.xlu0 %v4877_v47 }
 0xdf9   :  { %4881 = vadd.xlane.f32.xlu1 %v4880_v48 }
 0xdfc   :  { %4884 = vadd.xlane.f32.xlu0 %v4883_v10 }
 0xdfd   :  { %4887 = vadd.xlane.f32.xlu1 %v4886_v14 }
 0xe2d   :  { %v6595_v43 = vpop.f32.mrf.mxu0 }
 0xe2e   :  { %v4831_v15 = vadd.f32 %v6595_v43, %v8892_v11 }
 0xe2f   :  { %v4822_v33 = vpop.f32.mrf.mxu0 }
 0xe30   :  { %v4823_v44 = vadd.f32 %v4822_v33, %v8892_v11  ;;  %v9000_v58 = vadd.f32 %v7083_v60, %v4831_v15 }
 0xe31   :  { %v6596_v8 = vpop.f32.mrf.mxu0 }
 0xe32   :  { %v8995_v59 = vadd.f32 %v7082_v4, %v4823_v44  ;;  %9719 = vst [vmem:[#allocation11_spill] sm:$0xff] %v9000_v58  ;;  %v4834_v23 = vadd.f32 %v6596_v8, %v8892_v11 }
 0xe33   :  { %v4825_v20 = vpop.f32.mrf.mxu0 }
 0xe34   :  { %9718 = vst [vmem:[#allocation10_spill] sm:$0xff] %v8995_v59  ;;  %v4826_v42 = vadd.f32 %v4825_v20, %v8892_v11  ;;  %v4889_v55 = vsel %vm58_vm0, %v8995_v59, 0.0  ;;  %v9014_v57 = vadd.f32 %v7085_v16, %v4834_v23  ;;  %v4895_v11 = vsel %vm58_vm0, %v9000_v58, 0.0 }
 0xe35   :  { %4890 = vadd.xlane.f32.xlu0 %v4889_v55 }
 0xe36   :  { %v9009_v27 = vadd.f32 %v7084_v29, %v4826_v42  ;;  %9721 = vst [vmem:[#allocation13_spill] sm:$0xff] %v9014_v57  ;;  %v4898_v53 = vsel %vm58_vm0, %v9014_v57, 0.0 }
 0xe38   :  { %9720 = vst [vmem:[#allocation12_spill] sm:$0xff] %v9009_v27  ;;  %v4892_v61 = vsel %vm58_vm0, %v9009_v27, 0.0 }
 0xe39   :  { %4893 = vadd.xlane.f32.xlu1 %v4892_v61  ;;  %4896 = vadd.xlane.f32.xlu0 %v4895_v11 }
 0xe3d   :  { %4899 = vadd.xlane.f32.xlu1 %v4898_v53 }
 0xe6d   :  { %v4855_v54 = vpop.xlane.xlu0 %4854 }
 0xe6e   :  { %v4901_v35 = vmul.f32 0.03125, %v4855_v54 }
 0xe70   :  { %v9023_v46 = vsub.f32 %v8899_v41, %v4901_v35 }
 0xe71   :  { %v4858_v18 = vpop.xlane.xlu1 %4857  ;;  %v4861_v30 = vpop.xlane.xlu0 %4860 }
 0xe72   :  { %v4902_v38 = vmul.f32 0.03125, %v4858_v18  ;;  %v4903_v0 = vmul.f32 0.03125, %v4861_v30  ;;  %v4933_v2 = vmul.f32 %v9023_v46, %v9023_v46 }
 0xe74   :  { %v9028_v51 = vsub.f32 %v8913_v50, %v4902_v38  ;;  %v9031_v49 = vsub.f32 %v8904_v32, %v4903_v0  ;;  %v4949_v62 = vsel %vm58_vm0, %v4933_v2, 0.0 }
 0xe75   :  { %4950 = vadd.xlane.f32.xlu0 %v4949_v62  ;;  %v4864_v25 = vpop.xlane.xlu0 %4863 }
 0xe76   :  { %v4904_v5 = vmul.f32 0.03125, %v4864_v25  ;;  %v4934_v26 = vmul.f32 %v9028_v51, %v9028_v51  ;;  %v4935_v56 = vmul.f32 %v9031_v49, %v9031_v49 }
 0xe78   :  { %v9039_v9 = vsub.f32 %v8918_v1, %v4904_v5  ;;  %v4952_v3 = vsel %vm58_vm0, %v4934_v26, 0.0  ;;  %v4955_v7 = vsel %vm58_vm0, %v4935_v56, 0.0 }
 0xe79   :  { %4953 = vadd.xlane.f32.xlu1 %v4952_v3  ;;  %4956 = vadd.xlane.f32.xlu0 %v4955_v7  ;;  %v4867_v22 = vpop.xlane.xlu0 %4866 }
 0xe7a   :  { %v4870_v31 = vpop.xlane.xlu1 %4869  ;;  %v4905_v24 = vmul.f32 0.03125, %v4867_v22  ;;  %v4936_v45 = vmul.f32 %v9039_v9, %v9039_v9  ;;  %v40_v22 = vld [vmem:[%s9674_s3 + $0x10] sm:$0xff] }
 0xe7b   :  { %v4906_v52 = vmul.f32 0.03125, %v4870_v31  ;;  %v41_v31 = vld [vmem:[%s9674_s3 + $0x18] sm:$0xff] }
 0xe7c   :  { %v9046_v17 = vsub.f32 %v8929_v63, %v4905_v24  ;;  %v4958_v28 = vsel %vm58_vm0, %v4936_v45, 0.0  ;;  %v5982_v24 = vcombine.high %v40_v22, %v41_v31  ;;  %v38_v45 = vld [vmem:[%s9674_s3] sm:$0xff] }
 0xe7d   :  { %v9050_v47 = vsub.f32 %v8938_v19, %v4906_v52  ;;  %4959 = vadd.xlane.f32.xlu1 %v4958_v28  ;;  %v4873_v13 = vpop.xlane.xlu0 %4872  ;;  %v39_v52 = vld [vmem:[%s9674_s3 + $0x8] sm:$0xff] }
 0xe7e   :  { %v4876_v48 = vpop.xlane.xlu1 %4875  ;;  %v4907_v10 = vmul.f32 0.03125, %v4873_v13  ;;  %v4937_v14 = vmul.f32 %v9046_v17, %v9046_v17  ;;  %6597 = vmatprep.subr.bf16.mxu1 %v5982_v24  ;;  %v5981_v28 = vcombine.high %v38_v45, %v39_v52 }
 0xe7f   :  { %v4908_v43 = vmul.f32 0.03125, %v4876_v48  ;;  %v4938_v33 = vmul.f32 %v9050_v47, %v9050_v47  ;;  %6598 = vmatpush3.bf16.msra.mxu1 %v5982_v24 }
 0xe80   :  { %v9057_v15 = vsub.f32 %v8943_v6, %v4907_v10  ;;  %v4961_v44 = vsel %vm58_vm0, %v4937_v14, 0.0  ;;  %6599 = vmatprep.subr.bf16.mxu1 %v5981_v28 }
 0xe81   :  { %v9061_v8 = vsub.f32 %v8950_v40, %v4908_v43  ;;  %v4964_v4 = vsel %vm58_vm0, %v4938_v33, 0.0  ;;  %4962 = vadd.xlane.f32.xlu0 %v4961_v44  ;;  %v4879_v20 = vpop.xlane.xlu0 %4878 }
 0xe82   :  { %v4882_v60 = vpop.xlane.xlu1 %4881  ;;  %4965 = vadd.xlane.f32.xlu1 %v4964_v4  ;;  %v4909_v23 = vmul.f32 0.03125, %v4879_v20  ;;  %v4939_v42 = vmul.f32 %v9057_v15, %v9057_v15 }
 0xe83   :  { %v4910_v55 = vmul.f32 0.03125, %v4882_v60  ;;  %v4940_v29 = vmul.f32 %v9061_v8, %v9061_v8  ;;  %6600 = vmatpush3.bf16.msra.mxu1 %v5981_v28 }
 0xe84   :  { %v9069_v16 = vsub.f32 %v8959_v37, %v4909_v23  ;;  %v4967_v61 = vsel %vm58_vm0, %v4939_v42, 0.0 }
 0xe85   :  { %v9073_v11 = vsub.f32 %v8970_v12, %v4910_v55  ;;  %v4970_v53 = vsel %vm58_vm0, %v4940_v29, 0.0  ;;  %4968 = vadd.xlane.f32.xlu0 %v4967_v61  ;;  %v4885_v54 = vpop.xlane.xlu0 %4884 }
 0xe86   :  { %v4888_v35 = vpop.xlane.xlu1 %4887  ;;  %4971 = vadd.xlane.f32.xlu1 %v4970_v53  ;;  %v4911_v18 = vmul.f32 0.03125, %v4885_v54  ;;  %v4941_v30 = vmul.f32 %v9069_v16, %v9069_v16 }
 0xe87   :  { %v4912_v38 = vmul.f32 0.03125, %v4888_v35  ;;  %v4942_v0 = vmul.f32 %v9073_v11, %v9073_v11 }
 0xe88   :  { %v9081_v2 = vsub.f32 %v8975_v34, %v4911_v18  ;;  %v4973_v62 = vsel %vm58_vm0, %v4941_v30, 0.0 }
 0xe89   :  { %v9085_v25 = vsub.f32 %v8982_v36, %v4912_v38  ;;  %v4976_v5 = vsel %vm58_vm0, %v4942_v0, 0.0  ;;  %4974 = vadd.xlane.f32.xlu0 %v4973_v62 }
 0xe8a   :  { %4977 = vadd.xlane.f32.xlu1 %v4976_v5  ;;  %v4943_v26 = vmul.f32 %v9081_v2, %v9081_v2 }
 0xe8b   :  { %v4944_v56 = vmul.f32 %v9085_v25, %v9085_v25 }
 0xe8c   :  { %v4979_v3 = vsel %vm58_vm0, %v4943_v26, 0.0 }
 0xe8d   :  { %v4982_v7 = vsel %vm58_vm0, %v4944_v56, 0.0  ;;  %4980 = vadd.xlane.f32.xlu0 %v4979_v3 }
 0xe8e   :  { %4983 = vadd.xlane.f32.xlu1 %v4982_v7 }
 0xebe   :  { %v4891_v13 = vpop.xlane.xlu0 %4890 }
 0xebf   :  { %v4913_v48 = vmul.f32 0.03125, %v4891_v13 }
 0xec1   :  { %v9107_v10 = vsub.f32 %v8995_v59, %v4913_v48  ;;  %v5063_v48 = vsub.s32 4, %v9710_v21 }
 0xec2   :  { %v4894_v14 = vpop.xlane.xlu1 %4893  ;;  %v4897_v43 = vpop.xlane.xlu0 %4896 }
 0xec3   :  { %v4914_v33 = vmul.f32 0.03125, %v4894_v14  ;;  %v4915_v44 = vmul.f32 0.03125, %v4897_v43  ;;  %v4945_v4 = vmul.f32 %v9107_v10, %v9107_v10 }
 0xec5   :  { %v9112_v20 = vsub.f32 %v9009_v27, %v4914_v33  ;;  %v9115_v60 = vsub.f32 %v9000_v58, %v4915_v44  ;;  %v4985_v23 = vsel %vm58_vm0, %v4945_v4, 0.0 }
 0xec6   :  { %v4900_v42 = vpop.xlane.xlu1 %4899  ;;  %4986 = vadd.xlane.f32.xlu0 %v4985_v23 }
 0xec7   :  { %v4916_v55 = vmul.f32 0.03125, %v4900_v42  ;;  %v4946_v29 = vmul.f32 %v9112_v20, %v9112_v20  ;;  %v4947_v61 = vmul.f32 %v9115_v60, %v9115_v60 }
 0xec9   :  { %v9123_v53 = vsub.f32 %v9014_v57, %v4916_v55  ;;  %v4988_v54 = vsel %vm58_vm0, %v4946_v29, 0.0  ;;  %v4991_v35 = vsel %vm58_vm0, %v4947_v61, 0.0  ;;  %v9132_v55 = vrot.slane %v8889_v39, %v5063_v48 }
 0xeca   :  { %4989 = vadd.xlane.f32.xlu1 %v4988_v54  ;;  %4992 = vadd.xlane.f32.xlu0 %v4991_v35  ;;  %v5083_v61 = vsub.s32 5, %v9710_v21 }
 0xecb   :  { %v4948_v18 = vmul.f32 %v9123_v53, %v9123_v53 }
 0xecd   :  { %v4994_v30 = vsel %vm58_vm0, %v4948_v18, 0.0 }
 0xece   :  { %4995 = vadd.xlane.f32.xlu1 %v4994_v30 }
 0xefe   :  { %v4951_v38 = vpop.xlane.xlu0 %4950 }
 0xeff   :  { %v4997_v0 = vmul.f32 0.03125, %v4951_v38 }
 0xf01   :  { %v5013_v62 = vadd.f32 1e-05, %v4997_v0 }
 0xf02   :  { %v4954_v5 = vpop.xlane.xlu1 %4953  ;;  %v4957_v26 = vpop.xlane.xlu0 %4956 }
 0xf03   :  { %6971 = vrsqrt.f32 %v5013_v62  ;;  %v4998_v56 = vmul.f32 0.03125, %v4954_v5  ;;  %v4999_v3 = vmul.f32 0.03125, %v4957_v26 }
 0xf05   :  { %v5014_v7 = vadd.f32 1e-05, %v4998_v56  ;;  %v5015_v22 = vadd.f32 1e-05, %v4999_v3  ;;  %v9138_v56 = vrot.slane %v8889_v39, %v5083_v61 }
 0xf06   :  { %v4960_v31 = vpop.xlane.xlu1 %4959 }
 0xf07   :  { %6973 = vrsqrt.f32 %v5014_v7  ;;  %v5000_v24 = vmul.f32 0.03125, %v4960_v31 }
 0xf08   :  { %6975 = vrsqrt.f32 %v5015_v22 }
 0xf09   :  { %v5016_v45 = vadd.f32 1e-05, %v5000_v24 }
 0xf0a   :  { %v4963_v52 = vpop.xlane.xlu0 %4962 }
 0xf0b   :  { %6977 = vrsqrt.f32 %v5016_v45  ;;  %v4966_v28 = vpop.xlane.xlu1 %4965  ;;  %v5001_v13 = vmul.f32 0.03125, %v4963_v52 }
 0xf0c   :  { %v5002_v14 = vmul.f32 0.03125, %v4966_v28 }
 0xf0d   :  { %v5017_v43 = vadd.f32 1e-05, %v5001_v13 }
 0xf0e   :  { %v5018_v33 = vadd.f32 1e-05, %v5002_v14  ;;  %v4969_v44 = vpop.xlane.xlu0 %4968 }
 0xf0f   :  { %6979 = vrsqrt.f32 %v5017_v43  ;;  %v4972_v4 = vpop.xlane.xlu1 %4971  ;;  %v5003_v23 = vmul.f32 0.03125, %v4969_v44 }
 0xf10   :  { %v6972_v42 = vpop.eup %6971  ;;  %6981 = vrsqrt.f32 %v5018_v33  ;;  %v5004_v29 = vmul.f32 0.03125, %v4972_v4 }
 0xf11   :  { %v5019_v54 = vadd.f32 1e-05, %v5003_v23  ;;  %v5045_v35 = vmul.f32 %v6972_v42, %v9023_v46 }
 0xf12   :  { %v5020_v18 = vadd.f32 1e-05, %v5004_v29  ;;  %v4975_v30 = vpop.xlane.xlu0 %4974 }
 0xf13   :  { %6983 = vrsqrt.f32 %v5019_v54  ;;  %v4978_v38 = vpop.xlane.xlu1 %4977  ;;  %v5005_v0 = vmul.f32 0.03125, %v4975_v30  ;;  %v5065_v26 = vmul.f32 %v9132_v55, %v5045_v35 }
 0xf14   :  { %v6974_v62 = vpop.eup %6973  ;;  %6985 = vrsqrt.f32 %v5020_v18  ;;  %v5006_v5 = vmul.f32 0.03125, %v4978_v38 }
 0xf15   :  { %v6976_v3 = vpop.eup %6975  ;;  %v5021_v7 = vadd.f32 1e-05, %v5005_v0  ;;  %v5046_v22 = vmul.f32 %v6974_v62, %v9028_v51  ;;  %v5085_v14 = vadd.f32 %v9138_v56, %v5065_v26 }
 0xf16   :  { %v5047_v31 = vmul.f32 %v6976_v3, %v9031_v49  ;;  %v5022_v46 = vadd.f32 1e-05, %v5006_v5  ;;  %v4981_v24 = vpop.xlane.xlu0 %4980 }
 0xf17   :  { %6987 = vrsqrt.f32 %v5021_v7  ;;  %v4984_v45 = vpop.xlane.xlu1 %4983  ;;  %v5007_v52 = vmul.f32 0.03125, %v4981_v24  ;;  %v5066_v28 = vmul.f32 %v9132_v55, %v5046_v22 }
 0xf18   :  { %v6978_v13 = vpop.eup %6977  ;;  %6989 = vrsqrt.f32 %v5022_v46  ;;  %v5008_v48 = vmul.f32 0.03125, %v4984_v45  ;;  %v5067_v43 = vmul.f32 %v9132_v55, %v5047_v31 }
 0xf19   :  { %v5048_v33 = vmul.f32 %v6978_v13, %v9039_v9  ;;  %v5023_v44 = vadd.f32 1e-05, %v5007_v52  ;;  %v5086_v51 = vadd.f32 %v9138_v56, %v5066_v28 }
 0xf1a   :  { %v5024_v49 = vadd.f32 1e-05, %v5008_v48  ;;  %v5087_v61 = vadd.f32 %v9138_v56, %v5067_v43 }
 0xf1b   :  { %v5068_v4 = vmul.f32 %v9132_v55, %v5048_v33  ;;  %6991 = vrsqrt.f32 %v5023_v44  ;;  %v5101_v23 = vpack.c.bf16 %v5086_v51, %v5085_v14 }
 0xf1c   :  { %v6980_v42 = vpop.eup %6979  ;;  %6993 = vrsqrt.f32 %v5024_v49 }
 0xf1d   :  { %v6982_v29 = vpop.eup %6981  ;;  %6601 = vmatprep.mubr.msk.bf16.mxu1 %vm58_vm0, %v5101_v23  ;;  %v5088_v54 = vadd.f32 %v9138_v56, %v5068_v4  ;;  %v5049_v35 = vmul.f32 %v6980_v42, %v9046_v17 }
 0xf1e   :  { %v5050_v9 = vmul.f32 %v6982_v29, %v9050_v47 }
 0xf1f   :  { %v5102_v18 = vpack.c.bf16 %v5088_v54, %v5087_v61  ;;  %v5069_v30 = vmul.f32 %v9132_v55, %v5049_v35 }
 0xf20   :  { %v6984_v38 = vpop.eup %6983  ;;  %v5070_v0 = vmul.f32 %v9132_v55, %v5050_v9 }
 0xf21   :  { %v6986_v62 = vpop.eup %6985  ;;  %v5051_v5 = vmul.f32 %v6984_v38, %v9057_v15  ;;  %6602 = vmatmul.mubr.msk.bf16.vlgmr.msra.gmra.mxu1 %vm58_vm0, %v5102_v18  ;;  %v5089_v26 = vadd.f32 %v9138_v56, %v5069_v30 }
 0xf22   :  { %v5052_v3 = vmul.f32 %v6986_v62, %v9061_v8  ;;  %v5090_v7 = vadd.f32 %v9138_v56, %v5070_v0 }
 0xf23   :  { %v5071_v17 = vmul.f32 %v9132_v55, %v5051_v5 }
 0xf24   :  { %v6988_v47 = vpop.eup %6987  ;;  %v5103_v22 = vpack.c.bf16 %v5090_v7, %v5089_v26  ;;  %v5072_v31 = vmul.f32 %v9132_v55, %v5052_v3 }
 0xf25   :  { %v6990_v46 = vpop.eup %6989  ;;  %v5091_v24 = vadd.f32 %v9138_v56, %v5071_v17  ;;  %v5053_v45 = vmul.f32 %v6988_v47, %v9069_v16 }
 0xf26   :  { %6605 = vmatprep.mubr.msk.bf16.mxu1 %vm58_vm0, %v5103_v22  ;;  %v5092_v15 = vadd.f32 %v9138_v56, %v5072_v31  ;;  %v5054_v52 = vmul.f32 %v6990_v46, %v9073_v11 }
 0xf27   :  { %v5073_v8 = vmul.f32 %v9132_v55, %v5053_v45 }
 0xf28   :  { %v6992_v28 = vpop.eup %6991  ;;  %v5104_v13 = vpack.c.bf16 %v5092_v15, %v5091_v24  ;;  %v5074_v48 = vmul.f32 %v9132_v55, %v5054_v52 }
 0xf29   :  { %v6994_v14 = vpop.eup %6993  ;;  %v5055_v43 = vmul.f32 %v6992_v28, %v9081_v2  ;;  %v5093_v33 = vadd.f32 %v9138_v56, %v5073_v8 }
 0xf2a   :  { %v5056_v44 = vmul.f32 %v6994_v14, %v9085_v25  ;;  %6606 = vmatmul.mubr.msk.bf16.gmra.mxu1 %vm58_vm0, %v5104_v13  ;;  %v5094_v16 = vadd.f32 %v9138_v56, %v5074_v48  ;;  %v6676_v13 = vld [vmem:[%s9677_s4 + $0x30] sm:$0xff]   ;;  %v6679_v48 = vld [vmem:[%s9677_s4 + $0x18] sm:$0xff]  }
 0xf2b   :  { %v5075_v51 = vmul.f32 %v9132_v55, %v5055_v43  ;;  %v6680_v14 = vld [vmem:[%s9677_s4 + $0x10] sm:$0xff]   ;;  %v6681_v43 = vld [vmem:[%s9677_s4 + $0x8] sm:$0xff]  }
 0xf2c   :  { %v5105_v11 = vpack.c.bf16 %v5094_v16, %v5093_v33  ;;  %v5076_v49 = vmul.f32 %v9132_v55, %v5056_v44  ;;  %v6682_v33 = vld [vmem:[%s9677_s4] sm:$0xff]   ;;  %v5111_v44 = vsub.s32 6, %v9710_v21 }
 0xf2d   :  { %v5095_v4 = vadd.f32 %v9138_v56, %v5075_v51 }
 0xf2e   :  { %6609 = vmatprep.mubr.msk.bf16.mxu1 %vm58_vm0, %v5105_v11  ;;  %v5096_v23 = vadd.f32 %v9138_v56, %v5076_v49  ;;  %v9220_v16 = vrot.slane %v8889_v39, %v5111_v44 }
 0xf30   :  { %v5106_v2 = vpack.c.bf16 %v5096_v23, %v5095_v4 }
 0xf32   :  { %6610 = vmatmul.mubr.msk.bf16.gmra.mxu1 %vm58_vm0, %v5106_v2 }
 0xf4f   :  { %v4987_v42 = vpop.xlane.xlu0 %4986 }
 0xf50   :  { %v5009_v25 = vmul.f32 0.03125, %v4987_v42 }
 0xf52   :  { %v5025_v29 = vadd.f32 1e-05, %v5009_v25 }
 0xf53   :  { %v4990_v61 = vpop.xlane.xlu1 %4989  ;;  %v4993_v54 = vpop.xlane.xlu0 %4992 }
 0xf54   :  { %6995 = vrsqrt.f32 %v5025_v29  ;;  %v5010_v35 = vmul.f32 0.03125, %v4990_v61  ;;  %v5011_v9 = vmul.f32 0.03125, %v4993_v54 }
 0xf56   :  { %v5026_v18 = vadd.f32 1e-05, %v5010_v35  ;;  %v5027_v30 = vadd.f32 1e-05, %v5011_v9 }
 0xf57   :  { %v4996_v38 = vpop.xlane.xlu1 %4995 }
 0xf58   :  { %6997 = vrsqrt.f32 %v5026_v18  ;;  %v5012_v0 = vmul.f32 0.03125, %v4996_v38 }
 0xf59   :  { %6999 = vrsqrt.f32 %v5027_v30 }
 0xf5a   :  { %v5028_v62 = vadd.f32 1e-05, %v5012_v0 }
 0xf5c   :  { %7001 = vrsqrt.f32 %v5028_v62 }
 0xf61   :  { %v6996_v5 = vpop.eup %6995 }
 0xf62   :  { %v5057_v26 = vmul.f32 %v6996_v5, %v9107_v10 }
 0xf64   :  { %v5077_v47 = vmul.f32 %v9132_v55, %v5057_v26 }
 0xf65   :  { %v6998_v3 = vpop.eup %6997 }
 0xf66   :  { %v7000_v7 = vpop.eup %6999  ;;  %v5058_v17 = vmul.f32 %v6998_v3, %v9112_v20  ;;  %v5097_v45 = vadd.f32 %v9138_v56, %v5077_v47 }
 0xf67   :  { %v5059_v22 = vmul.f32 %v7000_v7, %v9115_v60 }
 0xf68   :  { %v5078_v31 = vmul.f32 %v9132_v55, %v5058_v17 }
 0xf69   :  { %v7002_v46 = vpop.eup %7001  ;;  %v5079_v52 = vmul.f32 %v9132_v55, %v5059_v22 }
 0xf6a   :  { %v5060_v24 = vmul.f32 %v7002_v46, %v9123_v53  ;;  %v5098_v15 = vadd.f32 %v9138_v56, %v5078_v31  ;;  %v6675_v53 = vld [vmem:[%s9677_s4 + $0x38] sm:$0xff]  }
 0xf6b   :  { %v5099_v20 = vadd.f32 %v9138_v56, %v5079_v52  ;;  %6617 = vmatprep.subr.bf16.mxu0 %v6675_v53 }
 0xf6c   :  { %v5107_v10 = vpack.c.bf16 %v5098_v15, %v5097_v45  ;;  %v5080_v8 = vmul.f32 %v9132_v55, %v5060_v24  ;;  %6618 = vmatpush3.bf16.msra.mxu0 %v6675_v53  ;;  %v6677_v55 = vld [vmem:[%s9677_s4 + $0x28] sm:$0xff]  }
 0xf6d   :  { %6619 = vmatprep.subr.bf16.mxu0 %v6676_v13 }
 0xf6e   :  { %6613 = vmatprep.mubr.msk.bf16.mxu1 %vm58_vm0, %v5107_v10  ;;  %v5100_v60 = vadd.f32 %v9138_v56, %v5080_v8  ;;  %v6678_v56 = vld [vmem:[%s9677_s4 + $0x20] sm:$0xff]  }
 0xf70   :  { %v5108_v28 = vpack.c.bf16 %v5100_v60, %v5099_v20  ;;  %6620 = vmatpush3.bf16.msra.mxu0 %v6676_v13 }
 0xf71   :  { %6621 = vmatprep.subr.bf16.mxu0 %v6677_v55 }
 0xf72   :  { %6614 = vmatmul.mubr.msk.bf16.gmra.mxu1 %vm58_vm0, %v5108_v28 }
 0xf74   :  { %6622 = vmatpush3.bf16.msra.mxu0 %v6677_v55 }
 0xf75   :  { %6623 = vmatprep.subr.bf16.mxu0 %v6678_v56 }
 0xf78   :  { %6624 = vmatpush3.bf16.msra.mxu0 %v6678_v56 }
 0xf79   :  { %6625 = vmatprep.subr.bf16.mxu0 %v6679_v48 }
 0xf7c   :  { %6626 = vmatpush3.bf16.msra.mxu0 %v6679_v48 }
 0xf7d   :  { %6627 = vmatprep.subr.bf16.mxu0 %v6680_v14 }
 0xf80   :  { %6628 = vmatpush3.bf16.msra.mxu0 %v6680_v14 }
 0xf81   :  { %6629 = vmatprep.subr.bf16.mxu0 %v6681_v43 }
 0xf84   :  { %6630 = vmatpush3.bf16.msra.mxu0 %v6681_v43 }
 0xf85   :  { %6631 = vmatprep.subr.bf16.mxu0 %v6682_v33 }
 0xf88   :  { %6632 = vmatpush3.bf16.msra.mxu0 %v6682_v33 }
 0xfe1   :  { %v6603_v51 = vpop.f32.mrf.mxu1 }
 0xfe2   :  { %v5188_v11 = vadd.f32 %v6603_v51, %v9220_v16  ;;  %v9683_v51 = vmov -1.0  }
 0xfe3   :  { %v5179_v49 = vpop.f32.mrf.mxu1 }
 0xfe4   :  { %v5260_v4 = vmul.f32 0.70710677, %v5188_v11  ;;  %v5180_v23 = vadd.f32 %v5179_v49, %v9220_v16  ;;  %v9253_v60 = vmul.f32 0.5, %v5188_v11 }
 0xfe5   :  { %v6604_v2 = vpop.f32.mrf.mxu1 }
 0xfe6   :  { %v5308_v42 = vand.u32 2147483647, %v5260_v4  ;;  %v5258_v25 = vmul.f32 0.70710677, %v5180_v23  ;;  %v5191_v29 = vadd.f32 %v6604_v2, %v9220_v16  ;;  %vm5276_vm7 = vcmp.ge.f32.partialorder %v5260_v4, 0.0 }
 0xfe7   :  { %v5182_v61 = vpop.f32.mrf.mxu1  ;;  %v9257_v13 = vmul.f32 0.5, %v5180_v23  ;;  %v9268_v11 = vsel %vm5276_vm7, 1.0, %v9683_v51 }
 0xfe8   :  { %v5324_v54 = vmul.f32 0.3275911, %v5308_v42  ;;  %v5306_v35 = vand.u32 2147483647, %v5258_v25  ;;  %v9225_v9 = vmul.f32 0.70710677, %v5191_v29  ;;  %v9228_v39 = vadd.f32 %v5182_v61, %v9220_v16 }
 0xfe9   :  { %v5564_v52 = vsub.f32 0.0, %v5308_v42  ;;  %vm5274_vm8 = vcmp.ge.f32.partialorder %v5258_v25, 0.0  ;;  %v9279_v25 = vmul.f32 0.5, %v5191_v29 }
 0xfea   :  { %v5340_v18 = vadd.f32 1.0, %v5324_v54  ;;  %v5322_v30 = vmul.f32 0.3275911, %v5306_v35  ;;  %v6607_v38 = vpop.f32.mrf.mxu1  ;;  %v5309_v0 = vand.u32 2147483647, %v9225_v9  ;;  %v5562_v55 = vsub.f32 0.0, %v5306_v35 }
 0xfeb   :  { %v9232_v62 = vmul.f32 0.70710677, %v9228_v39  ;;  %v9236_v47 = vadd.f32 %v6607_v38, %v9220_v16  ;;  %v5580_v14 = vmul.f32 %v5564_v52, %v5308_v42  ;;  %v9271_v49 = vsel %vm5274_vm8, 1.0, %v9683_v51 }
 0xfec   :  { %7003 = vrcp.f32 %v5340_v18  ;;  %v5338_v5 = vadd.f32 1.0, %v5322_v30  ;;  %v5195_v26 = vpop.f32.mrf.mxu1  ;;  %v5325_v3 = vmul.f32 0.3275911, %v5309_v0  ;;  %v5565_v43 = vsub.f32 0.0, %v5309_v0 }
 0xfed   :  { %v5307_v7 = vand.u32 2147483647, %v9232_v62  ;;  %v9239_v46 = vadd.f32 %v5195_v26, %v9220_v16  ;;  %v9242_v24 = vmul.f32 0.70710677, %v9236_v47  ;;  %v5578_v30 = vmul.f32 %v5562_v55, %v5306_v35 }
 0xfee   :  { %7005 = vrcp.f32 %v5338_v5  ;;  %v5341_v17 = vadd.f32 1.0, %v5325_v3  ;;  %v6608_v22 = vpop.f32.mrf.mxu1  ;;  %v5598_v3 = vmul.f32 1.442695, %v5580_v14  ;;  %vm5277_vm9 = vcmp.ge.f32.partialorder %v9225_v9, 0.0 }
 0xfef   :  { %v5323_v31 = vmul.f32 0.3275911, %v5307_v7  ;;  %v9247_v15 = vmul.f32 0.70710677, %v9239_v46  ;;  %v5312_v10 = vand.u32 2147483647, %v9242_v24  ;;  %v9251_v8 = vadd.f32 %v6608_v22, %v9220_v16 }
 0xff0   :  { %7007 = vrcp.f32 %v5341_v17  ;;  %v5198_v20 = vpop.f32.mrf.mxu1  ;;  %v5563_v42 = vsub.f32 0.0, %v5307_v7  ;;  %v5581_v22 = vmul.f32 %v5565_v43, %v5309_v0  ;;  %v9293_v35 = vmul.f32 0.5, %v9228_v39 }
 0xff1   :  { %v9244_v45 = vadd.f32 1.0, %v5323_v31  ;;  %v5328_v28 = vmul.f32 0.3275911, %v5312_v10  ;;  %v5310_v53 = vand.u32 2147483647, %v9247_v15  ;;  %v9263_v48 = vadd.f32 %v5198_v20, %v9220_v16 }
 0xff2   :  { %v9260_v56 = vmul.f32 0.70710677, %v9251_v8  ;;  %v5568_v38 = vsub.f32 0.0, %v5312_v10  ;;  %v5579_v55 = vmul.f32 %v5563_v42, %v5307_v7  ;;  %v5594_v43 = vmul.f32 1.442695, %v5578_v30 }
 0xff3   :  { %7009 = vrcp.f32 %v9244_v45  ;;  %v9265_v33 = vadd.f32 1.0, %v5328_v28  ;;  %v5326_v44 = vmul.f32 0.3275911, %v5310_v53  ;;  %v9277_v23 = vmul.f32 0.70710677, %v9263_v48 }
 0xff4   :  { %v9274_v4 = vand.u32 2147483647, %v9260_v56  ;;  %v5566_v20 = vsub.f32 0.0, %v5310_v53  ;;  %v5584_v27 = vmul.f32 %v5568_v38, %v5312_v10  ;;  %v5596_v30 = vmul.f32 1.442695, %v5579_v55 }
 0xff5   :  { %7011 = vrcp.f32 %v9265_v33  ;;  %v9282_v61 = vadd.f32 1.0, %v5326_v44  ;;  %v9287_v31 = vand.u32 2147483647, %v9277_v23  ;;  %v6611_v44 = vpop.f32.mrf.mxu1  ;;  %vm5275_vm10 = vcmp.ge.f32.partialorder %v9232_v62, 0.0 }
 0xff6   :  { %v5329_v26 = vmul.f32 0.3275911, %v9274_v4  ;;  %v5582_v7 = vmul.f32 %v5566_v20, %v5310_v53  ;;  %v5606_v38 = vmul.f32 1.442695, %v5584_v27  ;;  %v5569_v53 = vsub.f32 0.0, %v9274_v4 }
 0xff7   :  { %7013 = vrcp.f32 %v9282_v61  ;;  %v5327_v14 = vmul.f32 0.3275911, %v9287_v31  ;;  %vm5278_vm11 = vcmp.ge.f32.partialorder %v9247_v15, 0.0  ;;  %vm5280_vm12 = vcmp.ge.f32.partialorder %v9242_v24, 0.0 }
 0xff8   :  { %v9290_v28 = vadd.f32 1.0, %v5329_v26  ;;  %v9302_v26 = vadd.f32 %v6611_v44, %v9220_v16  ;;  %v5585_v9 = vmul.f32 %v5569_v53, %v9274_v4  ;;  %vm5281_vm13 = vcmp.ge.f32.partialorder %v9260_v56, 0.0 }
 0xff9   :  { %v7004_v2 = vpop.eup %7003  ;;  %v9299_v59 = vadd.f32 1.0, %v5327_v14  ;;  %vm5279_vm14 = vcmp.ge.f32.partialorder %v9277_v23, 0.0 }
 0xffa   :  { %v5372_v54 = vmul.f32 %v7004_v2, %v5340_v18  ;;  %7015 = vrcp.f32 %v9290_v28 }
 0xffb   :  { %v7006_v52 = vpop.eup %7005  ;;  %7017 = vpow2.f32 %v5598_v3 }
 0xffc   :  { %v5388_v29 = vsub.f32 2.0, %v5372_v54  ;;  %v5370_v18 = vmul.f32 %v7006_v52, %v5338_v5  ;;  %v5600_v5 = vmul.f32 1.442695, %v5581_v22  ;;  %7019 = vrcp.f32 %v9299_v59 }
 0xffd   :  { %v7008_v51 = vpop.eup %7007  ;;  %7021 = vpow2.f32 %v5594_v43 }
 0xffe   :  { %v9296_v0 = vmul.f32 %v7004_v2, %v5388_v29  ;;  %v5386_v54 = vsub.f32 2.0, %v5370_v18  ;;  %v5373_v57 = vmul.f32 %v7008_v51, %v5341_v17  ;;  %v9310_v29 = vmul.f32 0.70710677, %v9302_v26 }
 0xfff   :  { %7023 = vpow2.f32 %v5600_v5  ;;  %v9722_v18 = vmov -1.0  }
0x1000   :  { %v5420_v39 = vmul.f32 1.0614054, %v9296_v0  ;;  %v7010_v42 = vpop.eup %7009  ;;  %v9305_v58 = vmul.f32 %v7006_v52, %v5386_v54  ;;  %v5389_v2 = vsub.f32 2.0, %v5373_v57  ;;  %v5602_v52 = vmul.f32 1.442695, %v5582_v7 }
0x1001   :  { %v5371_v17 = vmul.f32 %v7010_v42, %v9244_v45  ;;  %v9320_v27 = vsel %vm5277_vm9, 1.0, %v9722_v18  ;;  %7025 = vpow2.f32 %v5596_v30  ;;  %v9326_v43 = vand.u32 2147483647, %v9310_v29 }
0x1002   :  { %v5436_v10 = vadd.f32 -1.4531521, %v5420_v39  ;;  %v5418_v44 = vmul.f32 1.0614054, %v9305_v58  ;;  %v9313_v3 = vmul.f32 %v7008_v51, %v5389_v2  ;;  %v7012_v55 = vpop.eup %7011  ;;  %7027 = vpow2.f32 %v5606_v38 }
0x1003   :  { %v5387_v57 = vsub.f32 2.0, %v5371_v17  ;;  %v5376_v5 = vmul.f32 %v7012_v55, %v9265_v33  ;;  %7029 = vpow2.f32 %v5602_v52  ;;  %v5332_v30 = vmul.f32 0.3275911, %v9326_v43 }
0x1004   :  { %v5452_v22 = vmul.f32 %v5436_v10, %v9296_v0  ;;  %v5434_v20 = vadd.f32 -1.4531521, %v5418_v44  ;;  %v5421_v45 = vmul.f32 1.0614054, %v9313_v3  ;;  %v5567_v44 = vsub.f32 0.0, %v9287_v31 }
0x1005   :  { %v9323_v51 = vmul.f32 %v7010_v42, %v5387_v57  ;;  %v7014_v42 = vpop.eup %7013  ;;  %v5392_v38 = vsub.f32 2.0, %v5376_v5  ;;  %vm5284_vm15 = vcmp.ge.f32.partialorder %v9310_v29, 0.0 }
0x1006   :  { %v5468_v14 = vadd.f32 1.4214138, %v5452_v22  ;;  %v5450_v54 = vmul.f32 %v5434_v20, %v9305_v58  ;;  %v5437_v39 = vadd.f32 -1.4531521, %v5421_v45  ;;  %v5374_v33 = vmul.f32 %v7014_v42, %v9282_v61 }
0x1007   :  { %v5419_v2 = vmul.f32 1.0614054, %v9323_v51  ;;  %v9337_v20 = vadd.f32 1.0, %v5332_v30  ;;  %v7016_v4 = vpop.eup %7015  ;;  %v9340_v52 = vmul.f32 %v7012_v55, %v5392_v38  ;;  %v5583_v38 = vmul.f32 %v5567_v44, %v9287_v31 }
0x1008   :  { %v5484_v7 = vmul.f32 %v5468_v14, %v9296_v0  ;;  %v5466_v10 = vadd.f32 1.4214138, %v5450_v54  ;;  %v5453_v17 = vmul.f32 %v5437_v39, %v9313_v3  ;;  %v5608_v14 = vmul.f32 1.442695, %v5585_v9 }
0x1009   :  { %v5435_v57 = vadd.f32 -1.4531521, %v5419_v2  ;;  %v5390_v5 = vsub.f32 2.0, %v5374_v33  ;;  %v5377_v12 = vmul.f32 %v7016_v4, %v9290_v28  ;;  %v5424_v30 = vmul.f32 1.0614054, %v9340_v52 }
0x100a   :  { %v5500_v22 = vadd.f32 -0.28449672, %v5484_v7  ;;  %v5482_v53 = vmul.f32 %v5466_v10, %v9305_v58  ;;  %v5469_v45 = vadd.f32 1.4214138, %v5453_v17  ;;  %v7018_v7 = vpop.eup %7017  ;;  %7031 = vrcp.f32 %v9337_v20 }
0x100b   :  { %v5451_v39 = vmul.f32 %v5435_v57, %v9323_v51  ;;  %v7020_v10 = vpop.eup %7019  ;;  %v9348_v55 = vmul.f32 %v7014_v42, %v5390_v5  ;;  %v5393_v9 = vsub.f32 2.0, %v5377_v12  ;;  %v5440_v33 = vadd.f32 -1.4531521, %v5424_v30 }
0x100c   :  { %v5516_v54 = vmul.f32 %v5500_v22, %v9296_v0  ;;  %v5498_v2 = vadd.f32 -0.28449672, %v5482_v53  ;;  %v5485_v61 = vmul.f32 %v5469_v45, %v9313_v3  ;;  %v5375_v28 = vmul.f32 %v7020_v10, %v9299_v59  ;;  %v7022_v53 = vpop.eup %7021 }
0x100d   :  { %v5467_v17 = vadd.f32 1.4214138, %v5451_v39  ;;  %v5422_v37 = vmul.f32 1.0614054, %v9348_v55  ;;  %v9355_v34 = vmul.f32 %v7016_v4, %v5393_v9  ;;  %v5211_v39 = vpop.f32.mrf.mxu1  ;;  %v7024_v42 = vpop.eup %7023  ;;  %v5456_v31 = vmul.f32 %v5440_v33, %v9340_v52 }
0x100e   :  { %v5514_v22 = vmul.f32 %v5498_v2, %v9305_v58  ;;  %v5501_v57 = vadd.f32 -0.28449672, %v5485_v61  ;;  %v5532_v36 = vadd.f32 0.2548296, %v5516_v54  ;;  %v5391_v44 = vsub.f32 2.0, %v5375_v28  ;;  %v7026_v2 = vpop.eup %7025 }
0x100f   :  { %v5483_v45 = vmul.f32 %v5467_v17, %v9323_v51  ;;  %v5438_v61 = vadd.f32 -1.4531521, %v5422_v37  ;;  %v5425_v54 = vmul.f32 1.0614054, %v9355_v34  ;;  %7033 = vpow2.f32 %v5608_v14  ;;  %v9361_v30 = vpop.eup %7027 }
0x1010   :  { %v5530_v5 = vadd.f32 0.2548296, %v5514_v22  ;;  %v5517_v12 = vmul.f32 %v5501_v57, %v9313_v3  ;;  %v5472_v17 = vadd.f32 1.4214138, %v5456_v31  ;;  %v9363_v9 = vmul.f32 %v7020_v10, %v5391_v44 }
0x1011   :  { %v5499_v59 = vadd.f32 -0.28449672, %v5483_v45  ;;  %v9366_v22 = vadd.f32 %v5211_v39, %v9220_v16  ;;  %v5454_v33 = vmul.f32 %v5438_v61, %v9348_v55  ;;  %v5441_v28 = vadd.f32 -1.4531521, %v5425_v54  ;;  %v7030_v45 = vpop.eup %7029 }
0x1012   :  { %v5533_v4 = vadd.f32 0.2548296, %v5517_v12  ;;  %v5604_v19 = vmul.f32 1.442695, %v5583_v38  ;;  %v5548_v37 = vmul.f32 %v5532_v36, %v9296_v0  ;;  %v5488_v40 = vmul.f32 %v5472_v17, %v9340_v52 }
0x1013   :  { %v5515_v57 = vmul.f32 %v5499_v59, %v9323_v51  ;;  %v5423_v12 = vmul.f32 1.0614054, %v9363_v9  ;;  %v5546_v10 = vmul.f32 %v5530_v5, %v9305_v58  ;;  %v5470_v39 = vadd.f32 1.4214138, %v5454_v33 }
0x1014   :  { %v5549_v14 = vmul.f32 %v5533_v4, %v9313_v3  ;;  %v5457_v44 = vmul.f32 %v5441_v28, %v9355_v34  ;;  %v5504_v59 = vadd.f32 -0.28449672, %v5488_v40  ;;  %v9377_v61 = vmul.f32 0.70710677, %v9366_v22 }
0x1015   :  { %v5531_v31 = vadd.f32 0.2548296, %v5515_v57  ;;  %v5439_v63 = vadd.f32 -1.4531521, %v5423_v12  ;;  %v5486_v36 = vmul.f32 %v5470_v39, %v9348_v55  ;;  %7035 = vpow2.f32 %v5604_v19 }
0x1016   :  { %v5473_v0 = vadd.f32 1.4214138, %v5457_v44  ;;  %v5628_v3 = vmul.f32 %v7018_v7, %v5548_v37  ;;  %v5629_v54 = vmul.f32 %v7024_v42, %v5549_v14  ;;  %v5520_v4 = vmul.f32 %v5504_v59, %v9340_v52 }
0x1017   :  { %v5547_v38 = vmul.f32 %v5531_v31, %v9323_v51  ;;  %v5455_v58 = vmul.f32 %v5439_v63, %v9363_v9  ;;  %v7032_v5 = vpop.eup %7031  ;;  %v5626_v17 = vmul.f32 %v7022_v53, %v5546_v10  ;;  %v5502_v40 = vadd.f32 -0.28449672, %v5486_v36 }
0x1018   :  { %v5489_v33 = vmul.f32 %v5473_v0, %v9355_v34  ;;  %v5536_v28 = vadd.f32 0.2548296, %v5520_v4  ;;  %v9385_v51 = vand.u32 2147483647, %v9377_v61  ;;  %v5380_v42 = vmul.f32 %v7032_v5, %v9337_v20 }
0x1019   :  { %v5627_v57 = vmul.f32 %v7026_v2, %v5547_v38  ;;  %v5471_v12 = vadd.f32 1.4214138, %v5455_v58  ;;  %v5518_v19 = vmul.f32 %v5502_v40, %v9348_v55  ;;  %v5645_v37 = vsub.f32 1.0, %v5629_v54 }
0x101a   :  { %v5505_v7 = vadd.f32 -0.28449672, %v5489_v33  ;;  %v5291_v63 = vsel %vm5275_vm10, 1.0, %v9722_v18  ;;  %v5644_v2 = vsub.f32 1.0, %v5628_v3  ;;  %v5642_v14 = vsub.f32 1.0, %v5626_v17  ;;  %v6612_v17 = vpop.f32.mrf.mxu1 }
0x101b   :  { %v5643_v31 = vsub.f32 1.0, %v5627_v57  ;;  %v5487_v53 = vmul.f32 %v5471_v12, %v9363_v9  ;;  %v5534_v10 = vadd.f32 0.2548296, %v5518_v19  ;;  %v5552_v38 = vmul.f32 %v5536_v28, %v9340_v52 }
0x101c   :  { %v5521_v39 = vmul.f32 %v5505_v7, %v9355_v34  ;;  %v7034_v44 = vpop.eup %7033  ;;  %v5330_v20 = vmul.f32 0.3275911, %v9385_v51  ;;  %v9398_v0 = vmul.f32 0.5, %v9239_v46  ;;  %v5396_v4 = vsub.f32 2.0, %v5380_v42 }
0x101d   :  { %v5659_v59 = vmul.f32 %v5643_v31, %v5291_v63  ;;  %v5503_v36 = vadd.f32 -0.28449672, %v5487_v53  ;;  %v5550_v62 = vmul.f32 %v5534_v10, %v9348_v55  ;;  %v5661_v3 = vmul.f32 %v5645_v37, %v9320_v27 }
0x101e   :  { %v5537_v54 = vadd.f32 0.2548296, %v5521_v39  ;;  %v5294_v58 = vsel %vm5278_vm11, 1.0, %v9722_v18  ;;  %v5660_v57 = vmul.f32 %v5644_v2, %v9268_v11  ;;  %v5658_v46 = vmul.f32 %v5642_v14, %v9271_v49 }
0x101f   :  { %v5519_v52 = vmul.f32 %v5503_v36, %v9363_v9  ;;  %v5630_v40 = vmul.f32 %v7030_v45, %v5550_v62  ;;  %v5675_v33 = vadd.f32 1.0, %v5659_v59  ;;  %v5632_v28 = vmul.f32 %v9361_v30, %v5552_v38 }
0x1020   :  { %v5553_v55 = vmul.f32 %v5537_v54, %v9355_v34  ;;  %v5346_v12 = vadd.f32 1.0, %v5330_v20  ;;  %v9411_v7 = vmul.f32 %v7032_v5, %v5396_v4  ;;  %v9414_v15 = vadd.f32 %v6612_v17, %v9220_v16  ;;  %v5214_v34 = vpop.f32.mrf.mxu1 }
0x1021   :  { %v5535_v27 = vadd.f32 0.2548296, %v5519_v52  ;;  %v5646_v31 = vsub.f32 1.0, %v5630_v40  ;;  %v5677_v37 = vadd.f32 1.0, %v5661_v3  ;;  %v5676_v49 = vadd.f32 1.0, %v5660_v57 }
0x1022   :  { %v5633_v19 = vmul.f32 %v7034_v44, %v5553_v55  ;;  %v7036_v42 = vpop.eup %7035  ;;  %7037 = vrcp.f32 %v5346_v12  ;;  %v5674_v45 = vadd.f32 1.0, %v5658_v46  ;;  %v5648_v63 = vsub.f32 1.0, %v5632_v28 }
0x1023   :  { %v5551_v11 = vmul.f32 %v5535_v27, %v9363_v9  ;;  %v5662_v53 = vmul.f32 %v5646_v31, %v5294_v58  ;;  %v9420_v2 = vmul.f32 0.70710677, %v9414_v15  ;;  %v5691_v14 = vmul.f32 %v5675_v33, %v9293_v35 }
0x1024   :  { %v5649_v30 = vsub.f32 1.0, %v5633_v19  ;;  %v5297_v10 = vsel %vm5281_vm13, 1.0, %v9722_v18  ;;  %v5428_v56 = vmul.f32 1.0614054, %v9411_v7  ;;  %v9426_v9 = vadd.f32 %v5214_v34, %v9220_v16 }
0x1025   :  { %v5631_v5 = vmul.f32 %v7036_v42, %v5551_v11  ;;  %v5693_v39 = vmul.f32 %v5677_v37, %v9279_v25  ;;  %v9430_v38 = vand.u32 2147483647, %v9420_v2  ;;  %v5692_v36 = vmul.f32 %v5676_v49, %v9253_v60 }
0x1026   :  { %v5665_v44 = vmul.f32 %v5649_v30, %v5297_v10  ;;  %v5690_v20 = vmul.f32 %v5674_v45, %v9257_v13  ;;  %v5296_v35 = vsel %vm5280_vm12, 1.0, %v9722_v18  ;;  %v5295_v62 = vsel %vm5279_vm14, 1.0, %v9722_v18 }
0x1027   :  { %v5647_v59 = vsub.f32 1.0, %v5631_v5  ;;  %v5664_v54 = vmul.f32 %v5648_v63, %v5296_v35  ;;  %v5678_v4 = vadd.f32 1.0, %v5662_v53  ;;  %v5333_v3 = vmul.f32 0.3275911, %v9430_v38 }
0x1028   :  { %v5247_v58 = vmul.f32 0.5, %v9263_v48  ;;  %v5444_v52 = vadd.f32 -1.4531521, %v5428_v56  ;;  %v9443_v60 = vmul.f32 0.70710677, %v9426_v9  ;;  %v5706_v13 = vpack.c.bf16 %v5691_v14, %v5690_v20 }
0x1029   :  { %v5663_v25 = vmul.f32 %v5647_v59, %v5295_v62  ;;  %v5707_v17 = vpack.c.bf16 %v5693_v39, %v5692_v36  ;;  %v5681_v57 = vadd.f32 1.0, %v5665_v44  ;;  %v5349_v46 = vadd.f32 1.0, %v5333_v3 }
0x102a   :  { %v5249_v40 = vmul.f32 0.5, %v9251_v8  ;;  %v9447_v23 = vand.u32 2147483647, %v9443_v60  ;;  %6633 = vmatprep.mubr.bf16.mxu0 %v5706_v13  ;;  %v5680_v55 = vadd.f32 1.0, %v5664_v54  ;;  %v5694_v33 = vmul.f32 %v5678_v4, %v9398_v0 }
0x102b   :  { %v5679_v24 = vadd.f32 1.0, %v5663_v25  ;;  %7039 = vrcp.f32 %v5349_v46  ;;  %6634 = vmatmul.mubr.bf16.vlgmr.msra.gmra.mxu0 %v5707_v17  ;;  %v5460_v48 = vmul.f32 %v5444_v52, %v9411_v7  ;;  %v5248_v31 = vmul.f32 0.5, %v9236_v47 }
0x102c   :  { %v5331_v27 = vmul.f32 0.3275911, %v9447_v23  ;;  %v5697_v19 = vmul.f32 %v5681_v57, %v5249_v40  ;;  %v5572_v8 = vsub.f32 0.0, %v9326_v43  ;;  %vm5282_vm1 = vcmp.ge.f32.partialorder %v9377_v61, 0.0 }
0x102d   :  { %v5695_v28 = vmul.f32 %v5679_v24, %v5247_v58  ;;  %v5696_v49 = vmul.f32 %v5680_v55, %v5248_v31  ;;  %v5476_v30 = vadd.f32 1.4214138, %v5460_v48  ;;  %v5573_v58 = vsub.f32 0.0, %v9430_v38 }
0x102e   :  { %v5347_v11 = vadd.f32 1.0, %v5331_v27  ;;  %v5588_v10 = vmul.f32 %v5572_v8, %v9326_v43  ;;  %vm5285_vm2 = vcmp.ge.f32.partialorder %v9420_v2, 0.0  ;;  %v5300_v29 = vsel %vm5284_vm15, 1.0, %v9722_v18 }
0x102f   :  { %v5708_v42 = vpack.c.bf16 %v5695_v28, %v5694_v33  ;;  %v7038_v37 = vpop.eup %7037  ;;  %v5709_v53 = vpack.c.bf16 %v5697_v19, %v5696_v49  ;;  %v5492_v59 = vmul.f32 %v5476_v30, %v9411_v7  ;;  %v5589_v19 = vmul.f32 %v5573_v58, %v9430_v38 }
0x1030   :  { %v5378_v45 = vmul.f32 %v7038_v37, %v5346_v12  ;;  %7041 = vrcp.f32 %v5347_v11  ;;  %v5570_v12 = vsub.f32 0.0, %v9385_v51  ;;  %v5614_v62 = vmul.f32 1.442695, %v5588_v10 }
0x1031   :  { %6637 = vmatprep.mubr.bf16.mxu0 %v5708_v42  ;;  %v5508_v17 = vadd.f32 -0.28449672, %v5492_v59  ;;  %v5571_v42 = vsub.f32 0.0, %v9447_v23  ;;  %vm5283_vm3 = vcmp.ge.f32.partialorder %v9443_v60, 0.0  ;;  %v5252_v60 = vmul.f32 0.5, %v9302_v26 }
0x1032   :  { %v6615_v34 = vpop.f32.mrf.mxu1  ;;  %v5394_v5 = vsub.f32 2.0, %v5378_v45  ;;  %v5586_v3 = vmul.f32 %v5570_v12, %v9385_v51 }
0x1033   :  { %v9455_v0 = vadd.f32 %v6615_v34, %v9220_v16  ;;  %6638 = vmatmul.mubr.bf16.gmra.mxu0 %v5709_v53  ;;  %v5524_v8 = vmul.f32 %v5508_v17, %v9411_v7  ;;  %v5616_v53 = vmul.f32 1.442695, %v5589_v19  ;;  %v5587_v10 = vmul.f32 %v5571_v42, %v9447_v23 }
0x1034   :  { %v5227_v63 = vpop.f32.mrf.mxu1  ;;  %v9464_v39 = vmul.f32 %v7038_v37, %v5394_v5  ;;  %v5610_v27 = vmul.f32 1.442695, %v5586_v3 }
0x1035   :  { %v9458_v47 = vmul.f32 0.70710677, %v9455_v0  ;;  %v9461_v14 = vadd.f32 %v5227_v63, %v9220_v16 }
0x1036   :  { %v6616_v56 = vpop.f32.mrf.mxu1  ;;  %v5426_v35 = vmul.f32 1.0614054, %v9464_v39 }
0x1037   :  { %v9468_v44 = vand.u32 2147483647, %v9458_v47  ;;  %v9472_v36 = vmul.f32 0.70710677, %v9461_v14  ;;  %v9475_v20 = vadd.f32 %v6616_v56, %v9220_v16  ;;  %v5540_v56 = vadd.f32 0.2548296, %v5524_v8 }
0x1038   :  { %v5230_v4 = vpop.f32.mrf.mxu1  ;;  %v5442_v25 = vadd.f32 -1.4531521, %v5426_v35  ;;  %v7040_v13 = vpop.eup %7039  ;;  %vm5288_vm6 = vcmp.ge.f32.partialorder %v9458_v47, 0.0 }
0x1039   :  { %v5336_v43 = vmul.f32 0.3275911, %v9468_v44  ;;  %v9480_v54 = vand.u32 2147483647, %v9472_v36  ;;  %v9486_v24 = vmul.f32 0.70710677, %v9475_v20  ;;  %v5381_v55 = vmul.f32 %v7040_v13, %v5349_v46 }
0x103a   :  { %v5458_v40 = vmul.f32 %v5442_v25, %v9464_v39  ;;  %v9490_v33 = vadd.f32 %v5230_v4, %v9220_v16  ;;  %v5612_v25 = vmul.f32 1.442695, %v5587_v10  ;;  %v5556_v23 = vmul.f32 %v5540_v56, %v9411_v7 }
0x103b   :  { %v5352_v52 = vadd.f32 1.0, %v5336_v43  ;;  %v5334_v57 = vmul.f32 0.3275911, %v9480_v54  ;;  %v9493_v51 = vand.u32 2147483647, %v9486_v24  ;;  %v5397_v31 = vsub.f32 2.0, %v5381_v55 }
0x103c   :  { %v5474_v48 = vadd.f32 1.4214138, %v5458_v40  ;;  %v9503_v49 = vmul.f32 0.70710677, %v9490_v33  ;;  %vm5289_vm4 = vcmp.ge.f32.partialorder %v9486_v24, 0.0  ;;  %vm5286_vm5 = vcmp.ge.f32.partialorder %v9472_v36, 0.0 }
0x103d   :  { %7043 = vrcp.f32 %v5352_v52  ;;  %v5350_v28 = vadd.f32 1.0, %v5334_v57  ;;  %v5337_v37 = vmul.f32 0.3275911, %v9493_v51  ;;  %v7042_v46 = vpop.eup %7041  ;;  %v9500_v34 = vmul.f32 %v7040_v13, %v5397_v31 }
0x103e   :  { %7045 = vpow2.f32 %v5614_v62  ;;  %v5490_v16 = vmul.f32 %v5474_v48, %v9464_v39  ;;  %v5379_v45 = vmul.f32 %v7042_v46, %v5347_v11  ;;  %v9509_v35 = vand.u32 2147483647, %v9503_v49 }
0x103f   :  { %7047 = vrcp.f32 %v5350_v28  ;;  %v5353_v30 = vadd.f32 1.0, %v5337_v37  ;;  %v5429_v38 = vmul.f32 1.0614054, %v9500_v34  ;;  %v9520_v57 = vmul.f32 0.5, %v9366_v22 }
0x1040   :  { %v5506_v63 = vadd.f32 -0.28449672, %v5490_v16  ;;  %7049 = vpow2.f32 %v5610_v27  ;;  %v5395_v5 = vsub.f32 2.0, %v5379_v45  ;;  %v5335_v62 = vmul.f32 0.3275911, %v9509_v35 }
0x1041   :  { %7051 = vrcp.f32 %v5353_v30  ;;  %v5445_v59 = vadd.f32 -1.4531521, %v5429_v38  ;;  %v5298_v16 = vsel %vm5282_vm1, 1.0, %v9722_v18  ;;  %v5577_v10 = vsub.f32 0.0, %v9493_v51 }
0x1042   :  { %v5522_v12 = vmul.f32 %v5506_v63, %v9464_v39  ;;  %v9511_v43 = vmul.f32 %v7042_v46, %v5395_v5  ;;  %7053 = vpow2.f32 %v5616_v53  ;;  %v9517_v13 = vadd.f32 1.0, %v5335_v62 }
0x1043   :  { %v5461_v11 = vmul.f32 %v5445_v59, %v9500_v34  ;;  %v5574_v63 = vsub.f32 0.0, %v9480_v54  ;;  %vm5287_vm7 = vcmp.ge.f32.partialorder %v9503_v49, 0.0 }
0x1044   :  { %v5427_v4 = vmul.f32 1.0614054, %v9511_v43  ;;  %v5538_v3 = vadd.f32 0.2548296, %v5522_v12  ;;  %7055 = vrcp.f32 %v9517_v13 }
0x1045   :  { %v5477_v58 = vadd.f32 1.4214138, %v5461_v11  ;;  %7057 = vpow2.f32 %v5612_v25 }
0x1046   :  { %v5443_v40 = vadd.f32 -1.4531521, %v5427_v4  ;;  %v5554_v22 = vmul.f32 %v5538_v3, %v9464_v39  ;;  %v5301_v39 = vsel %vm5285_vm2, 1.0, %v9722_v18 }
0x1047   :  { %v5493_v48 = vmul.f32 %v5477_v58, %v9500_v34  ;;  %v5590_v58 = vmul.f32 %v5574_v63, %v9480_v54 }
0x1048   :  { %v5459_v7 = vmul.f32 %v5443_v40, %v9511_v43 }
0x1049   :  { %v5509_v42 = vadd.f32 -0.28449672, %v5493_v48 }
0x104a   :  { %v7044_v17 = vpop.eup %7043  ;;  %v5475_v46 = vadd.f32 1.4214138, %v5459_v7 }
0x104b   :  { %v7046_v55 = vpop.eup %7045  ;;  %v5384_v27 = vmul.f32 %v7044_v17, %v5352_v52  ;;  %v5576_v52 = vsub.f32 0.0, %v9468_v44  ;;  %v5525_v61 = vmul.f32 %v5509_v42, %v9500_v34 }
0x104c   :  { %v7048_v31 = vpop.eup %7047  ;;  %v5636_v19 = vmul.f32 %v7046_v55, %v5556_v23  ;;  %v5491_v53 = vmul.f32 %v5475_v46, %v9511_v43  ;;  %v5618_v46 = vmul.f32 1.442695, %v5590_v58 }
0x104d   :  { %v5400_v37 = vsub.f32 2.0, %v5384_v27  ;;  %v5382_v8 = vmul.f32 %v7048_v31, %v5350_v28  ;;  %v7050_v38 = vpop.eup %7049  ;;  %v5541_v59 = vadd.f32 0.2548296, %v5525_v61  ;;  %v5592_v4 = vmul.f32 %v5576_v52, %v9468_v44 }
0x104e   :  { %v7052_v56 = vpop.eup %7051  ;;  %v5652_v28 = vsub.f32 1.0, %v5636_v19  ;;  %v5634_v12 = vmul.f32 %v7050_v38, %v5554_v22  ;;  %v5507_v62 = vadd.f32 -0.28449672, %v5491_v53  ;;  %v5593_v27 = vmul.f32 %v5577_v10, %v9493_v51 }
0x104f   :  { %v9533_v45 = vmul.f32 %v7044_v17, %v5400_v37  ;;  %v5398_v5 = vsub.f32 2.0, %v5382_v8  ;;  %v5385_v23 = vmul.f32 %v7052_v56, %v5353_v30  ;;  %v5557_v2 = vmul.f32 %v5541_v59, %v9500_v34  ;;  %v7054_v17 = vpop.eup %7053 }
0x1050   :  { %v5523_v40 = vmul.f32 %v5507_v62, %v9511_v43  ;;  %v5668_v7 = vmul.f32 %v5652_v28, %v5300_v29  ;;  %v5650_v44 = vsub.f32 1.0, %v5634_v12  ;;  %v5622_v34 = vmul.f32 1.442695, %v5592_v4 }
0x1051   :  { %v5432_v11 = vmul.f32 1.0614054, %v9533_v45  ;;  %v9543_v25 = vmul.f32 %v7048_v31, %v5398_v5  ;;  %v5401_v48 = vsub.f32 2.0, %v5385_v23  ;;  %v5637_v31 = vmul.f32 %v7054_v17, %v5557_v2  ;;  %v7056_v8 = vpop.eup %7055 }
0x1052   :  { %v5539_v19 = vadd.f32 0.2548296, %v5523_v40  ;;  %v5575_v52 = vsub.f32 0.0, %v9509_v35  ;;  %v5624_v63 = vmul.f32 1.442695, %v5593_v27  ;;  %v7058_v38 = vpop.eup %7057  ;;  %v5666_v53 = vmul.f32 %v5650_v44, %v5298_v16 }
0x1053   :  { %v5448_v3 = vadd.f32 -1.4531521, %v5432_v11  ;;  %v5430_v55 = vmul.f32 1.0614054, %v9543_v25  ;;  %v9552_v42 = vmul.f32 %v7052_v56, %v5401_v48  ;;  %v5653_v37 = vsub.f32 1.0, %v5637_v31 }
0x1054   :  { %v5555_v61 = vmul.f32 %v5539_v19, %v9511_v43  ;;  %v5383_v56 = vmul.f32 %v7056_v8, %v9517_v13  ;;  %7059 = vpow2.f32 %v5622_v34  ;;  %v5591_v43 = vmul.f32 %v5575_v52, %v9509_v35 }
0x1055   :  { %v5464_v30 = vmul.f32 %v5448_v3, %v9533_v45  ;;  %v5446_v22 = vadd.f32 -1.4531521, %v5430_v55  ;;  %v5433_v29 = vmul.f32 1.0614054, %v9552_v42  ;;  %v5669_v5 = vmul.f32 %v5653_v37, %v5301_v39 }
0x1056   :  { %v5635_v28 = vmul.f32 %v7058_v38, %v5555_v61  ;;  %7061 = vpow2.f32 %v5618_v46  ;;  %v5399_v62 = vsub.f32 2.0, %v5383_v56  ;;  %v5682_v16 = vadd.f32 1.0, %v5666_v53 }
0x1057   :  { %v5480_v54 = vadd.f32 1.4214138, %v5464_v30  ;;  %v5462_v51 = vmul.f32 %v5446_v22, %v9543_v25  ;;  %v5449_v59 = vadd.f32 -1.4531521, %v5433_v29  ;;  %7063 = vpow2.f32 %v5624_v63 }
0x1058   :  { %v5651_v4 = vsub.f32 1.0, %v5635_v28  ;;  %v5685_v39 = vadd.f32 1.0, %v5669_v5  ;;  %v5299_v13 = vsel %vm5283_vm3, 1.0, %v9722_v18  ;;  %v5415_v3 = vmul.f32 %v7056_v8, %v5399_v62 }
0x1059   :  { %v5496_v10 = vmul.f32 %v5480_v54, %v9533_v45  ;;  %v5478_v12 = vadd.f32 1.4214138, %v5462_v51  ;;  %v5465_v2 = vmul.f32 %v5449_v59, %v9552_v42  ;;  %v5684_v48 = vadd.f32 1.0, %v5668_v7 }
0x105a   :  { %v5667_v58 = vmul.f32 %v5651_v4, %v5299_v13  ;;  %v5253_v35 = vmul.f32 0.5, %v9414_v15  ;;  %v5431_v27 = vmul.f32 1.0614054, %v5415_v3  ;;  %v5620_v44 = vmul.f32 1.442695, %v5591_v43 }
0x105b   :  { %v5512_v11 = vadd.f32 -0.28449672, %v5496_v10  ;;  %v5494_v23 = vmul.f32 %v5478_v12, %v9543_v25  ;;  %v5481_v55 = vadd.f32 1.4214138, %v5465_v2  ;;  %v5251_v31 = vmul.f32 0.5, %v9426_v9 }
0x105c   :  { %v5683_v30 = vadd.f32 1.0, %v5667_v58  ;;  %v5698_v22 = vmul.f32 %v5682_v16, %v9520_v57  ;;  %v5701_v37 = vmul.f32 %v5685_v39, %v5253_v35  ;;  %v5447_v54 = vadd.f32 -1.4531521, %v5431_v27 }
0x105d   :  { %v5528_v17 = vmul.f32 %v5512_v11, %v9533_v45  ;;  %v5510_v40 = vadd.f32 -0.28449672, %v5494_v23  ;;  %v5497_v34 = vmul.f32 %v5481_v55, %v9552_v42  ;;  %v5700_v15 = vmul.f32 %v5684_v48, %v5252_v60 }
0x105e   :  { %v5699_v46 = vmul.f32 %v5683_v30, %v5251_v31  ;;  %v5463_v61 = vmul.f32 %v5447_v54, %v5415_v3  ;;  %7065 = vpow2.f32 %v5620_v44  ;;  %v5305_v2 = vsel %vm5289_vm4, 1.0, %v9722_v18 }
0x105f   :  { %v5526_v19 = vmul.f32 %v5510_v40, %v9543_v25  ;;  %v5544_v52 = vadd.f32 0.2548296, %v5528_v17  ;;  %v5513_v8 = vadd.f32 -0.28449672, %v5497_v34  ;;  %v5711_v29 = vpack.c.bf16 %v5701_v37, %v5700_v15 }
0x1060   :  { %v5710_v51 = vpack.c.bf16 %v5699_v46, %v5698_v22  ;;  %v5479_v38 = vadd.f32 1.4214138, %v5463_v61  ;;  %v5302_v39 = vsel %vm5286_vm5, 1.0, %v9722_v18  ;;  %v5304_v58 = vsel %vm5288_vm6, 1.0, %v9722_v18 }
0x1061   :  { %v5542_v7 = vadd.f32 0.2548296, %v5526_v19  ;;  %v5529_v9 = vmul.f32 %v5513_v8, %v9552_v42  ;;  %v5560_v26 = vmul.f32 %v5544_v52, %v9533_v45  ;;  %v7060_v53 = vpop.eup %7059  ;;  %v5303_v48 = vsel %vm5287_vm7, 1.0, %v9722_v18 }
0x1062   :  { %6641 = vmatprep.mubr.bf16.mxu0 %v5710_v51  ;;  %v5495_v5 = vmul.f32 %v5479_v38, %v5415_v3  ;;  %v5254_v44 = vmul.f32 0.5, %v9461_v14  ;;  %v5255_v31 = vmul.f32 0.5, %v9490_v33  ;;  %v5256_v19 = vmul.f32 0.5, %v9455_v0 }
0x1063   :  { %v5558_v63 = vmul.f32 %v5542_v7, %v9543_v25  ;;  %v5545_v57 = vadd.f32 0.2548296, %v5529_v9  ;;  %6642 = vmatmul.mubr.bf16.gmra.mxu0 %v5711_v29  ;;  %v7062_v10 = vpop.eup %7061  ;;  %v5640_v11 = vmul.f32 %v7060_v53, %v5560_v26  ;;  %v5716_v18 = vsub.s32 7, %v9710_v21 }
0x1064   :  { %v7064_v28 = vpop.eup %7063  ;;  %v5511_v59 = vadd.f32 -0.28449672, %v5495_v5 }
0x1065   :  { %v5561_v56 = vmul.f32 %v5545_v57, %v9552_v42  ;;  %v5638_v12 = vmul.f32 %v7062_v10, %v5558_v63  ;;  %v5656_v23 = vsub.f32 1.0, %v5640_v11  ;;  %v9723_v57 = vld [vmem:[#allocation6_spill] sm:$0xff]  ;;  %v9724_v10 = vld [vmem:[#allocation4_spill] sm:$0xff] }
0x1066   :  { %v5527_v43 = vmul.f32 %v5511_v59, %v5415_v3 }
0x1067   :  { %v5641_v62 = vmul.f32 %v7064_v28, %v5561_v56  ;;  %v5654_v45 = vsub.f32 1.0, %v5638_v12  ;;  %v5672_v40 = vmul.f32 %v5656_v23, %v5304_v58  ;;  %v9727_v23 = vld [vmem:[#allocation5_spill] sm:$0xff] }
0x1068   :  { %v5543_v4 = vadd.f32 0.2548296, %v5527_v43  ;;  %v9726_v43 = vld [vmem:[#allocation9_spill] sm:$0xff] }
0x1069   :  { %v5657_v25 = vsub.f32 1.0, %v5641_v62  ;;  %v5670_v17 = vmul.f32 %v5654_v45, %v5302_v39  ;;  %v5688_v27 = vadd.f32 1.0, %v5672_v40  ;;  %v9728_v39 = vld [vmem:[#allocation3_spill] sm:$0xff] }
0x106a   :  { %v5559_v16 = vmul.f32 %v5543_v4, %v5415_v3  ;;  %v5257_v3 = vmul.f32 0.5, %v9475_v20  ;;  %v7086_v20 = vld [vmem:[%s9675_s2] sm:$0xff] }
0x106b   :  { %v7066_v42 = vpop.eup %7065  ;;  %v5673_v13 = vmul.f32 %v5657_v25, %v5305_v2  ;;  %v5686_v47 = vadd.f32 1.0, %v5670_v17  ;;  %v5704_v22 = vmul.f32 %v5688_v27, %v5256_v19  ;;  %v5717_v14 = vrot.slane %v7086_v20, %v5716_v18  ;;  %v9729_v17 = vld [vmem:[#allocation8_spill] sm:$0xff]  ;;  %v9732_v19 = vld [vmem:[#allocation13_spill] sm:$0xff] }
0x106c   :  { %v5639_v24 = vmul.f32 %v7066_v42, %v5559_v16 }
0x106d   :  { %v5689_v55 = vadd.f32 1.0, %v5673_v13  ;;  %v5702_v49 = vmul.f32 %v5686_v47, %v5254_v44 }
0x106e   :  { %v5655_v36 = vsub.f32 1.0, %v5639_v24 }
0x106f   :  { %v5705_v34 = vmul.f32 %v5689_v55, %v5257_v3  ;;  %v9731_v3 = vld [vmem:[#allocation10_spill] sm:$0xff] }
0x1070   :  { %v5671_v35 = vmul.f32 %v5655_v36, %v5303_v48  ;;  %v9730_v48 = vld [vmem:[#allocation11_spill] sm:$0xff] }
0x1071   :  { %v5713_v54 = vpack.c.bf16 %v5705_v34, %v5704_v22 }
0x1072   :  { %v5687_v30 = vadd.f32 1.0, %v5671_v35 }
0x1074   :  { %v5703_v60 = vmul.f32 %v5687_v30, %v5255_v31 }
0x1076   :  { %v5712_v37 = vpack.c.bf16 %v5703_v60, %v5702_v49  ;;  %v9733_v60 = vld [vmem:[#allocation12_spill] sm:$0xff] }
0x1078   :  { %6645 = vmatprep.mubr.bf16.mxu0 %v5712_v37 }
0x1079   :  { %6646 = vmatmul.mubr.bf16.gmra.mxu0 %v5713_v54 }
0x10eb   :  { %v6635_v46 = vpop.f32.mrf.mxu0 }
0x10ec   :  { %v5809_v33 = vadd.f32 %v6635_v46, %v5717_v14 }
0x10ed   :  { %v5800_v52 = vpop.f32.mrf.mxu0 }
0x10ee   :  { %v5865_v0 = vadd.f32 %v5809_v33, %v8904_v32  ;;  %v5801_v7 = vadd.f32 %v5800_v52, %v5717_v14 }
0x10ef   :  { %v6636_v8 = vpop.f32.mrf.mxu0 }
0x10f0   :  { %5881 = vst.msk [vmem:[%s9678_s5 + $0x10] sm:$0xff] %vm58_vm0, %v5865_v0  ;;  %v5863_v15 = vadd.f32 %v5801_v7, %v8899_v41  ;;  %v5812_v21 = vadd.f32 %v6636_v8, %v5717_v14 }
0x10f1   :  { %v5803_v61 = vpop.f32.mrf.mxu0 }
0x10f2   :  { %5879 = vst.msk [vmem:[%s9678_s5] sm:$0xff] %vm58_vm0, %v5863_v15  ;;  %v5866_v51 = vadd.f32 %v5812_v21, %v8918_v1  ;;  %v5804_v9 = vadd.f32 %v5803_v61, %v5717_v14 }
0x10f3   :  { %v6639_v32 = vpop.f32.mrf.mxu0 }
0x10f4   :  { %5882 = vst.msk [vmem:[%s9678_s5 + $0x18] sm:$0xff] %vm58_vm0, %v5866_v51  ;;  %v5864_v29 = vadd.f32 %v5804_v9, %v8913_v50  ;;  %v5825_v63 = vadd.f32 %v6639_v32, %v5717_v14 }
0x10f5   :  { %v5816_v41 = vpop.f32.mrf.mxu0 }
0x10f6   :  { %5880 = vst.msk [vmem:[%s9678_s5 + $0x8] sm:$0xff] %vm58_vm0, %v5864_v29  ;;  %v5869_v38 = vadd.f32 %v5825_v63, %v8943_v6  ;;  %v5817_v26 = vadd.f32 %v5816_v41, %v5717_v14  ;;  %v9725_v6 = vld [vmem:[#allocation7_spill] sm:$0xff] }
0x10f7   :  { %v6640_v1 = vpop.f32.mrf.mxu0 }
0x10f8   :  { %5885 = vst.msk [vmem:[%s9678_s5 + $0x30] sm:$0xff] %vm58_vm0, %v5869_v38  ;;  %v5867_v53 = vadd.f32 %v5817_v26, %v9723_v57  ;;  %v5828_v5 = vadd.f32 %v6640_v1, %v5717_v14 }
0x10f9   :  { %v5819_v50 = vpop.f32.mrf.mxu0 }
0x10fa   :  { %5883 = vst.msk [vmem:[%s9678_s5 + $0x20] sm:$0xff] %vm58_vm0, %v5867_v53  ;;  %v5870_v56 = vadd.f32 %v5828_v5, %v9724_v10  ;;  %v5820_v28 = vadd.f32 %v5819_v50, %v5717_v14 }
0x10fc   :  { %5886 = vst.msk [vmem:[%s9678_s5 + $0x38] sm:$0xff] %vm58_vm0, %v5870_v56  ;;  %v5868_v12 = vadd.f32 %v5820_v28, %v9725_v6 }
0x10fe   :  { %5884 = vst.msk [vmem:[%s9678_s5 + $0x28] sm:$0xff] %vm58_vm0, %v5868_v12 }
0x1123   :  { %v6643_v59 = vpop.f32.mrf.mxu0 }
0x1124   :  { %v5841_v11 = vadd.f32 %v6643_v59, %v5717_v14 }
0x1125   :  { %v5832_v62 = vpop.f32.mrf.mxu0 }
0x1126   :  { %v5873_v25 = vadd.f32 %v5841_v11, %v9726_v43  ;;  %v5833_v45 = vadd.f32 %v5832_v62, %v5717_v14 }
0x1127   :  { %v6644_v4 = vpop.f32.mrf.mxu0 }
0x1128   :  { %5889 = vst.msk [vmem:[%s9678_s5 + $0x50] sm:$0xff] %vm58_vm0, %v5873_v25  ;;  %v5871_v2 = vadd.f32 %v5833_v45, %v9727_v23  ;;  %v5844_v16 = vadd.f32 %v6644_v4, %v5717_v14 }
0x1129   :  { %v5835_v42 = vpop.f32.mrf.mxu0 }
0x112a   :  { %5887 = vst.msk [vmem:[%s9678_s5 + $0x40] sm:$0xff] %vm58_vm0, %v5871_v2  ;;  %v5874_v13 = vadd.f32 %v5844_v16, %v9728_v39  ;;  %v5836_v58 = vadd.f32 %v5835_v42, %v5717_v14 }
0x112c   :  { %5890 = vst.msk [vmem:[%s9678_s5 + $0x58] sm:$0xff] %vm58_vm0, %v5874_v13  ;;  %v5872_v24 = vadd.f32 %v5836_v58, %v9729_v17 }
0x112e   :  { %5888 = vst.msk [vmem:[%s9678_s5 + $0x48] sm:$0xff] %vm58_vm0, %v5872_v24 }
0x1139   :  { %v6647_v40 = vpop.f32.mrf.mxu0 }
0x113a   :  { %v5857_v36 = vadd.f32 %v6647_v40, %v5717_v14 }
0x113b   :  { %v5848_v55 = vpop.f32.mrf.mxu0 }
0x113c   :  { %v5877_v47 = vadd.f32 %v5857_v36, %v9730_v48  ;;  %v5849_v35 = vadd.f32 %v5848_v55, %v5717_v14 }
0x113d   :  { %v6648_v27 = vpop.f32.mrf.mxu0 }
0x113e   :  { %5893 = vst.msk [vmem:[%s9678_s5 + $0x70] sm:$0xff] %vm58_vm0, %v5877_v47  ;;  %v5875_v44 = vadd.f32 %v5849_v35, %v9731_v3  ;;  %v5860_v31 = vadd.f32 %v6648_v27, %v5717_v14 }
0x113f   :  { %v5851_v30 = vpop.f32.mrf.mxu0 }
0x1140   :  { %5891 = vst.msk [vmem:[%s9678_s5 + $0x60] sm:$0xff] %vm58_vm0, %v5875_v44  ;;  %v5878_v34 = vadd.f32 %v5860_v31, %v9732_v19  ;;  %v5852_v49 = vadd.f32 %v5851_v30, %v5717_v14 }
0x1142   :  { %5894 = vst.msk [vmem:[%s9678_s5 + $0x78] sm:$0xff] %vm58_vm0, %v5878_v34  ;;  %v5876_v22 = vadd.f32 %v5852_v49, %v9733_v60 }
0x1144   :  { %5892 = vst.msk [vmem:[%s9678_s5 + $0x68] sm:$0xff] %vm58_vm0, %v5876_v22 }

</bundles_post_ra>
